<compile_context>
chip_gen: v6e
topology: v6e:2x2x1
jax: 0.10.0
libtpu: 0.0.40
codegen_flags: <defaults>
</compile_context>

<pallas_src>
import functools
import math

import jax
import jax.numpy as jnp
from jax.experimental import pallas as pl
from jax.experimental.pallas import tpu as pltpu


def _silu(x):
    return x * (1.0 / (1.0 + jnp.exp(-x)))


def _layer_norm(x, g, b, eps=1e-5):
    mu = jnp.mean(x, axis=-1, keepdims=True)
    xc = x - mu
    var = jnp.mean(xc * xc, axis=-1, keepdims=True)
    return xc * jax.lax.rsqrt(var + eps) * g + b


# ----------------------------------------------------------------------------
# Pallas kernel
# ----------------------------------------------------------------------------
def _imu_kernel(num_layers, num_heads, seq_len, x_ref, *refs):
    out_ref = refs[-1]
    prm = refs[:-1]
    pos = 0

    def nxt():
        nonlocal pos
        r = prm[pos]
        pos += 1
        return r

    N, F = x_ref.shape            # N = TB * S (flattened batch*seq rows)
    S = seq_len
    TB = N // S

    # ---- feature tokenizer: contraction K=F is tiny -> VPU broadcast-FMA ----
    w_tok = nxt()[...]            # (F, E)
    b_tok = nxt()[...]            # (1, E)
    E = w_tok.shape[1]
    xin = x_ref[...]
    x = xin[:, 0:1] * w_tok[0:1, :]
    for f in range(1, F):
        x = x + xin[:, f:f + 1] * w_tok[f:f + 1, :]
    x = x + b_tok
    x = _layer_norm(x, nxt()[...], nxt()[...])           # layer_norm1

    dh = E // num_heads

    for _ in range(num_layers):
        # fused QKV projection (1/sqrt(dh) already folded into Wq/bq at init)
        w_qkv = nxt()[...]        # (E, 3E)
        b_qkv = nxt()[...]        # (1, 3E)
        qkv = jnp.dot(x, w_qkv, preferred_element_type=jnp.float32) + b_qkv

        heads = []
        for h in range(num_heads):
            lo = h * dh
            qh = qkv[:, lo:lo + dh].reshape(TB, S, dh)
            kh = qkv[:, E + lo:E + lo + dh].reshape(TB, S, dh)
            vh = qkv[:, 2 * E + lo:2 * E + lo + dh].reshape(TB, S, dh)
            s = jnp.einsum('bqd,bkd->bqk', qh, kh,
                           preferred_element_type=jnp.float32)
            s = s - jnp.max(s, axis=-1, keepdims=True)
            e = jnp.exp(s)
            p = e * pl.reciprocal(jnp.sum(e, axis=-1, keepdims=True), approx=True)
            heads.append(jnp.einsum('bqk,bkd->bqd', p, vh,
                                    preferred_element_type=jnp.float32))
        attn = jnp.concatenate(heads, axis=-1).reshape(N, E)

        # fused output projection
        w_o = nxt()[...]          # (E, E)
        b_o = nxt()[...]          # (1, E)
        attn = jnp.dot(attn, w_o, preferred_element_type=jnp.float32) + b_o

        # post-norm encoder layer (norm_first=False).
        # TODO(synk): Dropout(0.1) treated as identity (inference mode).
        x = _layer_norm(x + attn, nxt()[...], nxt()[...])
        w1, b1 = nxt()[...], nxt()[...]
        h1 = _silu(jnp.dot(x, w1, preferred_element_type=jnp.float32) + b1)
        w2, b2 = nxt()[...], nxt()[...]
        ff = jnp.dot(h1, w2, preferred_element_type=jnp.float32) + b2
        x = _layer_norm(x + ff, nxt()[...], nxt()[...])

    # ---- mean pool over seq, final LN + SiLU + output projection ----
    pooled = jnp.mean(x.reshape(TB, S, E), axis=1)       # (TB, E)
    y = _silu(_layer_norm(pooled, nxt()[...], nxt()[...]))
    w_out, b_out = nxt()[...], nxt()[...]                # (E, C_pad), (1, C_pad)
    y = jnp.dot(y, w_out, preferred_element_type=jnp.float32) + b_out
    out_ref[...] = y.astype(out_ref.dtype)               # lane-dense (TB, C_pad)


# ----------------------------------------------------------------------------
# Wrapper
# ----------------------------------------------------------------------------
def _pick_tb(B):
    """Batch tile: large to amortize per-step overhead; >=2 grid steps (megacore)
    when the batch allows; multiple of 8 whenever it strictly tiles the batch."""
    if B >= 128:
        return 64
    if B >= 16 and B % 16 == 0:
        return B // 2
    return B


def imu_predictor_forward(x, params, num_layers, num_heads):
    B, S, F = x.shape
    C = params[-1].shape[-1]
    tb = _pick_tb(B)
    grid_b = pl.cdiv(B, tb)
    b_pad = grid_b * tb
    if b_pad != B:
        x = jnp.pad(x, ((0, b_pad - B), (0, 0), (0, 0)))
    x2 = x.reshape(b_pad * S, F)   # flat (batch*seq, F) -> dense 2-D blocks

    # Pad output-class dim to a multiple of 128 lanes (unmasked, lane-dense
    # stores); extra columns are zero and get sliced off afterwards.
    c_pad = pl.cdiv(C, 128) * 128
    params = list(params)
    if c_pad != C:
        params[-2] = jnp.pad(params[-2], ((0, 0), (0, c_pad - C)))
        params[-1] = jnp.pad(params[-1], ((0, 0), (0, c_pad - C)))

    kernel = functools.partial(_imu_kernel, num_layers, num_heads, S)
    in_specs = [pl.BlockSpec((tb * S, F), lambda b: (b, 0))]
    for p in params:
        in_specs.append(pl.BlockSpec(p.shape, lambda b, n=p.ndim: (0,) * n))

    out = pl.pallas_call(
        kernel,
        out_shape=jax.ShapeDtypeStruct((b_pad, c_pad), jnp.float32),
        grid=(grid_b,),
        in_specs=in_specs,
        out_specs=pl.BlockSpec((tb, c_pad), lambda b: (b, 0)),
        compiler_params=pltpu.CompilerParams(
            dimension_semantics=("parallel",)),
    )(x2, *params)
    return out[:B, :C]


# ----------------------------------------------------------------------------
# Parameters (synthetic, deterministic) — fused QKV / out-proj layout
# ----------------------------------------------------------------------------
def init_params(key, num_classes, feature_dim, embed_dim, num_heads, num_layers):
    dh = embed_dim // num_heads
    ff = embed_dim * 4
    scale = 1.0 / math.sqrt(dh)
    keys = iter(jax.random.split(key, 256))
    nk = lambda: next(keys)

    def w(shape, s=0.05):
        return s * jax.random.normal(nk(), shape, jnp.float32)

    ones = lambda d=embed_dim: jnp.ones((1, d), jnp.float32)
    zeros = lambda d=embed_dim: jnp.zeros((1, d), jnp.float32)

    params = [
        w((feature_dim, embed_dim)), w((1, embed_dim), 0.01),   # feature_tokenizer
        ones(), zeros(),                                        # layer_norm1
    ]
    for _ in range(num_layers):
        wq = w((embed_dim, embed_dim)) * scale   # fold 1/sqrt(dh) into Wq
        bq = w((1, embed_dim), 0.01) * scale     # ... and into bq
        wk, bk = w((embed_dim, embed_dim)), w((1, embed_dim), 0.01)
        wv, bv = w((embed_dim, embed_dim)), w((1, embed_dim), 0.01)
        params += [
            jnp.concatenate([wq, wk, wv], axis=1),              # fused Wqkv (E, 3E)
            jnp.concatenate([bq, bk, bv], axis=1),              # fused bqkv (1, 3E)
            w((embed_dim, embed_dim)), w((1, embed_dim), 0.01), # out-proj
            ones(), zeros(),                                    # encoder norm1
            w((embed_dim, ff)), w((1, ff), 0.01),               # FFN linear1
            w((ff, embed_dim)), w((1, embed_dim), 0.01),        # FFN linear2
            ones(), zeros(),                                    # encoder norm2
        ]
    params += [
        ones(), zeros(),                                        # layer_norm2
        w((embed_dim, num_classes)), w((1, num_classes), 0.01), # output_layer
    ]
    return params


# ----------------------------------------------------------------------------
# Pure-JAX reference (same math / same fused parameterization)
# ----------------------------------------------------------------------------
def _reference(x, params, num_layers, num_heads):
    it = iter(params)
    nxt = lambda: next(it)
    B, S, _ = x.shape
    w_tok, b_tok = nxt(), nxt()
    E = w_tok.shape[1]
    dh = E // num_heads
    x = jnp.einsum('bsf,fe->bse', x, w_tok) + b_tok
    x = _layer_norm(x, nxt(), nxt())
    for _ in range(num_layers):
        w_qkv, b_qkv = nxt(), nxt()
        qkv = jnp.einsum('bse,ef->bsf', x, w_qkv) + b_qkv
        q = qkv[..., :E].reshape(B, S, num_heads, dh)
        k = qkv[..., E:2 * E].reshape(B, S, num_heads, dh)
        v = qkv[..., 2 * E:].reshape(B, S, num_heads, dh)
        s = jnp.einsum('bqhd,bkhd->bhqk', q, k)
        p = jax.nn.softmax(s, axis=-1)
        o = jnp.einsum('bhqk,bkhd->bqhd', p, v).reshape(B, S, E)
        w_o, b_o = nxt(), nxt()
        attn = jnp.einsum('bse,ef->bsf', o, w_o) + b_o
        x = _layer_norm(x + attn, nxt(), nxt())
        w1, b1, w2, b2 = nxt(), nxt(), nxt(), nxt()
        h1 = _silu(jnp.einsum('bse,ef->bsf', x, w1) + b1)
        ff = jnp.einsum('bsf,fe->bse', h1, w2) + b2
        x = _layer_norm(x + ff, nxt(), nxt())
    pooled = jnp.mean(x, axis=1)
    y = _silu(_layer_norm(pooled, nxt(), nxt()))
    w_out, b_out = nxt(), nxt()
    return jnp.dot(y, w_out) + b_out


if __name__ == "__main__":
    B, S = 2, 8
    feature_dim, embed_dim, num_heads, num_layers = 2, 64, 4, 2
    num_classes = 10

    key = jax.random.PRNGKey(0)
    kx, kp = jax.random.split(key)
    x = jax.random.normal(kx, (B, S, feature_dim), jnp.float32)
    params = init_params(kp, num_classes, feature_dim, embed_dim, num_heads,
                         num_layers)

    out = imu_predictor_forward(x, params, num_layers, num_heads)
    out = jax.block_until_ready(out)

    ref = jax.block_until_ready(_reference(x, params, num_layers, num_heads))

    assert out.shape == (B, num_classes)
    assert jnp.allclose(out, ref, atol=5e-2, rtol=5e-2), float(
        jnp.max(jnp.abs(out - ref)))
    print("KERNEL_OK")
</pallas_src>

<mosaic_0001>
module attributes {stable_mosaic.version = 11 : i64} {
  func.func @_imu_kernel(%arg0: i32, %arg1: memref<16x2xf32, #tpu.memory_space<vmem>>, %arg2: memref<2x64xf32, #tpu.memory_space<vmem>>, %arg3: memref<1x64xf32, #tpu.memory_space<vmem>>, %arg4: memref<1x64xf32, #tpu.memory_space<vmem>>, %arg5: memref<1x64xf32, #tpu.memory_space<vmem>>, %arg6: memref<64x192xf32, #tpu.memory_space<vmem>>, %arg7: memref<1x192xf32, #tpu.memory_space<vmem>>, %arg8: memref<64x64xf32, #tpu.memory_space<vmem>>, %arg9: memref<1x64xf32, #tpu.memory_space<vmem>>, %arg10: memref<1x64xf32, #tpu.memory_space<vmem>>, %arg11: memref<1x64xf32, #tpu.memory_space<vmem>>, %arg12: memref<64x256xf32, #tpu.memory_space<vmem>>, %arg13: memref<1x256xf32, #tpu.memory_space<vmem>>, %arg14: memref<256x64xf32, #tpu.memory_space<vmem>>, %arg15: memref<1x64xf32, #tpu.memory_space<vmem>>, %arg16: memref<1x64xf32, #tpu.memory_space<vmem>>, %arg17: memref<1x64xf32, #tpu.memory_space<vmem>>, %arg18: memref<64x192xf32, #tpu.memory_space<vmem>>, %arg19: memref<1x192xf32, #tpu.memory_space<vmem>>, %arg20: memref<64x64xf32, #tpu.memory_space<vmem>>, %arg21: memref<1x64xf32, #tpu.memory_space<vmem>>, %arg22: memref<1x64xf32, #tpu.memory_space<vmem>>, %arg23: memref<1x64xf32, #tpu.memory_space<vmem>>, %arg24: memref<64x256xf32, #tpu.memory_space<vmem>>, %arg25: memref<1x256xf32, #tpu.memory_space<vmem>>, %arg26: memref<256x64xf32, #tpu.memory_space<vmem>>, %arg27: memref<1x64xf32, #tpu.memory_space<vmem>>, %arg28: memref<1x64xf32, #tpu.memory_space<vmem>>, %arg29: memref<1x64xf32, #tpu.memory_space<vmem>>, %arg30: memref<1x64xf32, #tpu.memory_space<vmem>>, %arg31: memref<1x64xf32, #tpu.memory_space<vmem>>, %arg32: memref<64x128xf32, #tpu.memory_space<vmem>>, %arg33: memref<1x128xf32, #tpu.memory_space<vmem>>, %arg34: memref<2x128xf32, #tpu.memory_space<vmem>>) attributes {dimension_semantics = [#tpu.dimension_semantics<parallel>], iteration_bounds = array<i64: 1>, scalar_prefetch = 0 : i64, scratch_operands = 0 : i64, tpu.core_type = #tpu.core_type<tc>, window_params = [{transform_indices = @transform_0, window_bounds = array<i64: 16, 2>}, {pipeline_mode = #tpu.pipeline_mode<synchronous>, transform_indices = @transform_1, window_bounds = array<i64: 2, 64>}, {pipeline_mode = #tpu.pipeline_mode<synchronous>, transform_indices = @transform_2, window_bounds = array<i64: 1, 64>}, {pipeline_mode = #tpu.pipeline_mode<synchronous>, transform_indices = @transform_3, window_bounds = array<i64: 1, 64>}, {pipeline_mode = #tpu.pipeline_mode<synchronous>, transform_indices = @transform_4, window_bounds = array<i64: 1, 64>}, {pipeline_mode = #tpu.pipeline_mode<synchronous>, transform_indices = @transform_5, window_bounds = array<i64: 64, 192>}, {pipeline_mode = #tpu.pipeline_mode<synchronous>, transform_indices = @transform_6, window_bounds = array<i64: 1, 192>}, {pipeline_mode = #tpu.pipeline_mode<synchronous>, transform_indices = @transform_7, window_bounds = array<i64: 64, 64>}, {pipeline_mode = #tpu.pipeline_mode<synchronous>, transform_indices = @transform_8, window_bounds = array<i64: 1, 64>}, {pipeline_mode = #tpu.pipeline_mode<synchronous>, transform_indices = @transform_9, window_bounds = array<i64: 1, 64>}, {pipeline_mode = #tpu.pipeline_mode<synchronous>, transform_indices = @transform_10, window_bounds = array<i64: 1, 64>}, {pipeline_mode = #tpu.pipeline_mode<synchronous>, transform_indices = @transform_11, window_bounds = array<i64: 64, 256>}, {pipeline_mode = #tpu.pipeline_mode<synchronous>, transform_indices = @transform_12, window_bounds = array<i64: 1, 256>}, {pipeline_mode = #tpu.pipeline_mode<synchronous>, transform_indices = @transform_13, window_bounds = array<i64: 256, 64>}, {pipeline_mode = #tpu.pipeline_mode<synchronous>, transform_indices = @transform_14, window_bounds = array<i64: 1, 64>}, {pipeline_mode = #tpu.pipeline_mode<synchronous>, transform_indices = @transform_15, window_bounds = array<i64: 1, 64>}, {pipeline_mode = #tpu.pipeline_mode<synchronous>, transform_indices = @transform_16, window_bounds = array<i64: 1, 64>}, {pipeline_mode = #tpu.pipeline_mode<synchronous>, transform_indices = @transform_17, window_bounds = array<i64: 64, 192>}, {pipeline_mode = #tpu.pipeline_mode<synchronous>, transform_indices = @transform_18, window_bounds = array<i64: 1, 192>}, {pipeline_mode = #tpu.pipeline_mode<synchronous>, transform_indices = @transform_19, window_bounds = array<i64: 64, 64>}, {pipeline_mode = #tpu.pipeline_mode<synchronous>, transform_indices = @transform_20, window_bounds = array<i64: 1, 64>}, {pipeline_mode = #tpu.pipeline_mode<synchronous>, transform_indices = @transform_21, window_bounds = array<i64: 1, 64>}, {pipeline_mode = #tpu.pipeline_mode<synchronous>, transform_indices = @transform_22, window_bounds = array<i64: 1, 64>}, {pipeline_mode = #tpu.pipeline_mode<synchronous>, transform_indices = @transform_23, window_bounds = array<i64: 64, 256>}, {pipeline_mode = #tpu.pipeline_mode<synchronous>, transform_indices = @transform_24, window_bounds = array<i64: 1, 256>}, {pipeline_mode = #tpu.pipeline_mode<synchronous>, transform_indices = @transform_25, window_bounds = array<i64: 256, 64>}, {pipeline_mode = #tpu.pipeline_mode<synchronous>, transform_indices = @transform_26, window_bounds = array<i64: 1, 64>}, {pipeline_mode = #tpu.pipeline_mode<synchronous>, transform_indices = @transform_27, window_bounds = array<i64: 1, 64>}, {pipeline_mode = #tpu.pipeline_mode<synchronous>, transform_indices = @transform_28, window_bounds = array<i64: 1, 64>}, {pipeline_mode = #tpu.pipeline_mode<synchronous>, transform_indices = @transform_29, window_bounds = array<i64: 1, 64>}, {pipeline_mode = #tpu.pipeline_mode<synchronous>, transform_indices = @transform_30, window_bounds = array<i64: 1, 64>}, {pipeline_mode = #tpu.pipeline_mode<synchronous>, transform_indices = @transform_31, window_bounds = array<i64: 64, 128>}, {pipeline_mode = #tpu.pipeline_mode<synchronous>, transform_indices = @transform_32, window_bounds = array<i64: 1, 128>}, {transform_indices = @transform_33, window_bounds = array<i64: 2, 128>}]} {
    %c0 = arith.constant 0 : index
    %c0_0 = arith.constant 0 : index
    %0 = vector.load %arg2[%c0, %c0_0] : memref<2x64xf32, #tpu.memory_space<vmem>>, vector<2x64xf32>
    %c0_1 = arith.constant 0 : index
    %c0_2 = arith.constant 0 : index
    %1 = vector.load %arg3[%c0_1, %c0_2] : memref<1x64xf32, #tpu.memory_space<vmem>>, vector<1x64xf32>
    %c0_3 = arith.constant 0 : index
    %c0_4 = arith.constant 0 : index
    %2 = vector.load %arg1[%c0_3, %c0_4] : memref<16x2xf32, #tpu.memory_space<vmem>>, vector<16x2xf32>
    %3 = vector.extract_strided_slice %2 {offsets = [0, 0], sizes = [16, 1], strides = [1, 1]} : vector<16x2xf32> to vector<16x1xf32>
    %4 = vector.extract_strided_slice %0 {offsets = [0, 0], sizes = [1, 64], strides = [1, 1]} : vector<2x64xf32> to vector<1x64xf32>
    %5 = vector.broadcast %3 : vector<16x1xf32> to vector<16x64xf32>
    %6 = vector.broadcast %4 : vector<1x64xf32> to vector<16x64xf32>
    %7 = arith.mulf %5, %6 : vector<16x64xf32>
    %8 = vector.extract_strided_slice %2 {offsets = [0, 1], sizes = [16, 1], strides = [1, 1]} : vector<16x2xf32> to vector<16x1xf32>
    %9 = vector.extract_strided_slice %0 {offsets = [1, 0], sizes = [1, 64], strides = [1, 1]} : vector<2x64xf32> to vector<1x64xf32>
    %10 = vector.broadcast %8 : vector<16x1xf32> to vector<16x64xf32>
    %11 = vector.broadcast %9 : vector<1x64xf32> to vector<16x64xf32>
    %12 = arith.mulf %10, %11 : vector<16x64xf32>
    %13 = arith.addf %7, %12 : vector<16x64xf32>
    %14 = vector.broadcast %1 : vector<1x64xf32> to vector<16x64xf32>
    %15 = arith.addf %13, %14 : vector<16x64xf32>
    %c0_5 = arith.constant 0 : index
    %c0_6 = arith.constant 0 : index
    %16 = vector.load %arg4[%c0_5, %c0_6] : memref<1x64xf32, #tpu.memory_space<vmem>>, vector<1x64xf32>
    %c0_7 = arith.constant 0 : index
    %c0_8 = arith.constant 0 : index
    %17 = vector.load %arg5[%c0_7, %c0_8] : memref<1x64xf32, #tpu.memory_space<vmem>>, vector<1x64xf32>
    %cst = arith.constant dense<0.000000e+00> : vector<16xf32>
    %18 = vector.multi_reduction <add>, %15, %cst [1] : vector<16x64xf32> to vector<16xf32>
    %19 = vector.shape_cast %18 : vector<16xf32> to vector<16x1xf32>
    %cst_9 = arith.constant 6.400000e+01 : f32
    %20 = vector.broadcast %cst_9 : f32 to vector<16x1xf32>
    %21 = arith.divf %19, %20 : vector<16x1xf32>
    %22 = vector.broadcast %21 : vector<16x1xf32> to vector<16x64xf32>
    %23 = arith.subf %15, %22 : vector<16x64xf32>
    %24 = arith.mulf %23, %23 : vector<16x64xf32>
    %cst_10 = arith.constant dense<0.000000e+00> : vector<16xf32>
    %25 = vector.multi_reduction <add>, %24, %cst_10 [1] : vector<16x64xf32> to vector<16xf32>
    %26 = vector.shape_cast %25 : vector<16xf32> to vector<16x1xf32>
    %cst_11 = arith.constant 6.400000e+01 : f32
    %27 = vector.broadcast %cst_11 : f32 to vector<16x1xf32>
    %28 = arith.divf %26, %27 : vector<16x1xf32>
    %cst_12 = arith.constant 9.99999974E-6 : f32
    %29 = vector.broadcast %cst_12 : f32 to vector<16x1xf32>
    %30 = arith.addf %28, %29 : vector<16x1xf32>
    %31 = math.rsqrt %30 : vector<16x1xf32>
    %32 = vector.broadcast %31 : vector<16x1xf32> to vector<16x64xf32>
    %33 = arith.mulf %23, %32 : vector<16x64xf32>
    %34 = vector.broadcast %16 : vector<1x64xf32> to vector<16x64xf32>
    %35 = arith.mulf %33, %34 : vector<16x64xf32>
    %36 = vector.broadcast %17 : vector<1x64xf32> to vector<16x64xf32>
    %37 = arith.addf %35, %36 : vector<16x64xf32>
    %c0_13 = arith.constant 0 : index
    %c0_14 = arith.constant 0 : index
    %38 = vector.load %arg6[%c0_13, %c0_14] : memref<64x192xf32, #tpu.memory_space<vmem>>, vector<64x192xf32>
    %c0_15 = arith.constant 0 : index
    %c0_16 = arith.constant 0 : index
    %39 = vector.load %arg7[%c0_15, %c0_16] : memref<1x192xf32, #tpu.memory_space<vmem>>, vector<1x192xf32>
    %cst_17 = arith.constant dense<0.000000e+00> : vector<16x192xf32>
    %40 = tpu.matmul %37, %38, %cst_17 {dimension_numbers = #tpu.dot_dimension_numbers<[1], [0], [0], [1], [0, 0, 1, 1], [], []>} : vector<16x64xf32>, vector<64x192xf32>, vector<16x192xf32> -> vector<16x192xf32>
    %41 = vector.broadcast %39 : vector<1x192xf32> to vector<16x192xf32>
    %42 = arith.addf %40, %41 : vector<16x192xf32>
    %43 = vector.extract_strided_slice %42 {offsets = [0, 0], sizes = [16, 16], strides = [1, 1]} : vector<16x192xf32> to vector<16x16xf32>
    %44 = vector.shape_cast %43 : vector<16x16xf32> to vector<2x8x16xf32>
    %45 = vector.extract_strided_slice %42 {offsets = [0, 64], sizes = [16, 16], strides = [1, 1]} : vector<16x192xf32> to vector<16x16xf32>
    %46 = vector.shape_cast %45 : vector<16x16xf32> to vector<2x8x16xf32>
    %47 = vector.extract_strided_slice %42 {offsets = [0, 128], sizes = [16, 16], strides = [1, 1]} : vector<16x192xf32> to vector<16x16xf32>
    %48 = vector.shape_cast %47 : vector<16x16xf32> to vector<2x8x16xf32>
    "tpu.trace_start"() <{level = 10 : i32, message = "bqd,bkd->bqk"}> : () -> ()
    %cst_18 = arith.constant dense<0.000000e+00> : vector<2x8x8xf32>
    %49 = tpu.matmul %44, %46, %cst_18 {dimension_numbers = #tpu.dot_dimension_numbers<[2], [2], [1], [1], [0, 0, 0, 1, 1, 1], [0], [0]>} : vector<2x8x16xf32>, vector<2x8x16xf32>, vector<2x8x8xf32> -> vector<2x8x8xf32>
    "tpu.trace_stop"() : () -> ()
    %cst_19 = arith.constant dense<0xFF800000> : vector<2x8xf32>
    %50 = vector.multi_reduction <maximumf>, %49, %cst_19 [2] : vector<2x8x8xf32> to vector<2x8xf32>
    %51 = vector.shape_cast %50 : vector<2x8xf32> to vector<2x8x1xf32>
    %52 = vector.broadcast %51 : vector<2x8x1xf32> to vector<2x8x8xf32>
    %53 = arith.subf %49, %52 : vector<2x8x8xf32>
    %54 = math.exp %53 : vector<2x8x8xf32>
    %cst_20 = arith.constant dense<0.000000e+00> : vector<2x8xf32>
    %55 = vector.multi_reduction <add>, %54, %cst_20 [2] : vector<2x8x8xf32> to vector<2x8xf32>
    %56 = vector.shape_cast %55 : vector<2x8xf32> to vector<2x8x1xf32>
    %57 = tpu.reciprocal %56 {approx = true} : vector<2x8x1xf32> -> vector<2x8x1xf32>
    %58 = vector.broadcast %57 : vector<2x8x1xf32> to vector<2x8x8xf32>
    %59 = arith.mulf %54, %58 : vector<2x8x8xf32>
    "tpu.trace_start"() <{level = 10 : i32, message = "bqk,bkd->bqd"}> : () -> ()
    %cst_21 = arith.constant dense<0.000000e+00> : vector<2x8x16xf32>
    %60 = tpu.matmul %59, %48, %cst_21 {dimension_numbers = #tpu.dot_dimension_numbers<[2], [1], [1], [2], [0, 0, 0, 1, 1, 2], [0], [0]>} : vector<2x8x8xf32>, vector<2x8x16xf32>, vector<2x8x16xf32> -> vector<2x8x16xf32>
    "tpu.trace_stop"() : () -> ()
    %61 = vector.extract_strided_slice %42 {offsets = [0, 16], sizes = [16, 16], strides = [1, 1]} : vector<16x192xf32> to vector<16x16xf32>
    %62 = vector.shape_cast %61 : vector<16x16xf32> to vector<2x8x16xf32>
    %63 = vector.extract_strided_slice %42 {offsets = [0, 80], sizes = [16, 16], strides = [1, 1]} : vector<16x192xf32> to vector<16x16xf32>
    %64 = vector.shape_cast %63 : vector<16x16xf32> to vector<2x8x16xf32>
    %65 = vector.extract_strided_slice %42 {offsets = [0, 144], sizes = [16, 16], strides = [1, 1]} : vector<16x192xf32> to vector<16x16xf32>
    %66 = vector.shape_cast %65 : vector<16x16xf32> to vector<2x8x16xf32>
    "tpu.trace_start"() <{level = 10 : i32, message = "bqd,bkd->bqk"}> : () -> ()
    %cst_22 = arith.constant dense<0.000000e+00> : vector<2x8x8xf32>
    %67 = tpu.matmul %62, %64, %cst_22 {dimension_numbers = #tpu.dot_dimension_numbers<[2], [2], [1], [1], [0, 0, 0, 1, 1, 1], [0], [0]>} : vector<2x8x16xf32>, vector<2x8x16xf32>, vector<2x8x8xf32> -> vector<2x8x8xf32>
    "tpu.trace_stop"() : () -> ()
    %cst_23 = arith.constant dense<0xFF800000> : vector<2x8xf32>
    %68 = vector.multi_reduction <maximumf>, %67, %cst_23 [2] : vector<2x8x8xf32> to vector<2x8xf32>
    %69 = vector.shape_cast %68 : vector<2x8xf32> to vector<2x8x1xf32>
    %70 = vector.broadcast %69 : vector<2x8x1xf32> to vector<2x8x8xf32>
    %71 = arith.subf %67, %70 : vector<2x8x8xf32>
    %72 = math.exp %71 : vector<2x8x8xf32>
    %cst_24 = arith.constant dense<0.000000e+00> : vector<2x8xf32>
    %73 = vector.multi_reduction <add>, %72, %cst_24 [2] : vector<2x8x8xf32> to vector<2x8xf32>
    %74 = vector.shape_cast %73 : vector<2x8xf32> to vector<2x8x1xf32>
    %75 = tpu.reciprocal %74 {approx = true} : vector<2x8x1xf32> -> vector<2x8x1xf32>
    %76 = vector.broadcast %75 : vector<2x8x1xf32> to vector<2x8x8xf32>
    %77 = arith.mulf %72, %76 : vector<2x8x8xf32>
    "tpu.trace_start"() <{level = 10 : i32, message = "bqk,bkd->bqd"}> : () -> ()
    %cst_25 = arith.constant dense<0.000000e+00> : vector<2x8x16xf32>
    %78 = tpu.matmul %77, %66, %cst_25 {dimension_numbers = #tpu.dot_dimension_numbers<[2], [1], [1], [2], [0, 0, 0, 1, 1, 2], [0], [0]>} : vector<2x8x8xf32>, vector<2x8x16xf32>, vector<2x8x16xf32> -> vector<2x8x16xf32>
    "tpu.trace_stop"() : () -> ()
    %79 = vector.extract_strided_slice %42 {offsets = [0, 32], sizes = [16, 16], strides = [1, 1]} : vector<16x192xf32> to vector<16x16xf32>
    %80 = vector.shape_cast %79 : vector<16x16xf32> to vector<2x8x16xf32>
    %81 = vector.extract_strided_slice %42 {offsets = [0, 96], sizes = [16, 16], strides = [1, 1]} : vector<16x192xf32> to vector<16x16xf32>
    %82 = vector.shape_cast %81 : vector<16x16xf32> to vector<2x8x16xf32>
    %83 = vector.extract_strided_slice %42 {offsets = [0, 160], sizes = [16, 16], strides = [1, 1]} : vector<16x192xf32> to vector<16x16xf32>
    %84 = vector.shape_cast %83 : vector<16x16xf32> to vector<2x8x16xf32>
    "tpu.trace_start"() <{level = 10 : i32, message = "bqd,bkd->bqk"}> : () -> ()
    %cst_26 = arith.constant dense<0.000000e+00> : vector<2x8x8xf32>
    %85 = tpu.matmul %80, %82, %cst_26 {dimension_numbers = #tpu.dot_dimension_numbers<[2], [2], [1], [1], [0, 0, 0, 1, 1, 1], [0], [0]>} : vector<2x8x16xf32>, vector<2x8x16xf32>, vector<2x8x8xf32> -> vector<2x8x8xf32>
    "tpu.trace_stop"() : () -> ()
    %cst_27 = arith.constant dense<0xFF800000> : vector<2x8xf32>
    %86 = vector.multi_reduction <maximumf>, %85, %cst_27 [2] : vector<2x8x8xf32> to vector<2x8xf32>
    %87 = vector.shape_cast %86 : vector<2x8xf32> to vector<2x8x1xf32>
    %88 = vector.broadcast %87 : vector<2x8x1xf32> to vector<2x8x8xf32>
    %89 = arith.subf %85, %88 : vector<2x8x8xf32>
    %90 = math.exp %89 : vector<2x8x8xf32>
    %cst_28 = arith.constant dense<0.000000e+00> : vector<2x8xf32>
    %91 = vector.multi_reduction <add>, %90, %cst_28 [2] : vector<2x8x8xf32> to vector<2x8xf32>
    %92 = vector.shape_cast %91 : vector<2x8xf32> to vector<2x8x1xf32>
    %93 = tpu.reciprocal %92 {approx = true} : vector<2x8x1xf32> -> vector<2x8x1xf32>
    %94 = vector.broadcast %93 : vector<2x8x1xf32> to vector<2x8x8xf32>
    %95 = arith.mulf %90, %94 : vector<2x8x8xf32>
    "tpu.trace_start"() <{level = 10 : i32, message = "bqk,bkd->bqd"}> : () -> ()
    %cst_29 = arith.constant dense<0.000000e+00> : vector<2x8x16xf32>
    %96 = tpu.matmul %95, %84, %cst_29 {dimension_numbers = #tpu.dot_dimension_numbers<[2], [1], [1], [2], [0, 0, 0, 1, 1, 2], [0], [0]>} : vector<2x8x8xf32>, vector<2x8x16xf32>, vector<2x8x16xf32> -> vector<2x8x16xf32>
    "tpu.trace_stop"() : () -> ()
    %97 = vector.extract_strided_slice %42 {offsets = [0, 48], sizes = [16, 16], strides = [1, 1]} : vector<16x192xf32> to vector<16x16xf32>
    %98 = vector.shape_cast %97 : vector<16x16xf32> to vector<2x8x16xf32>
    %99 = vector.extract_strided_slice %42 {offsets = [0, 112], sizes = [16, 16], strides = [1, 1]} : vector<16x192xf32> to vector<16x16xf32>
    %100 = vector.shape_cast %99 : vector<16x16xf32> to vector<2x8x16xf32>
    %101 = vector.extract_strided_slice %42 {offsets = [0, 176], sizes = [16, 16], strides = [1, 1]} : vector<16x192xf32> to vector<16x16xf32>
    %102 = vector.shape_cast %101 : vector<16x16xf32> to vector<2x8x16xf32>
    "tpu.trace_start"() <{level = 10 : i32, message = "bqd,bkd->bqk"}> : () -> ()
    %cst_30 = arith.constant dense<0.000000e+00> : vector<2x8x8xf32>
    %103 = tpu.matmul %98, %100, %cst_30 {dimension_numbers = #tpu.dot_dimension_numbers<[2], [2], [1], [1], [0, 0, 0, 1, 1, 1], [0], [0]>} : vector<2x8x16xf32>, vector<2x8x16xf32>, vector<2x8x8xf32> -> vector<2x8x8xf32>
    "tpu.trace_stop"() : () -> ()
    %cst_31 = arith.constant dense<0xFF800000> : vector<2x8xf32>
    %104 = vector.multi_reduction <maximumf>, %103, %cst_31 [2] : vector<2x8x8xf32> to vector<2x8xf32>
    %105 = vector.shape_cast %104 : vector<2x8xf32> to vector<2x8x1xf32>
    %106 = vector.broadcast %105 : vector<2x8x1xf32> to vector<2x8x8xf32>
    %107 = arith.subf %103, %106 : vector<2x8x8xf32>
    %108 = math.exp %107 : vector<2x8x8xf32>
    %cst_32 = arith.constant dense<0.000000e+00> : vector<2x8xf32>
    %109 = vector.multi_reduction <add>, %108, %cst_32 [2] : vector<2x8x8xf32> to vector<2x8xf32>
    %110 = vector.shape_cast %109 : vector<2x8xf32> to vector<2x8x1xf32>
    %111 = tpu.reciprocal %110 {approx = true} : vector<2x8x1xf32> -> vector<2x8x1xf32>
    %112 = vector.broadcast %111 : vector<2x8x1xf32> to vector<2x8x8xf32>
    %113 = arith.mulf %108, %112 : vector<2x8x8xf32>
    "tpu.trace_start"() <{level = 10 : i32, message = "bqk,bkd->bqd"}> : () -> ()
    %cst_33 = arith.constant dense<0.000000e+00> : vector<2x8x16xf32>
    %114 = tpu.matmul %113, %102, %cst_33 {dimension_numbers = #tpu.dot_dimension_numbers<[2], [1], [1], [2], [0, 0, 0, 1, 1, 2], [0], [0]>} : vector<2x8x8xf32>, vector<2x8x16xf32>, vector<2x8x16xf32> -> vector<2x8x16xf32>
    "tpu.trace_stop"() : () -> ()
    %115 = tpu.concatenate %60, %78, %96, %114 in 2 : vector<2x8x16xf32>, vector<2x8x16xf32>, vector<2x8x16xf32>, vector<2x8x16xf32> -> vector<2x8x64xf32>
    %116 = vector.shape_cast %115 : vector<2x8x64xf32> to vector<16x64xf32>
    %c0_34 = arith.constant 0 : index
    %c0_35 = arith.constant 0 : index
    %117 = vector.load %arg8[%c0_34, %c0_35] : memref<64x64xf32, #tpu.memory_space<vmem>>, vector<64x64xf32>
    %c0_36 = arith.constant 0 : index
    %c0_37 = arith.constant 0 : index
    %118 = vector.load %arg9[%c0_36, %c0_37] : memref<1x64xf32, #tpu.memory_space<vmem>>, vector<1x64xf32>
    %cst_38 = arith.constant dense<0.000000e+00> : vector<16x64xf32>
    %119 = tpu.matmul %116, %117, %cst_38 {dimension_numbers = #tpu.dot_dimension_numbers<[1], [0], [0], [1], [0, 0, 1, 1], [], []>} : vector<16x64xf32>, vector<64x64xf32>, vector<16x64xf32> -> vector<16x64xf32>
    %120 = vector.broadcast %118 : vector<1x64xf32> to vector<16x64xf32>
    %121 = arith.addf %119, %120 : vector<16x64xf32>
    %122 = arith.addf %37, %121 : vector<16x64xf32>
    %c0_39 = arith.constant 0 : index
    %c0_40 = arith.constant 0 : index
    %123 = vector.load %arg10[%c0_39, %c0_40] : memref<1x64xf32, #tpu.memory_space<vmem>>, vector<1x64xf32>
    %c0_41 = arith.constant 0 : index
    %c0_42 = arith.constant 0 : index
    %124 = vector.load %arg11[%c0_41, %c0_42] : memref<1x64xf32, #tpu.memory_space<vmem>>, vector<1x64xf32>
    %cst_43 = arith.constant dense<0.000000e+00> : vector<16xf32>
    %125 = vector.multi_reduction <add>, %122, %cst_43 [1] : vector<16x64xf32> to vector<16xf32>
    %126 = vector.shape_cast %125 : vector<16xf32> to vector<16x1xf32>
    %cst_44 = arith.constant 6.400000e+01 : f32
    %127 = vector.broadcast %cst_44 : f32 to vector<16x1xf32>
    %128 = arith.divf %126, %127 : vector<16x1xf32>
    %129 = vector.broadcast %128 : vector<16x1xf32> to vector<16x64xf32>
    %130 = arith.subf %122, %129 : vector<16x64xf32>
    %131 = arith.mulf %130, %130 : vector<16x64xf32>
    %cst_45 = arith.constant dense<0.000000e+00> : vector<16xf32>
    %132 = vector.multi_reduction <add>, %131, %cst_45 [1] : vector<16x64xf32> to vector<16xf32>
    %133 = vector.shape_cast %132 : vector<16xf32> to vector<16x1xf32>
    %cst_46 = arith.constant 6.400000e+01 : f32
    %134 = vector.broadcast %cst_46 : f32 to vector<16x1xf32>
    %135 = arith.divf %133, %134 : vector<16x1xf32>
    %cst_47 = arith.constant 9.99999974E-6 : f32
    %136 = vector.broadcast %cst_47 : f32 to vector<16x1xf32>
    %137 = arith.addf %135, %136 : vector<16x1xf32>
    %138 = math.rsqrt %137 : vector<16x1xf32>
    %139 = vector.broadcast %138 : vector<16x1xf32> to vector<16x64xf32>
    %140 = arith.mulf %130, %139 : vector<16x64xf32>
    %141 = vector.broadcast %123 : vector<1x64xf32> to vector<16x64xf32>
    %142 = arith.mulf %140, %141 : vector<16x64xf32>
    %143 = vector.broadcast %124 : vector<1x64xf32> to vector<16x64xf32>
    %144 = arith.addf %142, %143 : vector<16x64xf32>
    %c0_48 = arith.constant 0 : index
    %c0_49 = arith.constant 0 : index
    %145 = vector.load %arg12[%c0_48, %c0_49] : memref<64x256xf32, #tpu.memory_space<vmem>>, vector<64x256xf32>
    %c0_50 = arith.constant 0 : index
    %c0_51 = arith.constant 0 : index
    %146 = vector.load %arg13[%c0_50, %c0_51] : memref<1x256xf32, #tpu.memory_space<vmem>>, vector<1x256xf32>
    %cst_52 = arith.constant dense<0.000000e+00> : vector<16x256xf32>
    %147 = tpu.matmul %144, %145, %cst_52 {dimension_numbers = #tpu.dot_dimension_numbers<[1], [0], [0], [1], [0, 0, 1, 1], [], []>} : vector<16x64xf32>, vector<64x256xf32>, vector<16x256xf32> -> vector<16x256xf32>
    %148 = vector.broadcast %146 : vector<1x256xf32> to vector<16x256xf32>
    %149 = arith.addf %147, %148 : vector<16x256xf32>
    %cst_53 = arith.constant 0.000000e+00 : f32
    %150 = vector.broadcast %cst_53 : f32 to vector<16x256xf32>
    %151 = arith.subf %150, %149 : vector<16x256xf32>
    %152 = math.exp %151 : vector<16x256xf32>
    %cst_54 = arith.constant 1.000000e+00 : f32
    %153 = vector.broadcast %cst_54 : f32 to vector<16x256xf32>
    %154 = arith.addf %153, %152 : vector<16x256xf32>
    %cst_55 = arith.constant 1.000000e+00 : f32
    %155 = vector.broadcast %cst_55 : f32 to vector<16x256xf32>
    %156 = arith.divf %155, %154 : vector<16x256xf32>
    %157 = arith.mulf %149, %156 : vector<16x256xf32>
    %c0_56 = arith.constant 0 : index
    %c0_57 = arith.constant 0 : index
    %158 = vector.load %arg14[%c0_56, %c0_57] : memref<256x64xf32, #tpu.memory_space<vmem>>, vector<256x64xf32>
    %c0_58 = arith.constant 0 : index
    %c0_59 = arith.constant 0 : index
    %159 = vector.load %arg15[%c0_58, %c0_59] : memref<1x64xf32, #tpu.memory_space<vmem>>, vector<1x64xf32>
    %cst_60 = arith.constant dense<0.000000e+00> : vector<16x64xf32>
    %160 = tpu.matmul %157, %158, %cst_60 {dimension_numbers = #tpu.dot_dimension_numbers<[1], [0], [0], [1], [0, 0, 1, 1], [], []>} : vector<16x256xf32>, vector<256x64xf32>, vector<16x64xf32> -> vector<16x64xf32>
    %161 = vector.broadcast %159 : vector<1x64xf32> to vector<16x64xf32>
    %162 = arith.addf %160, %161 : vector<16x64xf32>
    %163 = arith.addf %144, %162 : vector<16x64xf32>
    %c0_61 = arith.constant 0 : index
    %c0_62 = arith.constant 0 : index
    %164 = vector.load %arg16[%c0_61, %c0_62] : memref<1x64xf32, #tpu.memory_space<vmem>>, vector<1x64xf32>
    %c0_63 = arith.constant 0 : index
    %c0_64 = arith.constant 0 : index
    %165 = vector.load %arg17[%c0_63, %c0_64] : memref<1x64xf32, #tpu.memory_space<vmem>>, vector<1x64xf32>
    %cst_65 = arith.constant dense<0.000000e+00> : vector<16xf32>
    %166 = vector.multi_reduction <add>, %163, %cst_65 [1] : vector<16x64xf32> to vector<16xf32>
    %167 = vector.shape_cast %166 : vector<16xf32> to vector<16x1xf32>
    %cst_66 = arith.constant 6.400000e+01 : f32
    %168 = vector.broadcast %cst_66 : f32 to vector<16x1xf32>
    %169 = arith.divf %167, %168 : vector<16x1xf32>
    %170 = vector.broadcast %169 : vector<16x1xf32> to vector<16x64xf32>
    %171 = arith.subf %163, %170 : vector<16x64xf32>
    %172 = arith.mulf %171, %171 : vector<16x64xf32>
    %cst_67 = arith.constant dense<0.000000e+00> : vector<16xf32>
    %173 = vector.multi_reduction <add>, %172, %cst_67 [1] : vector<16x64xf32> to vector<16xf32>
    %174 = vector.shape_cast %173 : vector<16xf32> to vector<16x1xf32>
    %cst_68 = arith.constant 6.400000e+01 : f32
    %175 = vector.broadcast %cst_68 : f32 to vector<16x1xf32>
    %176 = arith.divf %174, %175 : vector<16x1xf32>
    %cst_69 = arith.constant 9.99999974E-6 : f32
    %177 = vector.broadcast %cst_69 : f32 to vector<16x1xf32>
    %178 = arith.addf %176, %177 : vector<16x1xf32>
    %179 = math.rsqrt %178 : vector<16x1xf32>
    %180 = vector.broadcast %179 : vector<16x1xf32> to vector<16x64xf32>
    %181 = arith.mulf %171, %180 : vector<16x64xf32>
    %182 = vector.broadcast %164 : vector<1x64xf32> to vector<16x64xf32>
    %183 = arith.mulf %181, %182 : vector<16x64xf32>
    %184 = vector.broadcast %165 : vector<1x64xf32> to vector<16x64xf32>
    %185 = arith.addf %183, %184 : vector<16x64xf32>
    %c0_70 = arith.constant 0 : index
    %c0_71 = arith.constant 0 : index
    %186 = vector.load %arg18[%c0_70, %c0_71] : memref<64x192xf32, #tpu.memory_space<vmem>>, vector<64x192xf32>
    %c0_72 = arith.constant 0 : index
    %c0_73 = arith.constant 0 : index
    %187 = vector.load %arg19[%c0_72, %c0_73] : memref<1x192xf32, #tpu.memory_space<vmem>>, vector<1x192xf32>
    %cst_74 = arith.constant dense<0.000000e+00> : vector<16x192xf32>
    %188 = tpu.matmul %185, %186, %cst_74 {dimension_numbers = #tpu.dot_dimension_numbers<[1], [0], [0], [1], [0, 0, 1, 1], [], []>} : vector<16x64xf32>, vector<64x192xf32>, vector<16x192xf32> -> vector<16x192xf32>
    %189 = vector.broadcast %187 : vector<1x192xf32> to vector<16x192xf32>
    %190 = arith.addf %188, %189 : vector<16x192xf32>
    %191 = vector.extract_strided_slice %190 {offsets = [0, 0], sizes = [16, 16], strides = [1, 1]} : vector<16x192xf32> to vector<16x16xf32>
    %192 = vector.shape_cast %191 : vector<16x16xf32> to vector<2x8x16xf32>
    %193 = vector.extract_strided_slice %190 {offsets = [0, 64], sizes = [16, 16], strides = [1, 1]} : vector<16x192xf32> to vector<16x16xf32>
    %194 = vector.shape_cast %193 : vector<16x16xf32> to vector<2x8x16xf32>
    %195 = vector.extract_strided_slice %190 {offsets = [0, 128], sizes = [16, 16], strides = [1, 1]} : vector<16x192xf32> to vector<16x16xf32>
    %196 = vector.shape_cast %195 : vector<16x16xf32> to vector<2x8x16xf32>
    "tpu.trace_start"() <{level = 10 : i32, message = "bqd,bkd->bqk"}> : () -> ()
    %cst_75 = arith.constant dense<0.000000e+00> : vector<2x8x8xf32>
    %197 = tpu.matmul %192, %194, %cst_75 {dimension_numbers = #tpu.dot_dimension_numbers<[2], [2], [1], [1], [0, 0, 0, 1, 1, 1], [0], [0]>} : vector<2x8x16xf32>, vector<2x8x16xf32>, vector<2x8x8xf32> -> vector<2x8x8xf32>
    "tpu.trace_stop"() : () -> ()
    %cst_76 = arith.constant dense<0xFF800000> : vector<2x8xf32>
    %198 = vector.multi_reduction <maximumf>, %197, %cst_76 [2] : vector<2x8x8xf32> to vector<2x8xf32>
    %199 = vector.shape_cast %198 : vector<2x8xf32> to vector<2x8x1xf32>
    %200 = vector.broadcast %199 : vector<2x8x1xf32> to vector<2x8x8xf32>
    %201 = arith.subf %197, %200 : vector<2x8x8xf32>
    %202 = math.exp %201 : vector<2x8x8xf32>
    %cst_77 = arith.constant dense<0.000000e+00> : vector<2x8xf32>
    %203 = vector.multi_reduction <add>, %202, %cst_77 [2] : vector<2x8x8xf32> to vector<2x8xf32>
    %204 = vector.shape_cast %203 : vector<2x8xf32> to vector<2x8x1xf32>
    %205 = tpu.reciprocal %204 {approx = true} : vector<2x8x1xf32> -> vector<2x8x1xf32>
    %206 = vector.broadcast %205 : vector<2x8x1xf32> to vector<2x8x8xf32>
    %207 = arith.mulf %202, %206 : vector<2x8x8xf32>
    "tpu.trace_start"() <{level = 10 : i32, message = "bqk,bkd->bqd"}> : () -> ()
    %cst_78 = arith.constant dense<0.000000e+00> : vector<2x8x16xf32>
    %208 = tpu.matmul %207, %196, %cst_78 {dimension_numbers = #tpu.dot_dimension_numbers<[2], [1], [1], [2], [0, 0, 0, 1, 1, 2], [0], [0]>} : vector<2x8x8xf32>, vector<2x8x16xf32>, vector<2x8x16xf32> -> vector<2x8x16xf32>
    "tpu.trace_stop"() : () -> ()
    %209 = vector.extract_strided_slice %190 {offsets = [0, 16], sizes = [16, 16], strides = [1, 1]} : vector<16x192xf32> to vector<16x16xf32>
    %210 = vector.shape_cast %209 : vector<16x16xf32> to vector<2x8x16xf32>
    %211 = vector.extract_strided_slice %190 {offsets = [0, 80], sizes = [16, 16], strides = [1, 1]} : vector<16x192xf32> to vector<16x16xf32>
    %212 = vector.shape_cast %211 : vector<16x16xf32> to vector<2x8x16xf32>
    %213 = vector.extract_strided_slice %190 {offsets = [0, 144], sizes = [16, 16], strides = [1, 1]} : vector<16x192xf32> to vector<16x16xf32>
    %214 = vector.shape_cast %213 : vector<16x16xf32> to vector<2x8x16xf32>
    "tpu.trace_start"() <{level = 10 : i32, message = "bqd,bkd->bqk"}> : () -> ()
    %cst_79 = arith.constant dense<0.000000e+00> : vector<2x8x8xf32>
    %215 = tpu.matmul %210, %212, %cst_79 {dimension_numbers = #tpu.dot_dimension_numbers<[2], [2], [1], [1], [0, 0, 0, 1, 1, 1], [0], [0]>} : vector<2x8x16xf32>, vector<2x8x16xf32>, vector<2x8x8xf32> -> vector<2x8x8xf32>
    "tpu.trace_stop"() : () -> ()
    %cst_80 = arith.constant dense<0xFF800000> : vector<2x8xf32>
    %216 = vector.multi_reduction <maximumf>, %215, %cst_80 [2] : vector<2x8x8xf32> to vector<2x8xf32>
    %217 = vector.shape_cast %216 : vector<2x8xf32> to vector<2x8x1xf32>
    %218 = vector.broadcast %217 : vector<2x8x1xf32> to vector<2x8x8xf32>
    %219 = arith.subf %215, %218 : vector<2x8x8xf32>
    %220 = math.exp %219 : vector<2x8x8xf32>
    %cst_81 = arith.constant dense<0.000000e+00> : vector<2x8xf32>
    %221 = vector.multi_reduction <add>, %220, %cst_81 [2] : vector<2x8x8xf32> to vector<2x8xf32>
    %222 = vector.shape_cast %221 : vector<2x8xf32> to vector<2x8x1xf32>
    %223 = tpu.reciprocal %222 {approx = true} : vector<2x8x1xf32> -> vector<2x8x1xf32>
    %224 = vector.broadcast %223 : vector<2x8x1xf32> to vector<2x8x8xf32>
    %225 = arith.mulf %220, %224 : vector<2x8x8xf32>
    "tpu.trace_start"() <{level = 10 : i32, message = "bqk,bkd->bqd"}> : () -> ()
    %cst_82 = arith.constant dense<0.000000e+00> : vector<2x8x16xf32>
    %226 = tpu.matmul %225, %214, %cst_82 {dimension_numbers = #tpu.dot_dimension_numbers<[2], [1], [1], [2], [0, 0, 0, 1, 1, 2], [0], [0]>} : vector<2x8x8xf32>, vector<2x8x16xf32>, vector<2x8x16xf32> -> vector<2x8x16xf32>
    "tpu.trace_stop"() : () -> ()
    %227 = vector.extract_strided_slice %190 {offsets = [0, 32], sizes = [16, 16], strides = [1, 1]} : vector<16x192xf32> to vector<16x16xf32>
    %228 = vector.shape_cast %227 : vector<16x16xf32> to vector<2x8x16xf32>
    %229 = vector.extract_strided_slice %190 {offsets = [0, 96], sizes = [16, 16], strides = [1, 1]} : vector<16x192xf32> to vector<16x16xf32>
    %230 = vector.shape_cast %229 : vector<16x16xf32> to vector<2x8x16xf32>
    %231 = vector.extract_strided_slice %190 {offsets = [0, 160], sizes = [16, 16], strides = [1, 1]} : vector<16x192xf32> to vector<16x16xf32>
    %232 = vector.shape_cast %231 : vector<16x16xf32> to vector<2x8x16xf32>
    "tpu.trace_start"() <{level = 10 : i32, message = "bqd,bkd->bqk"}> : () -> ()
    %cst_83 = arith.constant dense<0.000000e+00> : vector<2x8x8xf32>
    %233 = tpu.matmul %228, %230, %cst_83 {dimension_numbers = #tpu.dot_dimension_numbers<[2], [2], [1], [1], [0, 0, 0, 1, 1, 1], [0], [0]>} : vector<2x8x16xf32>, vector<2x8x16xf32>, vector<2x8x8xf32> -> vector<2x8x8xf32>
    "tpu.trace_stop"() : () -> ()
    %cst_84 = arith.constant dense<0xFF800000> : vector<2x8xf32>
    %234 = vector.multi_reduction <maximumf>, %233, %cst_84 [2] : vector<2x8x8xf32> to vector<2x8xf32>
    %235 = vector.shape_cast %234 : vector<2x8xf32> to vector<2x8x1xf32>
    %236 = vector.broadcast %235 : vector<2x8x1xf32> to vector<2x8x8xf32>
    %237 = arith.subf %233, %236 : vector<2x8x8xf32>
    %238 = math.exp %237 : vector<2x8x8xf32>
    %cst_85 = arith.constant dense<0.000000e+00> : vector<2x8xf32>
    %239 = vector.multi_reduction <add>, %238, %cst_85 [2] : vector<2x8x8xf32> to vector<2x8xf32>
    %240 = vector.shape_cast %239 : vector<2x8xf32> to vector<2x8x1xf32>
    %241 = tpu.reciprocal %240 {approx = true} : vector<2x8x1xf32> -> vector<2x8x1xf32>
    %242 = vector.broadcast %241 : vector<2x8x1xf32> to vector<2x8x8xf32>
    %243 = arith.mulf %238, %242 : vector<2x8x8xf32>
    "tpu.trace_start"() <{level = 10 : i32, message = "bqk,bkd->bqd"}> : () -> ()
    %cst_86 = arith.constant dense<0.000000e+00> : vector<2x8x16xf32>
    %244 = tpu.matmul %243, %232, %cst_86 {dimension_numbers = #tpu.dot_dimension_numbers<[2], [1], [1], [2], [0, 0, 0, 1, 1, 2], [0], [0]>} : vector<2x8x8xf32>, vector<2x8x16xf32>, vector<2x8x16xf32> -> vector<2x8x16xf32>
    "tpu.trace_stop"() : () -> ()
    %245 = vector.extract_strided_slice %190 {offsets = [0, 48], sizes = [16, 16], strides = [1, 1]} : vector<16x192xf32> to vector<16x16xf32>
    %246 = vector.shape_cast %245 : vector<16x16xf32> to vector<2x8x16xf32>
    %247 = vector.extract_strided_slice %190 {offsets = [0, 112], sizes = [16, 16], strides = [1, 1]} : vector<16x192xf32> to vector<16x16xf32>
    %248 = vector.shape_cast %247 : vector<16x16xf32> to vector<2x8x16xf32>
    %249 = vector.extract_strided_slice %190 {offsets = [0, 176], sizes = [16, 16], strides = [1, 1]} : vector<16x192xf32> to vector<16x16xf32>
    %250 = vector.shape_cast %249 : vector<16x16xf32> to vector<2x8x16xf32>
    "tpu.trace_start"() <{level = 10 : i32, message = "bqd,bkd->bqk"}> : () -> ()
    %cst_87 = arith.constant dense<0.000000e+00> : vector<2x8x8xf32>
    %251 = tpu.matmul %246, %248, %cst_87 {dimension_numbers = #tpu.dot_dimension_numbers<[2], [2], [1], [1], [0, 0, 0, 1, 1, 1], [0], [0]>} : vector<2x8x16xf32>, vector<2x8x16xf32>, vector<2x8x8xf32> -> vector<2x8x8xf32>
    "tpu.trace_stop"() : () -> ()
    %cst_88 = arith.constant dense<0xFF800000> : vector<2x8xf32>
    %252 = vector.multi_reduction <maximumf>, %251, %cst_88 [2] : vector<2x8x8xf32> to vector<2x8xf32>
    %253 = vector.shape_cast %252 : vector<2x8xf32> to vector<2x8x1xf32>
    %254 = vector.broadcast %253 : vector<2x8x1xf32> to vector<2x8x8xf32>
    %255 = arith.subf %251, %254 : vector<2x8x8xf32>
    %256 = math.exp %255 : vector<2x8x8xf32>
    %cst_89 = arith.constant dense<0.000000e+00> : vector<2x8xf32>
    %257 = vector.multi_reduction <add>, %256, %cst_89 [2] : vector<2x8x8xf32> to vector<2x8xf32>
    %258 = vector.shape_cast %257 : vector<2x8xf32> to vector<2x8x1xf32>
    %259 = tpu.reciprocal %258 {approx = true} : vector<2x8x1xf32> -> vector<2x8x1xf32>
    %260 = vector.broadcast %259 : vector<2x8x1xf32> to vector<2x8x8xf32>
    %261 = arith.mulf %256, %260 : vector<2x8x8xf32>
    "tpu.trace_start"() <{level = 10 : i32, message = "bqk,bkd->bqd"}> : () -> ()
    %cst_90 = arith.constant dense<0.000000e+00> : vector<2x8x16xf32>
    %262 = tpu.matmul %261, %250, %cst_90 {dimension_numbers = #tpu.dot_dimension_numbers<[2], [1], [1], [2], [0, 0, 0, 1, 1, 2], [0], [0]>} : vector<2x8x8xf32>, vector<2x8x16xf32>, vector<2x8x16xf32> -> vector<2x8x16xf32>
    "tpu.trace_stop"() : () -> ()
    %263 = tpu.concatenate %208, %226, %244, %262 in 2 : vector<2x8x16xf32>, vector<2x8x16xf32>, vector<2x8x16xf32>, vector<2x8x16xf32> -> vector<2x8x64xf32>
    %264 = vector.shape_cast %263 : vector<2x8x64xf32> to vector<16x64xf32>
    %c0_91 = arith.constant 0 : index
    %c0_92 = arith.constant 0 : index
    %265 = vector.load %arg20[%c0_91, %c0_92] : memref<64x64xf32, #tpu.memory_space<vmem>>, vector<64x64xf32>
    %c0_93 = arith.constant 0 : index
    %c0_94 = arith.constant 0 : index
    %266 = vector.load %arg21[%c0_93, %c0_94] : memref<1x64xf32, #tpu.memory_space<vmem>>, vector<1x64xf32>
    %cst_95 = arith.constant dense<0.000000e+00> : vector<16x64xf32>
    %267 = tpu.matmul %264, %265, %cst_95 {dimension_numbers = #tpu.dot_dimension_numbers<[1], [0], [0], [1], [0, 0, 1, 1], [], []>} : vector<16x64xf32>, vector<64x64xf32>, vector<16x64xf32> -> vector<16x64xf32>
    %268 = vector.broadcast %266 : vector<1x64xf32> to vector<16x64xf32>
    %269 = arith.addf %267, %268 : vector<16x64xf32>
    %270 = arith.addf %185, %269 : vector<16x64xf32>
    %c0_96 = arith.constant 0 : index
    %c0_97 = arith.constant 0 : index
    %271 = vector.load %arg22[%c0_96, %c0_97] : memref<1x64xf32, #tpu.memory_space<vmem>>, vector<1x64xf32>
    %c0_98 = arith.constant 0 : index
    %c0_99 = arith.constant 0 : index
    %272 = vector.load %arg23[%c0_98, %c0_99] : memref<1x64xf32, #tpu.memory_space<vmem>>, vector<1x64xf32>
    %cst_100 = arith.constant dense<0.000000e+00> : vector<16xf32>
    %273 = vector.multi_reduction <add>, %270, %cst_100 [1] : vector<16x64xf32> to vector<16xf32>
    %274 = vector.shape_cast %273 : vector<16xf32> to vector<16x1xf32>
    %cst_101 = arith.constant 6.400000e+01 : f32
    %275 = vector.broadcast %cst_101 : f32 to vector<16x1xf32>
    %276 = arith.divf %274, %275 : vector<16x1xf32>
    %277 = vector.broadcast %276 : vector<16x1xf32> to vector<16x64xf32>
    %278 = arith.subf %270, %277 : vector<16x64xf32>
    %279 = arith.mulf %278, %278 : vector<16x64xf32>
    %cst_102 = arith.constant dense<0.000000e+00> : vector<16xf32>
    %280 = vector.multi_reduction <add>, %279, %cst_102 [1] : vector<16x64xf32> to vector<16xf32>
    %281 = vector.shape_cast %280 : vector<16xf32> to vector<16x1xf32>
    %cst_103 = arith.constant 6.400000e+01 : f32
    %282 = vector.broadcast %cst_103 : f32 to vector<16x1xf32>
    %283 = arith.divf %281, %282 : vector<16x1xf32>
    %cst_104 = arith.constant 9.99999974E-6 : f32
    %284 = vector.broadcast %cst_104 : f32 to vector<16x1xf32>
    %285 = arith.addf %283, %284 : vector<16x1xf32>
    %286 = math.rsqrt %285 : vector<16x1xf32>
    %287 = vector.broadcast %286 : vector<16x1xf32> to vector<16x64xf32>
    %288 = arith.mulf %278, %287 : vector<16x64xf32>
    %289 = vector.broadcast %271 : vector<1x64xf32> to vector<16x64xf32>
    %290 = arith.mulf %288, %289 : vector<16x64xf32>
    %291 = vector.broadcast %272 : vector<1x64xf32> to vector<16x64xf32>
    %292 = arith.addf %290, %291 : vector<16x64xf32>
    %c0_105 = arith.constant 0 : index
    %c0_106 = arith.constant 0 : index
    %293 = vector.load %arg24[%c0_105, %c0_106] : memref<64x256xf32, #tpu.memory_space<vmem>>, vector<64x256xf32>
    %c0_107 = arith.constant 0 : index
    %c0_108 = arith.constant 0 : index
    %294 = vector.load %arg25[%c0_107, %c0_108] : memref<1x256xf32, #tpu.memory_space<vmem>>, vector<1x256xf32>
    %cst_109 = arith.constant dense<0.000000e+00> : vector<16x256xf32>
    %295 = tpu.matmul %292, %293, %cst_109 {dimension_numbers = #tpu.dot_dimension_numbers<[1], [0], [0], [1], [0, 0, 1, 1], [], []>} : vector<16x64xf32>, vector<64x256xf32>, vector<16x256xf32> -> vector<16x256xf32>
    %296 = vector.broadcast %294 : vector<1x256xf32> to vector<16x256xf32>
    %297 = arith.addf %295, %296 : vector<16x256xf32>
    %cst_110 = arith.constant 0.000000e+00 : f32
    %298 = vector.broadcast %cst_110 : f32 to vector<16x256xf32>
    %299 = arith.subf %298, %297 : vector<16x256xf32>
    %300 = math.exp %299 : vector<16x256xf32>
    %cst_111 = arith.constant 1.000000e+00 : f32
    %301 = vector.broadcast %cst_111 : f32 to vector<16x256xf32>
    %302 = arith.addf %301, %300 : vector<16x256xf32>
    %cst_112 = arith.constant 1.000000e+00 : f32
    %303 = vector.broadcast %cst_112 : f32 to vector<16x256xf32>
    %304 = arith.divf %303, %302 : vector<16x256xf32>
    %305 = arith.mulf %297, %304 : vector<16x256xf32>
    %c0_113 = arith.constant 0 : index
    %c0_114 = arith.constant 0 : index
    %306 = vector.load %arg26[%c0_113, %c0_114] : memref<256x64xf32, #tpu.memory_space<vmem>>, vector<256x64xf32>
    %c0_115 = arith.constant 0 : index
    %c0_116 = arith.constant 0 : index
    %307 = vector.load %arg27[%c0_115, %c0_116] : memref<1x64xf32, #tpu.memory_space<vmem>>, vector<1x64xf32>
    %cst_117 = arith.constant dense<0.000000e+00> : vector<16x64xf32>
    %308 = tpu.matmul %305, %306, %cst_117 {dimension_numbers = #tpu.dot_dimension_numbers<[1], [0], [0], [1], [0, 0, 1, 1], [], []>} : vector<16x256xf32>, vector<256x64xf32>, vector<16x64xf32> -> vector<16x64xf32>
    %309 = vector.broadcast %307 : vector<1x64xf32> to vector<16x64xf32>
    %310 = arith.addf %308, %309 : vector<16x64xf32>
    %311 = arith.addf %292, %310 : vector<16x64xf32>
    %c0_118 = arith.constant 0 : index
    %c0_119 = arith.constant 0 : index
    %312 = vector.load %arg28[%c0_118, %c0_119] : memref<1x64xf32, #tpu.memory_space<vmem>>, vector<1x64xf32>
    %c0_120 = arith.constant 0 : index
    %c0_121 = arith.constant 0 : index
    %313 = vector.load %arg29[%c0_120, %c0_121] : memref<1x64xf32, #tpu.memory_space<vmem>>, vector<1x64xf32>
    %cst_122 = arith.constant dense<0.000000e+00> : vector<16xf32>
    %314 = vector.multi_reduction <add>, %311, %cst_122 [1] : vector<16x64xf32> to vector<16xf32>
    %315 = vector.shape_cast %314 : vector<16xf32> to vector<16x1xf32>
    %cst_123 = arith.constant 6.400000e+01 : f32
    %316 = vector.broadcast %cst_123 : f32 to vector<16x1xf32>
    %317 = arith.divf %315, %316 : vector<16x1xf32>
    %318 = vector.broadcast %317 : vector<16x1xf32> to vector<16x64xf32>
    %319 = arith.subf %311, %318 : vector<16x64xf32>
    %320 = arith.mulf %319, %319 : vector<16x64xf32>
    %cst_124 = arith.constant dense<0.000000e+00> : vector<16xf32>
    %321 = vector.multi_reduction <add>, %320, %cst_124 [1] : vector<16x64xf32> to vector<16xf32>
    %322 = vector.shape_cast %321 : vector<16xf32> to vector<16x1xf32>
    %cst_125 = arith.constant 6.400000e+01 : f32
    %323 = vector.broadcast %cst_125 : f32 to vector<16x1xf32>
    %324 = arith.divf %322, %323 : vector<16x1xf32>
    %cst_126 = arith.constant 9.99999974E-6 : f32
    %325 = vector.broadcast %cst_126 : f32 to vector<16x1xf32>
    %326 = arith.addf %324, %325 : vector<16x1xf32>
    %327 = math.rsqrt %326 : vector<16x1xf32>
    %328 = vector.broadcast %327 : vector<16x1xf32> to vector<16x64xf32>
    %329 = arith.mulf %319, %328 : vector<16x64xf32>
    %330 = vector.broadcast %312 : vector<1x64xf32> to vector<16x64xf32>
    %331 = arith.mulf %329, %330 : vector<16x64xf32>
    %332 = vector.broadcast %313 : vector<1x64xf32> to vector<16x64xf32>
    %333 = arith.addf %331, %332 : vector<16x64xf32>
    %334 = vector.shape_cast %333 : vector<16x64xf32> to vector<2x8x64xf32>
    %cst_127 = arith.constant dense<0.000000e+00> : vector<2x64xf32>
    %335 = vector.multi_reduction <add>, %334, %cst_127 [1] : vector<2x8x64xf32> to vector<2x64xf32>
    %cst_128 = arith.constant 8.000000e+00 : f32
    %336 = vector.broadcast %cst_128 : f32 to vector<2x64xf32>
    %337 = arith.divf %335, %336 : vector<2x64xf32>
    %c0_129 = arith.constant 0 : index
    %c0_130 = arith.constant 0 : index
    %338 = vector.load %arg30[%c0_129, %c0_130] : memref<1x64xf32, #tpu.memory_space<vmem>>, vector<1x64xf32>
    %c0_131 = arith.constant 0 : index
    %c0_132 = arith.constant 0 : index
    %339 = vector.load %arg31[%c0_131, %c0_132] : memref<1x64xf32, #tpu.memory_space<vmem>>, vector<1x64xf32>
    %cst_133 = arith.constant dense<0.000000e+00> : vector<2xf32>
    %340 = vector.multi_reduction <add>, %337, %cst_133 [1] : vector<2x64xf32> to vector<2xf32>
    %341 = vector.shape_cast %340 : vector<2xf32> to vector<2x1xf32>
    %cst_134 = arith.constant 6.400000e+01 : f32
    %342 = vector.broadcast %cst_134 : f32 to vector<2x1xf32>
    %343 = arith.divf %341, %342 : vector<2x1xf32>
    %344 = vector.broadcast %343 : vector<2x1xf32> to vector<2x64xf32>
    %345 = arith.subf %337, %344 : vector<2x64xf32>
    %346 = arith.mulf %345, %345 : vector<2x64xf32>
    %cst_135 = arith.constant dense<0.000000e+00> : vector<2xf32>
    %347 = vector.multi_reduction <add>, %346, %cst_135 [1] : vector<2x64xf32> to vector<2xf32>
    %348 = vector.shape_cast %347 : vector<2xf32> to vector<2x1xf32>
    %cst_136 = arith.constant 6.400000e+01 : f32
    %349 = vector.broadcast %cst_136 : f32 to vector<2x1xf32>
    %350 = arith.divf %348, %349 : vector<2x1xf32>
    %cst_137 = arith.constant 9.99999974E-6 : f32
    %351 = vector.broadcast %cst_137 : f32 to vector<2x1xf32>
    %352 = arith.addf %350, %351 : vector<2x1xf32>
    %353 = math.rsqrt %352 : vector<2x1xf32>
    %354 = vector.broadcast %353 : vector<2x1xf32> to vector<2x64xf32>
    %355 = arith.mulf %345, %354 : vector<2x64xf32>
    %356 = vector.broadcast %338 : vector<1x64xf32> to vector<2x64xf32>
    %357 = arith.mulf %355, %356 : vector<2x64xf32>
    %358 = vector.broadcast %339 : vector<1x64xf32> to vector<2x64xf32>
    %359 = arith.addf %357, %358 : vector<2x64xf32>
    %cst_138 = arith.constant 0.000000e+00 : f32
    %360 = vector.broadcast %cst_138 : f32 to vector<2x64xf32>
    %361 = arith.subf %360, %359 : vector<2x64xf32>
    %362 = math.exp %361 : vector<2x64xf32>
    %cst_139 = arith.constant 1.000000e+00 : f32
    %363 = vector.broadcast %cst_139 : f32 to vector<2x64xf32>
    %364 = arith.addf %363, %362 : vector<2x64xf32>
    %cst_140 = arith.constant 1.000000e+00 : f32
    %365 = vector.broadcast %cst_140 : f32 to vector<2x64xf32>
    %366 = arith.divf %365, %364 : vector<2x64xf32>
    %367 = arith.mulf %359, %366 : vector<2x64xf32>
    %c0_141 = arith.constant 0 : index
    %c0_142 = arith.constant 0 : index
    %368 = vector.load %arg32[%c0_141, %c0_142] : memref<64x128xf32, #tpu.memory_space<vmem>>, vector<64x128xf32>
    %c0_143 = arith.constant 0 : index
    %c0_144 = arith.constant 0 : index
    %369 = vector.load %arg33[%c0_143, %c0_144] : memref<1x128xf32, #tpu.memory_space<vmem>>, vector<1x128xf32>
    %cst_145 = arith.constant dense<0.000000e+00> : vector<2x128xf32>
    %370 = tpu.matmul %367, %368, %cst_145 {dimension_numbers = #tpu.dot_dimension_numbers<[1], [0], [0], [1], [0, 0, 1, 1], [], []>} : vector<2x64xf32>, vector<64x128xf32>, vector<2x128xf32> -> vector<2x128xf32>
    %371 = vector.broadcast %369 : vector<1x128xf32> to vector<2x128xf32>
    %372 = arith.addf %370, %371 : vector<2x128xf32>
    %c0_146 = arith.constant 0 : index
    %c0_147 = arith.constant 0 : index
    %373 = vector.load %arg34[%c0_146, %c0_147] : memref<2x128xf32, #tpu.memory_space<vmem>>, vector<2x128xf32>
    tpu.vector_store %arg34[%c0_146, %c0_147], %372 {strides = array<i32>} : memref<2x128xf32, #tpu.memory_space<vmem>>, vector<2x128xf32>,
    return
  }
  func.func @transform_0(%arg0: i32) -> (i32, i32) {
    %c0_i32 = arith.constant 0 : i32
    %c0_i32_0 = arith.constant 0 : i32
    return %arg0, %c0_i32 : i32, i32
  }
  func.func @transform_1(%arg0: i32) -> (i32, i32) {
    %c0_i32 = arith.constant 0 : i32
    %c0_i32_0 = arith.constant 0 : i32
    %c0_i32_1 = arith.constant 0 : i32
    return %c0_i32, %c0_i32_0 : i32, i32
  }
  func.func @transform_2(%arg0: i32) -> (i32, i32) {
    %c0_i32 = arith.constant 0 : i32
    %c0_i32_0 = arith.constant 0 : i32
    %c0_i32_1 = arith.constant 0 : i32
    return %c0_i32, %c0_i32_0 : i32, i32
  }
  func.func @transform_3(%arg0: i32) -> (i32, i32) {
    %c0_i32 = arith.constant 0 : i32
    %c0_i32_0 = arith.constant 0 : i32
    %c0_i32_1 = arith.constant 0 : i32
    return %c0_i32, %c0_i32_0 : i32, i32
  }
  func.func @transform_4(%arg0: i32) -> (i32, i32) {
    %c0_i32 = arith.constant 0 : i32
    %c0_i32_0 = arith.constant 0 : i32
    %c0_i32_1 = arith.constant 0 : i32
    return %c0_i32, %c0_i32_0 : i32, i32
  }
  func.func @transform_5(%arg0: i32) -> (i32, i32) {
    %c0_i32 = arith.constant 0 : i32
    %c0_i32_0 = arith.constant 0 : i32
    %c0_i32_1 = arith.constant 0 : i32
    return %c0_i32, %c0_i32_0 : i32, i32
  }
  func.func @transform_6(%arg0: i32) -> (i32, i32) {
    %c0_i32 = arith.constant 0 : i32
    %c0_i32_0 = arith.constant 0 : i32
    %c0_i32_1 = arith.constant 0 : i32
    return %c0_i32, %c0_i32_0 : i32, i32
  }
  func.func @transform_7(%arg0: i32) -> (i32, i32) {
    %c0_i32 = arith.constant 0 : i32
    %c0_i32_0 = arith.constant 0 : i32
    %c0_i32_1 = arith.constant 0 : i32
    return %c0_i32, %c0_i32_0 : i32, i32
  }
  func.func @transform_8(%arg0: i32) -> (i32, i32) {
    %c0_i32 = arith.constant 0 : i32
    %c0_i32_0 = arith.constant 0 : i32
    %c0_i32_1 = arith.constant 0 : i32
    return %c0_i32, %c0_i32_0 : i32, i32
  }
  func.func @transform_9(%arg0: i32) -> (i32, i32) {
    %c0_i32 = arith.constant 0 : i32
    %c0_i32_0 = arith.constant 0 : i32
    %c0_i32_1 = arith.constant 0 : i32
    return %c0_i32, %c0_i32_0 : i32, i32
  }
  func.func @transform_10(%arg0: i32) -> (i32, i32) {
    %c0_i32 = arith.constant 0 : i32
    %c0_i32_0 = arith.constant 0 : i32
    %c0_i32_1 = arith.constant 0 : i32
    return %c0_i32, %c0_i32_0 : i32, i32
  }
  func.func @transform_11(%arg0: i32) -> (i32, i32) {
    %c0_i32 = arith.constant 0 : i32
    %c0_i32_0 = arith.constant 0 : i32
    %c0_i32_1 = arith.constant 0 : i32
    return %c0_i32, %c0_i32_0 : i32, i32
  }
  func.func @transform_12(%arg0: i32) -> (i32, i32) {
    %c0_i32 = arith.constant 0 : i32
    %c0_i32_0 = arith.constant 0 : i32
    %c0_i32_1 = arith.constant 0 : i32
    return %c0_i32, %c0_i32_0 : i32, i32
  }
  func.func @transform_13(%arg0: i32) -> (i32, i32) {
    %c0_i32 = arith.constant 0 : i32
    %c0_i32_0 = arith.constant 0 : i32
    %c0_i32_1 = arith.constant 0 : i32
    return %c0_i32, %c0_i32_0 : i32, i32
  }
  func.func @transform_14(%arg0: i32) -> (i32, i32) {
    %c0_i32 = arith.constant 0 : i32
    %c0_i32_0 = arith.constant 0 : i32
    %c0_i32_1 = arith.constant 0 : i32
    return %c0_i32, %c0_i32_0 : i32, i32
  }
  func.func @transform_15(%arg0: i32) -> (i32, i32) {
    %c0_i32 = arith.constant 0 : i32
    %c0_i32_0 = arith.constant 0 : i32
    %c0_i32_1 = arith.constant 0 : i32
    return %c0_i32, %c0_i32_0 : i32, i32
  }
  func.func @transform_16(%arg0: i32) -> (i32, i32) {
    %c0_i32 = arith.constant 0 : i32
    %c0_i32_0 = arith.constant 0 : i32
    %c0_i32_1 = arith.constant 0 : i32
    return %c0_i32, %c0_i32_0 : i32, i32
  }
  func.func @transform_17(%arg0: i32) -> (i32, i32) {
    %c0_i32 = arith.constant 0 : i32
    %c0_i32_0 = arith.constant 0 : i32
    %c0_i32_1 = arith.constant 0 : i32
    return %c0_i32, %c0_i32_0 : i32, i32
  }
  func.func @transform_18(%arg0: i32) -> (i32, i32) {
    %c0_i32 = arith.constant 0 : i32
    %c0_i32_0 = arith.constant 0 : i32
    %c0_i32_1 = arith.constant 0 : i32
    return %c0_i32, %c0_i32_0 : i32, i32
  }
  func.func @transform_19(%arg0: i32) -> (i32, i32) {
    %c0_i32 = arith.constant 0 : i32
    %c0_i32_0 = arith.constant 0 : i32
    %c0_i32_1 = arith.constant 0 : i32
    return %c0_i32, %c0_i32_0 : i32, i32
  }
  func.func @transform_20(%arg0: i32) -> (i32, i32) {
    %c0_i32 = arith.constant 0 : i32
    %c0_i32_0 = arith.constant 0 : i32
    %c0_i32_1 = arith.constant 0 : i32
    return %c0_i32, %c0_i32_0 : i32, i32
  }
  func.func @transform_21(%arg0: i32) -> (i32, i32) {
    %c0_i32 = arith.constant 0 : i32
    %c0_i32_0 = arith.constant 0 : i32
    %c0_i32_1 = arith.constant 0 : i32
    return %c0_i32, %c0_i32_0 : i32, i32
  }
  func.func @transform_22(%arg0: i32) -> (i32, i32) {
    %c0_i32 = arith.constant 0 : i32
    %c0_i32_0 = arith.constant 0 : i32
    %c0_i32_1 = arith.constant 0 : i32
    return %c0_i32, %c0_i32_0 : i32, i32
  }
  func.func @transform_23(%arg0: i32) -> (i32, i32) {
    %c0_i32 = arith.constant 0 : i32
    %c0_i32_0 = arith.constant 0 : i32
    %c0_i32_1 = arith.constant 0 : i32
    return %c0_i32, %c0_i32_0 : i32, i32
  }
  func.func @transform_24(%arg0: i32) -> (i32, i32) {
    %c0_i32 = arith.constant 0 : i32
    %c0_i32_0 = arith.constant 0 : i32
    %c0_i32_1 = arith.constant 0 : i32
    return %c0_i32, %c0_i32_0 : i32, i32
  }
  func.func @transform_25(%arg0: i32) -> (i32, i32) {
    %c0_i32 = arith.constant 0 : i32
    %c0_i32_0 = arith.constant 0 : i32
    %c0_i32_1 = arith.constant 0 : i32
    return %c0_i32, %c0_i32_0 : i32, i32
  }
  func.func @transform_26(%arg0: i32) -> (i32, i32) {
    %c0_i32 = arith.constant 0 : i32
    %c0_i32_0 = arith.constant 0 : i32
    %c0_i32_1 = arith.constant 0 : i32
    return %c0_i32, %c0_i32_0 : i32, i32
  }
  func.func @transform_27(%arg0: i32) -> (i32, i32) {
    %c0_i32 = arith.constant 0 : i32
    %c0_i32_0 = arith.constant 0 : i32
    %c0_i32_1 = arith.constant 0 : i32
    return %c0_i32, %c0_i32_0 : i32, i32
  }
  func.func @transform_28(%arg0: i32) -> (i32, i32) {
    %c0_i32 = arith.constant 0 : i32
    %c0_i32_0 = arith.constant 0 : i32
    %c0_i32_1 = arith.constant 0 : i32
    return %c0_i32, %c0_i32_0 : i32, i32
  }
  func.func @transform_29(%arg0: i32) -> (i32, i32) {
    %c0_i32 = arith.constant 0 : i32
    %c0_i32_0 = arith.constant 0 : i32
    %c0_i32_1 = arith.constant 0 : i32
    return %c0_i32, %c0_i32_0 : i32, i32
  }
  func.func @transform_30(%arg0: i32) -> (i32, i32) {
    %c0_i32 = arith.constant 0 : i32
    %c0_i32_0 = arith.constant 0 : i32
    %c0_i32_1 = arith.constant 0 : i32
    return %c0_i32, %c0_i32_0 : i32, i32
  }
  func.func @transform_31(%arg0: i32) -> (i32, i32) {
    %c0_i32 = arith.constant 0 : i32
    %c0_i32_0 = arith.constant 0 : i32
    %c0_i32_1 = arith.constant 0 : i32
    return %c0_i32, %c0_i32_0 : i32, i32
  }
  func.func @transform_32(%arg0: i32) -> (i32, i32) {
    %c0_i32 = arith.constant 0 : i32
    %c0_i32_0 = arith.constant 0 : i32
    %c0_i32_1 = arith.constant 0 : i32
    return %c0_i32, %c0_i32_0 : i32, i32
  }
  func.func @transform_33(%arg0: i32) -> (i32, i32) {
    %c0_i32 = arith.constant 0 : i32
    %c0_i32_0 = arith.constant 0 : i32
    return %arg0, %c0_i32 : i32, i32
  }
}

</mosaic_0001>

<bundles_post_ra>
// kernel: tpu_custom_call.1
= control target key start
LH: loop header
LB: loop body
LE: loop exit
PB: predicated region body
PF: predicated region fallthrough
CT: control target
= control target key end

     0   :  { %s5558_s6 = smov 1   ;;  %s5559_s10 = smov 2   ;;  %s6409_s0 = inlined_call_operand.smem [shape: u32[34], index: -1, kind: input, shape index: {}] }
   0x1   :  { %s5630_s5 = sld [smem:[%s6409_s0]]   ;;  %s5560_s14 = smov 3  }
   0x2   :  { %s5635_s9 = sld [smem:[%s6409_s0 + %s5558_s6]]   ;;  %s5561_s18 = smov 4  }
   0x3   :  { %s5640_s13 = sld [smem:[%s6409_s0 + %s5559_s10]]   ;;  %s5562_s22 = smov 5  }
   0x4   :  { %s5645_s17 = sld [smem:[%s6409_s0 + %s5560_s14]]   ;;  %s5563_s26 = smov 6  }
   0x5   :  { %s5650_s21 = sld [smem:[%s6409_s0 + %s5561_s18]]   ;;  %s5564_s30 = smov 7  }
   0x6   :  { %s5655_s25 = sld [smem:[%s6409_s0 + %s5562_s22]]   ;;  %s5565_s4 = smov 8  }
   0x7   :  { %6419 = sst [smem:[#allocation44_spill]] %s5630_s5  ;;  %s5566_s10 = smov 9  }
   0x8   :  { %6420 = sst [smem:[#allocation45_spill]] %s5635_s9  ;;  %s5567_s15 = smov 10  }
   0x9   :  { %s5660_s29 = sld [smem:[%s6409_s0 + %s5563_s26]]   ;;  %s5568_s20 = smov 11  }
   0xa   :  { %s5665_s3 = sld [smem:[%s6409_s0 + %s5564_s30]]   ;;  %s5569_s26 = smov 12  }
   0xb   :  { %s5670_s8 = sld [smem:[%s6409_s0 + %s5565_s4]]   ;;  %s5570_s1 = smov 13  }
   0xc   :  { %6421 = sst [smem:[#allocation46_spill]] %s5655_s25  ;;  %s5571_s7 = smov 14  }
   0xd   :  { %s5675_s14 = sld [smem:[%s6409_s0 + %s5566_s10]]   ;;  %s5573_s22 = smov 16  }
   0xe   :  { %s5680_s19 = sld [smem:[%s6409_s0 + %s5567_s15]]   ;;  %s5572_s15 = smov 15  }
   0xf   :  { %6422 = sst [smem:[#allocation47_spill]] %s5660_s29  ;;  %s5574_s28 = smov 17  }
  0x10   :  { %6423 = sst [smem:[#allocation48_spill]] %s5665_s3 }
  0x11   :  { %s5685_s24 = sld [smem:[%s6409_s0 + %s5568_s20]]  }
  0x12   :  { %s5690_s30 = sld [smem:[%s6409_s0 + %s5569_s26]]  }
  0x13   :  { %s5695_s6 = sld [smem:[%s6409_s0 + %s5570_s1]]  }
  0x14   :  { %s5700_s12 = sld [smem:[%s6409_s0 + %s5571_s7]]   ;;  %s5575_s7 = smov 18  }
  0x15   :  { %s5705_s20 = sld [smem:[%s6409_s0 + %s5572_s15]]   ;;  %s5576_s15 = smov 19  }
  0x16   :  { %s5710_s27 = sld [smem:[%s6409_s0 + %s5573_s22]]   ;;  %s5577_s22 = smov 20  }
  0x17   :  { %6424 = sst [smem:[#allocation49_spill]] %s5685_s24 }
  0x18   :  { %6425 = sst [smem:[#allocation50_spill]] %s5690_s30 }
  0x19   :  { %6426 = sst [smem:[#allocation51_spill]] %s5695_s6 }
  0x1a   :  { %s5715_s4 = sld [smem:[%s6409_s0 + %s5574_s28]]   ;;  %s5578_s28 = smov 21  }
  0x1b   :  { %s5720_s30 = sld [smem:[%s6409_s0 + %s5575_s7]]   ;;  %s5579_s7 = smov 22  }
  0x1c   :  { %s5725_s6 = sld [smem:[%s6409_s0 + %s5576_s15]]   ;;  %s5580_s15 = smov 23  }
  0x1d   :  { %s5730_s24 = sld [smem:[%s6409_s0 + %s5577_s22]]   ;;  %s5581_s22 = smov 24  }
  0x1e   :  { %s5750_s3 = sld [smem:[%s6409_s0 + %s5581_s22]]   ;;  %s5585_s22 = smov 28  }
  0x1f   :  { %s5770_s9 = sld [smem:[%s6409_s0 + %s5585_s22]]   ;;  %s5589_s22 = smov 32  }
  0x20   :  { %6427 = sst [smem:[#allocation52_spill]] %s5715_s4 }
  0x21   :  { %6428 = sst [smem:[#allocation53_spill]] %s5720_s30 }
  0x22   :  { %6429 = sst [smem:[#allocation54_spill]] %s5725_s6 }
  0x23   :  { %s5735_s4 = sld [smem:[%s6409_s0 + %s5578_s28]]   ;;  %s5582_s28 = smov 25  }
  0x24   :  { %s5740_s30 = sld [smem:[%s6409_s0 + %s5579_s7]]   ;;  %s5583_s7 = smov 26  }
  0x25   :  { %s5745_s6 = sld [smem:[%s6409_s0 + %s5580_s15]]   ;;  %s5584_s15 = smov 27  }
  0x26   :  { %6431 = sst [smem:[#allocation56_spill]] %s5750_s3 }
  0x27   :  { %s5755_s29 = sld [smem:[%s6409_s0 + %s5582_s28]]   ;;  %s5586_s28 = smov 29  }
  0x28   :  { %s5760_s25 = sld [smem:[%s6409_s0 + %s5583_s7]]   ;;  %s5587_s7 = smov 30  }
  0x29   :  { %s5780_s5 = sld [smem:[%s6409_s0 + %s5587_s7]]  }
  0x2a   :  { %s5790_s3 = sld [smem:[%s6409_s0 + %s5589_s22]]  }
  0x2b   :  { %6430 = sst [smem:[#allocation55_spill]] %s5745_s6 }
  0x2c   :  { %s5765_s6 = sld [smem:[%s6409_s0 + %s5584_s15]]   ;;  %s5588_s15 = smov 31  }
  0x2d   :  { %6432 = sst [smem:[#allocation57_spill]] %s5755_s29 }
  0x2e   :  { %s5775_s29 = sld [smem:[%s6409_s0 + %s5586_s28]]   ;;  %s5590_s28 = smov 33  }
  0x32   :  { %6433 = sst [smem:[#allocation58_spill]] %s5765_s6 }
  0x33   :  { %s5785_s6 = sld [smem:[%s6409_s0 + %s5588_s15]]  }
  0x34   :  { %6434 = sst [smem:[#allocation59_spill]] %s5775_s29 }
  0x35   :  { %s5795_s29 = sld [smem:[%s6409_s0 + %s5590_s28]]  }
  0x36   :  { %72 = vsyncpa [#allocation3], 0 }
  0x37   :  { %73 = vsyncpa [#allocation6], 0 }
  0x38   :  { %74 = vsyncpa [#allocation9], 0 }
  0x39   :  { %75 = vsyncpa [#allocation12], 0 }
  0x3a   :  { %76 = vsyncpa [#allocation15], 0 }
  0x3b   :  { %77 = vsyncpa [#allocation18], 0 }
  0x3c   :  { %78 = vsyncpa [#allocation21], 0 }
  0x3d   :  { %79 = vsyncpa [#allocation24], 0 }
  0x3e   :  { %80 = vsyncpa [#allocation27], 0 }
  0x3f   :  { %81 = vsyncpa [#allocation30], 0 }
  0x40   :  { %82 = vsyncpa [#allocation4], 0  ;;  %s5591_s7 = smov [#allocation5]   ;;  %s5592_s11 = smov [#allocation8]  }
  0x41   :  { %s103_s10 = sshll.u32 %s5591_s7, 4  ;;  %s129_s15 = sshll.u32 %s5592_s11, 4  ;;  %s104_s10 = int_to_ptr.vmem [resolvable:$true] %s103_s10  ;;  %s130_s15 = int_to_ptr.vmem [resolvable:$true] %s129_s15 }
  0x42   :  { %s5144_s16 = scalar_lea.vmem %s104_s10, 16  ;;  %s5148_s0 = scalar_lea.vmem %s104_s10, 32 }
  0x43   :  { %p5145_p0 = scmp.ne.s32.totalorder %s104_s10, %s5144_s16  ;;  %p5149_p1 = scmp.lt.s32.totalorder %s104_s10, %s104_s10 }
  0x44   :  { %p5150_p2 = scmp.lt.s32.totalorder %s5148_s0, %s5144_s16 }
  0x46   :  { %p5151_p3 = por %p5150_p2, %p5149_p1 }
  0x48   :  { %p5152_p4 = pnand %p5151_p3, %p5145_p0 }
  0x4a   :  { %5155 = shalt.err (!%p5152_p4)
}
  0x4b   :  { %106 = dma.hbm_to_vmem [thread:$0]  %s5645_s17, 16, %s104_s10, [#allocation6]  }
  0x4c   :  { %s5164_s18 = scalar_lea.vmem %s130_s15, 16  ;;  %s5168_s22 = scalar_lea.vmem %s130_s15, 32 }
  0x4d   :  { %p5165_p5 = scmp.ne.s32.totalorder %s130_s15, %s5164_s18  ;;  %p5169_p6 = scmp.lt.s32.totalorder %s130_s15, %s130_s15 }
  0x4e   :  { %p5170_p7 = scmp.lt.s32.totalorder %s5168_s22, %s5164_s18 }
  0x50   :  { %p5171_p8 = por %p5170_p7, %p5169_p6 }
  0x52   :  { %p5172_p9 = pnand %p5171_p8, %p5165_p5 }
  0x54   :  { %5175 = shalt.err (!%p5172_p9)
}
  0x55   :  { %132 = dma.hbm_to_vmem [thread:$0]  %s5670_s8, 16, %s130_s15, [#allocation9]  }
  0x56   :  { %s5593_s23 = smov [#allocation11]   ;;  %s5594_s28 = smov [#allocation14]  }
  0x57   :  { %s149_s26 = sshll.u32 %s5593_s23, 4  ;;  %s175_s1 = sshll.u32 %s5594_s28, 4  ;;  %s150_s26 = int_to_ptr.vmem [resolvable:$true] %s149_s26  ;;  %s176_s1 = int_to_ptr.vmem [resolvable:$true] %s175_s1 }
  0x58   :  { %s5184_s2 = scalar_lea.vmem %s150_s26, 16  ;;  %s5188_s7 = scalar_lea.vmem %s150_s26, 32 }
  0x59   :  { %p5185_p10 = scmp.ne.s32.totalorder %s150_s26, %s5184_s2  ;;  %p5189_p11 = scmp.lt.s32.totalorder %s150_s26, %s150_s26 }
  0x5a   :  { %p5190_p12 = scmp.lt.s32.totalorder %s5188_s7, %s5184_s2 }
  0x5c   :  { %p5191_p13 = por %p5190_p12, %p5189_p11 }
  0x5e   :  { %p5192_p0 = pnand %p5191_p13, %p5185_p10 }
  0x60   :  { %5195 = shalt.err (!%p5192_p0)
}
  0x61   :  { %152 = dma.hbm_to_vmem [thread:$0]  %s5680_s19, 16, %s150_s26, [#allocation12]  }
  0x62   :  { %s5204_s17 = scalar_lea.vmem %s176_s1, 16  ;;  %s5208_s10 = scalar_lea.vmem %s176_s1, 32 }
  0x63   :  { %p5205_p1 = scmp.ne.s32.totalorder %s176_s1, %s5204_s17  ;;  %p5209_p2 = scmp.lt.s32.totalorder %s176_s1, %s176_s1 }
  0x64   :  { %p5210_p3 = scmp.lt.s32.totalorder %s5208_s10, %s5204_s17 }
  0x66   :  { %p5211_p4 = por %p5210_p3, %p5209_p2 }
  0x68   :  { %p5212_p5 = pnand %p5211_p4, %p5205_p1 }
  0x6a   :  { %5215 = shalt.err (!%p5212_p5)
}
  0x6b   :  { %178 = dma.hbm_to_vmem [thread:$0]  %s5705_s20, 16, %s176_s1, [#allocation15]  }
  0x6c   :  { %s5595_s8 = smov [#allocation17]   ;;  %s5596_s15 = smov [#allocation20]  }
  0x6d   :  { %s201_s11 = sshll.u32 %s5595_s8, 4  ;;  %s221_s16 = sshll.u32 %s5596_s15, 4  ;;  %s202_s11 = int_to_ptr.vmem [resolvable:$true] %s201_s11  ;;  %s222_s16 = int_to_ptr.vmem [resolvable:$true] %s221_s16 }
  0x6e   :  { %s5224_s0 = scalar_lea.vmem %s202_s11, 16  ;;  %s5228_s18 = scalar_lea.vmem %s202_s11, 32 }
  0x6f   :  { %p5225_p6 = scmp.ne.s32.totalorder %s202_s11, %s5224_s0  ;;  %p5229_p7 = scmp.lt.s32.totalorder %s202_s11, %s202_s11 }
  0x70   :  { %p5230_p8 = scmp.lt.s32.totalorder %s5228_s18, %s5224_s0 }
  0x72   :  { %p5231_p9 = por %p5230_p8, %p5229_p7 }
  0x74   :  { %p5232_p10 = pnand %p5231_p9, %p5225_p6 }
  0x76   :  { %5235 = shalt.err (!%p5232_p10)
}
  0x77   :  { %204 = dma.hbm_to_vmem [thread:$0]  %s5730_s24, 16, %s202_s11, [#allocation18]  }
  0x78   :  { %s5244_s19 = scalar_lea.vmem %s222_s16, 16  ;;  %s5248_s22 = scalar_lea.vmem %s222_s16, 32 }
  0x79   :  { %p5245_p11 = scmp.ne.s32.totalorder %s222_s16, %s5244_s19  ;;  %p5249_p12 = scmp.lt.s32.totalorder %s222_s16, %s222_s16 }
  0x7a   :  { %p5250_p13 = scmp.lt.s32.totalorder %s5248_s22, %s5244_s19 }
  0x7c   :  { %p5251_p0 = por %p5250_p13, %p5249_p12 }
  0x7e   :  { %p5252_p1 = pnand %p5251_p0, %p5245_p11 }
  0x80   :  { %5255 = shalt.err (!%p5252_p1)
}
  0x81   :  { %224 = dma.hbm_to_vmem [thread:$0]  %s5740_s30, 16, %s222_s16, [#allocation21]  }
  0x82   :  { %s5597_s20 = smov [#allocation23]   ;;  %s5598_s26 = smov [#allocation26]  }
  0x83   :  { %s245_s23 = sshll.u32 %s5597_s20, 4  ;;  %s265_s28 = sshll.u32 %s5598_s26, 4  ;;  %s246_s23 = int_to_ptr.vmem [resolvable:$true] %s245_s23  ;;  %s266_s28 = int_to_ptr.vmem [resolvable:$true] %s265_s28 }
  0x84   :  { %s5264_s1 = scalar_lea.vmem %s246_s23, 16  ;;  %s5268_s2 = scalar_lea.vmem %s246_s23, 32 }
  0x85   :  { %p5265_p2 = scmp.ne.s32.totalorder %s246_s23, %s5264_s1  ;;  %p5269_p3 = scmp.lt.s32.totalorder %s246_s23, %s246_s23 }
  0x86   :  { %p5270_p4 = scmp.lt.s32.totalorder %s5268_s2, %s5264_s1 }
  0x88   :  { %p5271_p5 = por %p5270_p4, %p5269_p3 }
  0x8a   :  { %p5272_p6 = pnand %p5271_p5, %p5265_p2 }
  0x8c   :  { %5275 = shalt.err (!%p5272_p6)
}
  0x8d   :  { %248 = dma.hbm_to_vmem [thread:$0]  %s5760_s25, 16, %s246_s23, [#allocation24]  }
  0x8e   :  { %s5284_s24 = scalar_lea.vmem %s266_s28, 16  ;;  %s5288_s7 = scalar_lea.vmem %s266_s28, 32 }
  0x8f   :  { %p5285_p7 = scmp.ne.s32.totalorder %s266_s28, %s5284_s24  ;;  %p5289_p8 = scmp.lt.s32.totalorder %s266_s28, %s266_s28 }
  0x90   :  { %p5290_p9 = scmp.lt.s32.totalorder %s5288_s7, %s5284_s24 }
  0x92   :  { %p5291_p10 = por %p5290_p9, %p5289_p8 }
  0x94   :  { %p5292_p11 = pnand %p5291_p10, %p5285_p7 }
  0x96   :  { %5295 = shalt.err (!%p5292_p11)
}
  0x97   :  { %268 = dma.hbm_to_vmem [thread:$0]  %s5770_s9, 16, %s266_s28, [#allocation27]  }
  0x98   :  { %s5599_s30 = smov [#allocation29]   ;;  %s5600_s10 = smov [#allocation2]  }
  0x99   :  { %s285_s17 = sshll.u32 %s5599_s30, 4  ;;  %s93_s8 = sshll.u32 %s5600_s10, 4  ;;  %s286_s17 = int_to_ptr.vmem [resolvable:$true] %s285_s17  ;;  %s94_s8 = int_to_ptr.vmem [resolvable:$true] %s93_s8 }
  0x9a   :  { %s5304_s11 = scalar_lea.vmem %s286_s17, 16  ;;  %s5308_s15 = scalar_lea.vmem %s286_s17, 32 }
  0x9b   :  { %p5305_p12 = scmp.ne.s32.totalorder %s286_s17, %s5304_s11  ;;  %p5309_p13 = scmp.lt.s32.totalorder %s286_s17, %s286_s17 }
  0x9c   :  { %p5310_p0 = scmp.lt.s32.totalorder %s5308_s15, %s5304_s11 }
  0x9e   :  { %p5311_p1 = por %p5310_p0, %p5309_p13 }
  0xa0   :  { %p5312_p2 = pnand %p5311_p1, %p5305_p12 }
  0xa2   :  { %5315 = shalt.err (!%p5312_p2)
}
  0xa3   :  { %288 = dma.hbm_to_vmem [thread:$0]  %s5780_s5, 16, %s286_s17, [#allocation30]  }
  0xa4   :  { %s5324_s25 = scalar_lea.vmem %s94_s8, 16  ;;  %s5328_s16 = scalar_lea.vmem %s94_s8, 32 }
  0xa5   :  { %p5325_p3 = scmp.ne.s32.totalorder %s94_s8, %s5324_s25  ;;  %p5329_p4 = scmp.lt.s32.totalorder %s94_s8, %s94_s8 }
  0xa6   :  { %p5330_p5 = scmp.lt.s32.totalorder %s5328_s16, %s5324_s25 }
  0xa8   :  { %p5331_p6 = por %p5330_p5, %p5329_p4 }
  0xaa   :  { %p5332_p7 = pnand %p5331_p6, %p5325_p3 }
  0xac   :  { %5335 = shalt.err (!%p5332_p7)
}
  0xad   :  { %96 = dma.hbm_to_vmem [thread:$0]  %s5640_s13, 16, %s94_s8, [#allocation3]  }
  0xae   :  { %s5601_s9 = smov [#allocation7]   ;;  %s5602_s18 = smov [#allocation10]  }
  0xaf   :  { %s113_s0 = sshll.u32 %s5601_s9, 4  ;;  %s139_s19 = sshll.u32 %s5602_s18, 4  ;;  %s114_s0 = int_to_ptr.vmem [resolvable:$true] %s113_s0  ;;  %s140_s19 = int_to_ptr.vmem [resolvable:$true] %s139_s19 }
  0xb0   :  { %s5344_s22 = scalar_lea.vmem %s114_s0, 16  ;;  %s5348_s20 = scalar_lea.vmem %s114_s0, 32 }
  0xb1   :  { %p5345_p8 = scmp.ne.s32.totalorder %s114_s0, %s5344_s22  ;;  %p5349_p9 = scmp.lt.s32.totalorder %s114_s0, %s114_s0 }
  0xb2   :  { %p5350_p10 = scmp.lt.s32.totalorder %s5348_s20, %s5344_s22 }
  0xb4   :  { %p5351_p11 = por %p5350_p10, %p5349_p9 }
  0xb6   :  { %p5352_p12 = pnand %p5351_p11, %p5345_p8 }
  0xb8   :  { %5355 = shalt.err (!%p5352_p12)
}
  0xb9   :  { %116 = dma.hbm_to_vmem [thread:$0]  %s5650_s21, 16, %s114_s0, [#allocation6]  }
  0xba   :  { %s5364_s5 = scalar_lea.vmem %s140_s19, 16  ;;  %s5368_s23 = scalar_lea.vmem %s140_s19, 32 }
  0xbb   :  { %p5365_p13 = scmp.ne.s32.totalorder %s140_s19, %s5364_s5  ;;  %p5369_p0 = scmp.lt.s32.totalorder %s140_s19, %s140_s19 }
  0xbc   :  { %p5370_p1 = scmp.lt.s32.totalorder %s5368_s23, %s5364_s5 }
  0xbe   :  { %p5371_p2 = por %p5370_p1, %p5369_p0 }
  0xc0   :  { %p5372_p3 = pnand %p5371_p2, %p5365_p13 }
  0xc2   :  { %5375 = shalt.err (!%p5372_p3)
}
  0xc3   :  { %142 = dma.hbm_to_vmem [thread:$0]  %s5675_s14, 16, %s140_s19, [#allocation9]  }
  0xc4   :  { %s5603_s13 = smov [#allocation13]   ;;  %s5604_s28 = smov [#allocation16]  }
  0xc5   :  { %s165_s26 = sshll.u32 %s5603_s13, 4  ;;  %s185_s1 = sshll.u32 %s5604_s28, 4  ;;  %s166_s26 = int_to_ptr.vmem [resolvable:$true] %s165_s26  ;;  %s186_s1 = int_to_ptr.vmem [resolvable:$true] %s185_s1 }
  0xc6   :  { %s5384_s2 = scalar_lea.vmem %s166_s26, 16  ;;  %s5388_s24 = scalar_lea.vmem %s166_s26, 32 }
  0xc7   :  { %p5385_p4 = scmp.ne.s32.totalorder %s166_s26, %s5384_s2  ;;  %p5389_p5 = scmp.lt.s32.totalorder %s166_s26, %s166_s26 }
  0xc8   :  { %p5390_p6 = scmp.lt.s32.totalorder %s5388_s24, %s5384_s2 }
  0xca   :  { %p5391_p7 = por %p5390_p6, %p5389_p5 }
  0xcc   :  { %p5392_p8 = pnand %p5391_p7, %p5385_p4 }
  0xce   :  { %5395 = shalt.err (!%p5392_p8)
}
  0xcf   :  { %168 = dma.hbm_to_vmem [thread:$0]  %s5700_s12, 16, %s166_s26, [#allocation12]  }
  0xd0   :  { %s5404_s21 = scalar_lea.vmem %s186_s1, 16  ;;  %s5408_s7 = scalar_lea.vmem %s186_s1, 32 }
  0xd1   :  { %p5405_p9 = scmp.ne.s32.totalorder %s186_s1, %s5404_s21  ;;  %p5409_p10 = scmp.lt.s32.totalorder %s186_s1, %s186_s1 }
  0xd2   :  { %p5410_p11 = scmp.lt.s32.totalorder %s5408_s7, %s5404_s21 }
  0xd4   :  { %p5411_p12 = por %p5410_p11, %p5409_p10 }
  0xd6   :  { %p5412_p13 = pnand %p5411_p12, %p5405_p9 }
  0xd8   :  { %5415 = shalt.err (!%p5412_p13)
}
  0xd9   :  { %188 = dma.hbm_to_vmem [thread:$0]  %s5710_s27, 16, %s186_s1, [#allocation15]  }
  0xda   :  { %s5605_s14 = smov [#allocation19]   ;;  %s5606_s17 = smov [#allocation22]  }
  0xdb   :  { %s211_s30 = sshll.u32 %s5605_s14, 4  ;;  %s233_s10 = sshll.u32 %s5606_s17, 4  ;;  %s212_s30 = int_to_ptr.vmem [resolvable:$true] %s211_s30  ;;  %s234_s10 = int_to_ptr.vmem [resolvable:$true] %s233_s10 }
  0xdc   :  { %s5424_s8 = scalar_lea.vmem %s212_s30, 16  ;;  %s5428_s11 = scalar_lea.vmem %s212_s30, 32 }
  0xdd   :  { %p5425_p0 = scmp.ne.s32.totalorder %s212_s30, %s5424_s8  ;;  %p5429_p1 = scmp.lt.s32.totalorder %s212_s30, %s212_s30 }
  0xde   :  { %p5430_p2 = scmp.lt.s32.totalorder %s5428_s11, %s5424_s8 }
  0xe0   :  { %p5431_p3 = por %p5430_p2, %p5429_p1 }
  0xe2   :  { %p5432_p4 = pnand %p5431_p3, %p5425_p0 }
  0xe4   :  { %5435 = shalt.err (!%p5432_p4)
}
  0xe5   :  { %214 = dma.hbm_to_vmem [thread:$0]  %s5735_s4, 16, %s212_s30, [#allocation18]  }
  0xe6   :  { %s5444_s12 = scalar_lea.vmem %s234_s10, 32  ;;  %p5449_p6 = scmp.lt.s32.totalorder %s234_s10, %s234_s10 }
  0xe7   :  { %p5445_p5 = scmp.ne.s32.totalorder %s234_s10, %s5444_s12  ;;  %p5450_p7 = scmp.lt.s32.totalorder %s5444_s12, %s5444_s12 }
  0xe9   :  { %p5451_p8 = por %p5450_p7, %p5449_p6 }
  0xeb   :  { %p5452_p9 = pnand %p5451_p8, %p5445_p5 }
  0xed   :  { %5455 = shalt.err (!%p5452_p9)
}
  0xee   :  { %s6435_s27 = sld [smem:[#allocation56_spill]]  ;;  %s5607_s15 = smov [#allocation25]  }
  0xef   :  { %s255_s25 = sshll.u32 %s5607_s15, 4  ;;  %s5608_s16 = smov [#allocation28]   ;;  %s256_s25 = int_to_ptr.vmem [resolvable:$true] %s255_s25 }
  0xf0   :  { %s275_s9 = sshll.u32 %s5608_s16, 4  ;;  %s5464_s0 = scalar_lea.vmem %s256_s25, 16  ;;  %s276_s9 = int_to_ptr.vmem [resolvable:$true] %s275_s9 }
  0xf1   :  { %p5465_p10 = scmp.ne.s32.totalorder %s256_s25, %s5464_s0  ;;  %s5468_s18 = scalar_lea.vmem %s256_s25, 32 }
  0xf2   :  { %p5469_p11 = scmp.lt.s32.totalorder %s256_s25, %s256_s25  ;;  %p5470_p12 = scmp.lt.s32.totalorder %s5468_s18, %s5464_s0 }
  0xf4   :  { %236 = dma.hbm_to_vmem [thread:$0]  %s6435_s27, 32, %s234_s10, [#allocation21]  }
  0xf5   :  { %p5471_p13 = por %p5470_p12, %p5469_p11 }
  0xf7   :  { %p5472_p0 = pnand %p5471_p13, %p5465_p10 }
  0xf9   :  { %5475 = shalt.err (!%p5472_p0)
}
  0xfa   :  { %s6436_s4 = sld [smem:[#allocation58_spill]]  ;;  %s5484_s19 = scalar_lea.vmem %s276_s9, 16 }
  0xfb   :  { %p5485_p1 = scmp.ne.s32.totalorder %s276_s9, %s5484_s19  ;;  %s5488_s22 = scalar_lea.vmem %s276_s9, 32 }
  0xfc   :  { %p5489_p2 = scmp.lt.s32.totalorder %s276_s9, %s276_s9  ;;  %p5490_p3 = scmp.lt.s32.totalorder %s5488_s22, %s5484_s19 }
  0xfe   :  { %p5491_p4 = por %p5490_p3, %p5489_p2 }
 0x100   :  { %258 = dma.hbm_to_vmem [thread:$0]  %s6436_s4, 16, %s256_s25, [#allocation24]  }
 0x101   :  { %p5492_p5 = pnand %p5491_p4, %p5485_p1 }
 0x103   :  { %5495 = shalt.err (!%p5492_p5)
}
 0x104   :  { %s6437_s20 = sld [smem:[#allocation59_spill]]  ;;  %s5609_s5 = smov [#allocation31]  }
 0x105   :  { %s297_s23 = sshll.u32 %s5609_s5, 4  ;;  %s298_s23 = int_to_ptr.vmem [resolvable:$true] %s297_s23 }
 0x106   :  { %s5504_s13 = scalar_lea.vmem %s298_s23, 16  ;;  %s5508_s26 = scalar_lea.vmem %s298_s23, 32 }
 0x107   :  { %p5505_p6 = scmp.ne.s32.totalorder %s298_s23, %s5504_s13  ;;  %p5509_p7 = scmp.lt.s32.totalorder %s298_s23, %s298_s23 }
 0x108   :  { %p5510_p8 = scmp.lt.s32.totalorder %s5508_s26, %s5504_s13 }
 0x10a   :  { %278 = dma.hbm_to_vmem [thread:$0]  %s6437_s20, 16, %s276_s9, [#allocation27]  }
 0x10b   :  { %p5511_p9 = por %p5510_p8, %p5509_p7 }
 0x10d   :  { %p5512_p10 = pnand %p5511_p9, %p5505_p6 }
 0x10f   :  { %5515 = shalt.err (!%p5512_p10)
}
 0x110   :  { %300 = dma.hbm_to_vmem [thread:$0]  %s5790_s3, 16, %s298_s23, [#allocation30]  }
 0x111   :  { %5536 = dma.done.wait [#allocation3], 16  }
 0x112   :  { %5537 = vsyncadd [#allocation3], 4294967280 }
 0x113   :  { %5538 = dma.done.wait [#allocation6], 32  }
 0x114   :  { %5539 = vsyncadd [#allocation6], 4294967264 }
 0x115   :  { %5540 = dma.done.wait [#allocation9], 32  }
 0x116   :  { %5541 = vsyncadd [#allocation9], 4294967264 }
 0x117   :  { %5542 = dma.done.wait [#allocation12], 32  }
 0x118   :  { %5543 = vsyncadd [#allocation12], 4294967264 }
 0x119   :  { %5544 = dma.done.wait [#allocation15], 32  }
 0x11a   :  { %5545 = vsyncadd [#allocation15], 4294967264 }
 0x11b   :  { %5546 = dma.done.wait [#allocation18], 32  }
 0x11c   :  { %5547 = vsyncadd [#allocation18], 4294967264 }
 0x11d   :  { %5548 = dma.done.wait [#allocation21], 48  }
 0x11e   :  { %5549 = vsyncadd [#allocation21], 4294967248 }
 0x11f   :  { %5550 = dma.done.wait [#allocation24], 32  }
 0x120   :  { %5551 = vsyncadd [#allocation24], 4294967264 }
 0x121   :  { %5552 = dma.done.wait [#allocation27], 32  }
 0x122   :  { %5553 = vsyncadd [#allocation27], 4294967264 }
 0x123   :  { %5554 = dma.done.wait [#allocation30], 32  }
 0x124   :  { %5555 = vsyncadd [#allocation30], 4294967264  ;;  %s6438_s3 = sld [smem:[#allocation44_spill]]  ;;  %v5610_v0 = vmov 0   ;;  %v5611_v3 = vmov 1   ;;  %v372_v4 = vlaneseq  ;;  %vm404_vm0 = vcmask 523264  }
 0x125   :  { %s6439_s28 = sld [smem:[#allocation45_spill]]  ;;  %5008 = vset.pattern.permute.xlu1 %v5610_v0  ;;  %5006 = vset.pattern.permute.xlu0 %v5610_v0  ;;  %v4477_v19 = vld [vmem:[#allocation2] ss:$0 sm:$0xff]  ;;  %v5612_v40 = vmov 0.0   ;;  %v4478_v60 = vld [vmem:[#allocation5] ss:$0 sm:$0xff] }
 0x126   :  { %v373_v5 = vshrl.u32 %v372_v4, 7  ;;  %s6440_s1 = sld [smem:[#allocation46_spill]]  ;;  %546 = vmatprep.mubr.f32.mxu0 %v5612_v40  ;;  %4735 = vmatprep.subr.mxu1 %v5612_v40  ;;  %v4479_v63 = vld [vmem:[#allocation7] ss:$0 sm:$0xff]  ;;  %vm5613_vm1 = vmmov 0   ;;  %s5614_s24 = smov 64  }
 0x127   :  { %s6441_s2 = sld [smem:[#allocation47_spill]]  ;;  %4737 = vmatprep.mubr.msk.f32.mxu1 %vm5613_vm1, %v5612_v40  ;;  %vm562_vm2 = vcmask 130048   ;;  %vm714_vm3 = vcmask 64512   ;;  %s5615_s21 = smov 48   ;;  %vm1901_vm4 = vcmask 261120   ;;  %vm1904_vm5 = vcmask 392192  }
 0x128   :  { %v5818_v6 = vsub.s32 0, %v373_v5  ;;  %v5820_v7 = vsub.s32 1, %v373_v5  ;;  %s5616_s7 = smov 112   ;;  %s5617_s14 = smov 32   ;;  %vm4265_vm6 = vcmask 1041409   ;;  %vm4268_vm7 = vcmask 517120  }
 0x129   :  { %s5618_s30 = smov 96   ;;  %s5619_s17 = smov 16  }
 0x12a   :  { %v361_v1 = vld [vmem:[%s6438_s3 + $0x8] sm:$0xff]  ;;  %v360_v2 = vld [vmem:[%s6438_s3] sm:$0xff]  ;;  %s5620_s10 = smov 80   ;;  %s6442_s8 = sld [smem:[#allocation48_spill]] }
 0x12b   :  { %369 = vperm.xlu1 %5008, %v361_v1   ;;  %364 = vperm.xlu0 %5006, %v360_v2   ;;  %v358_v8 = vld [vmem:[%s6439_s28] sm:$0x3]  ;;  %s6443_s11 = sld [smem:[#allocation49_spill]] }
 0x12c   :  { %v375_v11 = vrot.slane %v358_v8, %v5818_v6  ;;  %v389_v12 = vrot.slane %v358_v8, %v5820_v7  ;;  %v463_v36 = vld [vmem:[%s6440_s1 + $0x78] sm:$0xff]  ;;  %v462_v37 = vld [vmem:[%s6440_s1 + $0x70] sm:$0xff]  ;;  %v461_v38 = vld [vmem:[%s6440_s1 + $0x68] sm:$0xff]  ;;  %s6444_s12 = sld [smem:[#allocation51_spill]] }
 0x12d   :  { %498 = vmatprep.subr.mxu0 %v463_v36  ;;  %v460_v39 = vld [vmem:[%s6440_s1 + $0x60] sm:$0xff]  ;;  %v459_v41 = vld [vmem:[%s6440_s1 + $0x58] sm:$0xff]  ;;  %v458_v42 = vld [vmem:[%s6440_s1 + $0x50] sm:$0xff]  ;;  %s6445_s27 = sld [smem:[#allocation50_spill]] }
 0x12e   :  { %499 = vmatpush1.msra.mxu0 %v462_v37  ;;  %v457_v43 = vld [vmem:[%s6440_s1 + $0x48] sm:$0xff]  ;;  %v456_v44 = vld [vmem:[%s6440_s1 + $0x40] sm:$0xff]  ;;  %v455_v45 = vld [vmem:[%s6440_s1 + $0x38] sm:$0xff]  ;;  %s6446_s15 = sld [smem:[#allocation52_spill]] }
 0x12f   :  { %5009 = vset.pattern.permute.xlu1 %v5611_v3  ;;  %5007 = vset.pattern.permute.xlu0 %v5611_v3  ;;  %v454_v46 = vld [vmem:[%s6440_s1 + $0x30] sm:$0xff]  ;;  %v453_v47 = vld [vmem:[%s6440_s1 + $0x28] sm:$0xff]  ;;  %v452_v48 = vld [vmem:[%s6440_s1 + $0x20] sm:$0xff]  ;;  %s6447_s25 = sld [smem:[#allocation53_spill]] }
 0x130   :  { %383 = vperm.xlu1 %5009, %v361_v1   ;;  %379 = vperm.xlu0 %5007, %v360_v2   ;;  %v451_v49 = vld [vmem:[%s6440_s1 + $0x18] sm:$0xff]  ;;  %v450_v50 = vld [vmem:[%s6440_s1 + $0x10] sm:$0xff]  ;;  %v449_v51 = vld [vmem:[%s6440_s1 + $0x8] sm:$0xff]  ;;  %s6448_s16 = sld [smem:[#allocation54_spill]] }
 0x131   :  { %500 = vmatprep.subr.mxu0 %v461_v38  ;;  %v448_v52 = vld [vmem:[%s6440_s1] sm:$0xff]  ;;  %s6449_s9 = sld [smem:[#allocation55_spill]] }
 0x132   :  { %501 = vmatpush1.msra.mxu0 %v460_v39  ;;  %v464_v5 = vld [vmem:[%s6441_s2] sm:$0x3]  ;;  %s6450_s0 = sld [smem:[#allocation57_spill]] }
 0x133   :  { %502 = vmatprep.subr.mxu0 %v459_v41  ;;  %v469_v8 = vrot.slane %v464_v5, %v5818_v6 }
 0x134   :  { %503 = vmatpush1.msra.mxu0 %v458_v42 }
 0x135   :  { %504 = vmatprep.subr.mxu0 %v457_v43 }
 0x136   :  { %505 = vmatpush1.msra.mxu0 %v456_v44 }
 0x137   :  { %506 = vmatprep.subr.mxu0 %v455_v45 }
 0x138   :  { %507 = vmatpush1.msra.mxu0 %v454_v46 }
 0x139   :  { %508 = vmatprep.subr.mxu0 %v453_v47 }
 0x13a   :  { %509 = vmatpush1.msra.mxu0 %v452_v48 }
 0x13b   :  { %510 = vmatprep.subr.mxu0 %v451_v49 }
 0x13c   :  { %511 = vmatpush1.msra.mxu0 %v450_v50 }
 0x13d   :  { %512 = vmatprep.subr.mxu0 %v449_v51 }
 0x13e   :  { %513 = vmatpush1.msra.mxu0 %v448_v52 }
 0x13f   :  { %4725 = vmatprep.subr.mxu0 %v5612_v40 }
 0x1a6   :  { %v365_v9 = vpop.permute.xlu0 %364  ;;  %v370_v10 = vpop.permute.xlu1 %369 }
 0x1a7   :  { %v377_v13 = vmul.f32 %v375_v11, %v370_v10  ;;  %v376_v16 = vmul.f32 %v375_v11, %v365_v9  ;;  %v5864_v9 = vrot.slane %v464_v5, %v5820_v7 }
 0x1ab   :  { %v384_v14 = vpop.permute.xlu1 %383  ;;  %v380_v15 = vpop.permute.xlu0 %379 }
 0x1ac   :  { %v391_v17 = vmul.f32 %v389_v12, %v384_v14  ;;  %v390_v18 = vmul.f32 %v389_v12, %v380_v15 }
 0x1ae   :  { %v393_v20 = vadd.f32 %v391_v17, %v377_v13  ;;  %v392_v21 = vadd.f32 %v390_v18, %v376_v16 }
 0x1b0   :  { %v401_v22 = vadd.f32 %v4477_v19, %v393_v20  ;;  %v400_v23 = vadd.f32 %v4477_v19, %v392_v21 }
 0x1b2   :  { %v408_v24 = vsel %vm404_vm0, %v401_v22, 0.0  ;;  %v405_v25 = vsel %vm404_vm0, %v400_v23, 0.0 }
 0x1b3   :  { %409 = vadd.xlane.f32.xlu0 %v408_v24  ;;  %406 = vadd.xlane.f32.xlu1 %v405_v25 }
 0x23c   :  { %v410_v26 = vpop.xlane.xlu0 %409  ;;  %v407_v27 = vpop.xlane.xlu1 %406 }
 0x23d   :  { %v413_v28 = vmul.f32 0.015625, %v410_v26  ;;  %v412_v29 = vmul.f32 0.015625, %v407_v27 }
 0x23f   :  { %v415_v30 = vsub.f32 %v401_v22, %v413_v28  ;;  %v414_v31 = vsub.f32 %v400_v23, %v412_v29 }
 0x241   :  { %v417_v32 = vmul.f32 %v415_v30, %v415_v30  ;;  %v416_v33 = vmul.f32 %v414_v31, %v414_v31 }
 0x243   :  { %v421_v34 = vsel %vm404_vm0, %v417_v32, 0.0  ;;  %v418_v35 = vsel %vm404_vm0, %v416_v33, 0.0 }
 0x244   :  { %422 = vadd.xlane.f32.xlu1 %v421_v34  ;;  %419 = vadd.xlane.f32.xlu0 %v418_v35 }
 0x2cd   :  { %v420_v53 = vpop.xlane.xlu0 %419  ;;  %v423_v54 = vpop.xlane.xlu1 %422 }
 0x2ce   :  { %v424_v55 = vmul.f32 0.015625, %v420_v53  ;;  %v425_v56 = vmul.f32 0.015625, %v423_v54 }
 0x2d0   :  { %v426_v57 = vadd.f32 1e-05, %v424_v55  ;;  %v427_v58 = vadd.f32 1e-05, %v425_v56 }
 0x2d2   :  { %5010 = vrsqrt.f32 %v426_v57 }
 0x2d3   :  { %5012 = vrsqrt.f32 %v427_v58 }
 0x2df   :  { %v5011_v59 = vpop.eup %5010 }
 0x2e0   :  { %v5013_v61 = vpop.eup %5012  ;;  %v430_v62 = vmul.f32 %v5011_v59, %v414_v31 }
 0x2e1   :  { %v431_v0 = vmul.f32 %v5013_v61, %v415_v30 }
 0x2e2   :  { %v438_v1 = vmul.f32 %v4478_v60, %v430_v62 }
 0x2e3   :  { %v439_v3 = vmul.f32 %v4478_v60, %v431_v0 }
 0x2e4   :  { %v5848_v2 = vadd.f32 %v4479_v63, %v438_v1 }
 0x2e5   :  { %v5853_v4 = vadd.f32 %v4479_v63, %v439_v3 }
 0x2e6   :  { %4480 = vmatmul.mubr.msk.f32.vlgmr.msra.gmra.mxu0 %vm404_vm0, %v5848_v2 }
 0x2e7   :  { %552 = vmatprep.mubr.f32.mxu0 %v5612_v40 }
 0x2ea   :  { %4481 = vmatmul.mubr.msk.f32.gmra.mxu0 %vm404_vm0, %v5853_v4 }
 0x2eb   :  { %4727 = vmatprep.mubr.msk.f32.mxu0 %vm5613_vm1, %v5612_v40 }
 0x3a6   :  { %v548_v10 = vpop.f32.mrf.mxu0 }
 0x3a7   :  { %v5866_v11 = vadd.f32 %v548_v10, %v469_v8 }
 0x3a8   :  { %v550_v12 = vpop.f32.mrf.mxu0 }
 0x3a9   :  { %v5869_v13 = vadd.f32 %v550_v12, %v5864_v9  ;;  %560 = vrot.lane.b32.xlu0 %v5866_v11, %s5614_s24 }
 0x3aa   :  { %v554_v14 = vpop.f32.mrf.mxu0 }
 0x3ab   :  { %v5873_v15 = vadd.f32 %v554_v14, %v469_v8  ;;  %4736 = vmatpush3.msra.mxu1 %v5869_v13 }
 0x3ac   :  { %4740 = vmatprep.subr.mxu1 %v5612_v40  ;;  %v556_v18 = vpop.f32.mrf.mxu0 }
 0x3ad   :  { %638 = vrot.lane.b32.xlu1 %v5873_v15, %s5614_s24  ;;  %v5909_v43 = vadd.f32 %v556_v18, %v5864_v9 }
 0x41b   :  { %v561_v16 = vpop.permute.xlu0 %560 }
 0x41c   :  { %4726 = vmatpush3.xpose.msk.msra.mxu0 %vm562_vm2, %v561_v16 }
 0x41d   :  { %4730 = vmatprep.subr.mxu0 %v5612_v40 }
 0x41f   :  { %4728 = vmatmul.mubr.msk.f32.vlgmr.msra.gmra.mxu0 %vm562_vm2, %v5866_v11  ;;  %v639_v17 = vpop.permute.xlu1 %638 }
 0x420   :  { %4731 = vmatpush3.xpose.msk.msra.mxu0 %vm562_vm2, %v639_v17  ;;  %4732 = vmatprep.mubr.msk.f32.mxu0 %vm5613_vm1, %v5612_v40 }
 0x421   :  { %4750 = vmatprep.subr.mxu0 %v5612_v40 }
 0x423   :  { %4733 = vmatmul.mubr.msk.f32.vlgmr.msra.gmra.mxu0 %vm562_vm2, %v5873_v15 }
 0x424   :  { %4752 = vmatprep.mubr.msk.f32.mxu0 %vm5613_vm1, %v5612_v40 }
 0x4df   :  { %v633_v19 = vpop.f32.mrf.mxu0 }
 0x4e0   :  { %v715_v20 = vsel %vm714_vm3, %v633_v19, -inf }
 0x4e1   :  { %v4729_v21 = vpop.f32.mrf.mxu0  ;;  %716 = vmax.xlane.f32.xlu1 %v715_v20 }
 0x4e3   :  { %v710_v22 = vpop.f32.mrf.mxu0 }
 0x4e4   :  { %v718_v23 = vsel %vm714_vm3, %v710_v22, -inf }
 0x4e5   :  { %719 = vmax.xlane.f32.xlu0 %v718_v23  ;;  %v4734_v24 = vpop.f32.mrf.mxu0 }
 0x4f2   :  { %963 = vrot.lane.b32.xlu1 %v5873_v15, %s5615_s21 }
 0x56a   :  { %v717_v25 = vpop.xlane.xlu1 %716 }
 0x56b   :  { %v721_v26 = vsub.f32 %v633_v19, %v717_v25 }
 0x56d   :  { %v723_v27 = vmul.f32 1.442695, %v721_v26 }
 0x56e   :  { %v720_v28 = vpop.xlane.xlu0 %719  ;;  %v964_v29 = vpop.permute.xlu1 %963 }
 0x56f   :  { %5014 = vpow2.f32 %v723_v27  ;;  %v722_v30 = vsub.f32 %v710_v22, %v720_v28  ;;  %4751 = vmatpush3.xpose.msk.msra.mxu0 %vm562_vm2, %v964_v29 }
 0x570   :  { %4760 = vmatprep.subr.mxu0 %v5612_v40 }
 0x571   :  { %v725_v31 = vmul.f32 1.442695, %v722_v30 }
 0x573   :  { %5016 = vpow2.f32 %v725_v31 }
 0x57c   :  { %v5015_v32 = vpop.eup %5014 }
 0x57d   :  { %v727_v33 = vsel %vm714_vm3, %v5015_v32, 0.0 }
 0x57e   :  { %728 = vadd.xlane.f32.xlu0 %v727_v33 }
 0x580   :  { %v5017_v34 = vpop.eup %5016 }
 0x581   :  { %v730_v35 = vsel %vm714_vm3, %v5017_v34, 0.0 }
 0x582   :  { %731 = vadd.xlane.f32.xlu1 %v730_v35 }
 0x593   :  { %883 = vrot.lane.b32.xlu1 %v5866_v11, %s5616_s7 }
 0x594   :  { %885 = vrot.lane.b32.xlu0 %v5866_v11, %s5615_s21 }
 0x598   :  { %961 = vrot.lane.b32.xlu0 %v5873_v15, %s5616_s7 }
 0x607   :  { %v729_v36 = vpop.xlane.xlu0 %728 }
 0x608   :  { %5018 = vrcp.f32 %v729_v36 }
 0x60b   :  { %v886_v37 = vpop.permute.xlu0 %885  ;;  %v732_v38 = vpop.xlane.xlu1 %731 }
 0x60c   :  { %5020 = vrcp.f32 %v732_v38 }
 0x60f   :  { %v962_v39 = vpop.permute.xlu0 %961  ;;  %v884_v46 = vpop.permute.xlu1 %883 }
 0x610   :  { %4753 = vmatmul.mubr.msk.f32.vlgmr.msra.gmra.mxu0 %vm562_vm2, %v962_v39 }
 0x611   :  { %4762 = vmatprep.mubr.msk.f32.mxu0 %vm5613_vm1, %v5612_v40 }
 0x615   :  { %v5019_v41 = vpop.eup %5018 }
 0x616   :  { %v735_v42 = vmul.f32 %v5019_v41, %v5015_v32 }
 0x618   :  { %4738 = vmatmul.mubr.msk.f32.vlgmr.msra.gmra.mxu1 %vm714_vm3, %v735_v42 }
 0x619   :  { %v5021_v44 = vpop.eup %5020  ;;  %4741 = vmatpush3.msra.mxu1 %v5909_v43  ;;  %4742 = vmatprep.mubr.msk.f32.mxu1 %vm5613_vm1, %v5612_v40 }
 0x61a   :  { %4745 = vmatprep.subr.mxu1 %v5612_v40  ;;  %v736_v45 = vmul.f32 %v5021_v44, %v5017_v34 }
 0x61c   :  { %4743 = vmatmul.mubr.msk.f32.vlgmr.msra.gmra.mxu1 %vm714_vm3, %v736_v45 }
 0x61d   :  { %4746 = vmatpush3.xpose.msk.msra.mxu1 %vm562_vm2, %v886_v37  ;;  %4747 = vmatprep.mubr.msk.f32.mxu1 %vm5613_vm1, %v5612_v40 }
 0x61e   :  { %4755 = vmatprep.subr.mxu1 %v5612_v40 }
 0x620   :  { %4748 = vmatmul.mubr.msk.f32.vlgmr.msra.gmra.mxu1 %vm562_vm2, %v884_v46 }
 0x621   :  { %4757 = vmatprep.mubr.msk.f32.mxu1 %vm5613_vm1, %v5612_v40 }
 0x6d0   :  { %v1035_v47 = vpop.f32.mrf.mxu0 }
 0x6d1   :  { %v1042_v48 = vsel %vm714_vm3, %v1035_v47, -inf }
 0x6d2   :  { %1043 = vmax.xlane.f32.xlu0 %v1042_v48  ;;  %v4754_v49 = vpop.f32.mrf.mxu0 }
 0x6d8   :  { %v5925_v50 = vpop.f32.mrf.mxu1 }
 0x6da   :  { %v4739_v51 = vpop.f32.mrf.mxu1 }
 0x6dc   :  { %v5927_v52 = vpop.f32.mrf.mxu1 }
 0x6de   :  { %v4744_v53 = vpop.f32.mrf.mxu1 }
 0x6e0   :  { %v957_v54 = vpop.f32.mrf.mxu1 }
 0x6e1   :  { %v1039_v55 = vsel %vm714_vm3, %v957_v54, -inf }
 0x6e2   :  { %1040 = vmax.xlane.f32.xlu1 %v1039_v55  ;;  %v4749_v56 = vpop.f32.mrf.mxu1 }
 0x6e8   :  { %1062 = vrot.lane.b32.xlu0 %v5869_v13, %s5616_s7 }
 0x75b   :  { %v1044_v57 = vpop.xlane.xlu0 %1043 }
 0x75c   :  { %v1046_v58 = vsub.f32 %v1035_v47, %v1044_v57 }
 0x75e   :  { %v1049_v59 = vmul.f32 1.442695, %v1046_v58 }
 0x75f   :  { %v1063_v60 = vpop.permute.xlu0 %1062 }
 0x760   :  { %5022 = vpow2.f32 %v1049_v59  ;;  %4756 = vmatpush3.msra.mxu1 %v1063_v60 }
 0x761   :  { %4765 = vmatprep.subr.mxu1 %v5612_v40 }
 0x76b   :  { %v1041_v61 = vpop.xlane.xlu1 %1040 }
 0x76c   :  { %v1045_v62 = vsub.f32 %v957_v54, %v1041_v61 }
 0x76d   :  { %v5023_v63 = vpop.eup %5022 }
 0x76e   :  { %v1047_v0 = vmul.f32 1.442695, %v1045_v62  ;;  %v1054_v1 = vsel %vm714_vm3, %v5023_v63, 0.0 }
 0x76f   :  { %1055 = vadd.xlane.f32.xlu1 %v1054_v1 }
 0x770   :  { %5024 = vpow2.f32 %v1047_v0 }
 0x77d   :  { %v5025_v3 = vpop.eup %5024 }
 0x77e   :  { %v1051_v5 = vsel %vm714_vm3, %v5025_v3, 0.0 }
 0x77f   :  { %1052 = vadd.xlane.f32.xlu0 %v1051_v5 }
 0x780   :  { %1139 = vrot.lane.b32.xlu1 %v5909_v43, %s5616_s7 }
 0x784   :  { %1217 = vrot.lane.b32.xlu1 %v5866_v11, %s5617_s14 }
 0x788   :  { %1215 = vrot.lane.b32.xlu1 %v5866_v11, %s5618_s30 }
 0x795   :  { %1295 = vrot.lane.b32.xlu0 %v5873_v15, %s5617_s14 }
 0x799   :  { %1293 = vrot.lane.b32.xlu0 %v5873_v15, %s5618_s30 }
 0x7f8   :  { %v1056_v8 = vpop.xlane.xlu1 %1055 }
 0x7f9   :  { %5026 = vrcp.f32 %v1056_v8 }
 0x7fc   :  { %v1140_v9 = vpop.permute.xlu1 %1139 }
 0x7fd   :  { %4761 = vmatpush3.msra.mxu0 %v1140_v9 }
 0x7fe   :  { %4770 = vmatprep.subr.mxu0 %v5612_v40 }
 0x800   :  { %v1218_v19 = vpop.permute.xlu1 %1217 }
 0x804   :  { %v1216_v21 = vpop.permute.xlu1 %1215 }
 0x806   :  { %v5027_v10 = vpop.eup %5026 }
 0x807   :  { %v1060_v12 = vmul.f32 %v5027_v10, %v5023_v63 }
 0x808   :  { %v1053_v14 = vpop.xlane.xlu0 %1052 }
 0x809   :  { %5028 = vrcp.f32 %v1053_v14  ;;  %4763 = vmatmul.mubr.msk.f32.vlgmr.msra.gmra.mxu0 %vm714_vm3, %v1060_v12 }
 0x80a   :  { %4772 = vmatprep.mubr.msk.f32.mxu0 %vm5613_vm1, %v5612_v40 }
 0x80c   :  { %v1296_v16 = vpop.permute.xlu0 %1295 }
 0x80d   :  { %4771 = vmatpush3.xpose.msk.msra.mxu0 %vm562_vm2, %v1296_v16 }
 0x80e   :  { %4780 = vmatprep.subr.mxu0 %v5612_v40 }
 0x810   :  { %v1294_v17 = vpop.permute.xlu0 %1293 }
 0x811   :  { %4773 = vmatmul.mubr.msk.f32.vlgmr.msra.gmra.mxu0 %vm562_vm2, %v1294_v17 }
 0x812   :  { %4782 = vmatprep.mubr.msk.f32.mxu0 %vm5613_vm1, %v5612_v40 }
 0x816   :  { %v5029_v18 = vpop.eup %5028 }
 0x817   :  { %v1059_v20 = vmul.f32 %v5029_v18, %v5025_v3 }
 0x819   :  { %4758 = vmatmul.mubr.msk.f32.vlgmr.msra.gmra.mxu1 %vm714_vm3, %v1059_v20 }
 0x81a   :  { %4766 = vmatpush3.xpose.msk.msra.mxu1 %vm562_vm2, %v1218_v19  ;;  %4767 = vmatprep.mubr.msk.f32.mxu1 %vm5613_vm1, %v5612_v40 }
 0x81b   :  { %4775 = vmatprep.subr.mxu1 %v5612_v40 }
 0x81d   :  { %4768 = vmatmul.mubr.msk.f32.vlgmr.msra.gmra.mxu1 %vm562_vm2, %v1216_v21 }
 0x81e   :  { %4777 = vmatprep.mubr.msk.f32.mxu1 %vm5613_vm1, %v5612_v40 }
 0x8c9   :  { %v5962_v22 = vpop.f32.mrf.mxu0 }
 0x8cb   :  { %v4764_v23 = vpop.f32.mrf.mxu0 }
 0x8d1   :  { %v1367_v24 = vpop.f32.mrf.mxu0 }
 0x8d2   :  { %v1374_v25 = vsel %vm714_vm3, %v1367_v24, -inf }
 0x8d3   :  { %1375 = vmax.xlane.f32.xlu0 %v1374_v25  ;;  %v4774_v26 = vpop.f32.mrf.mxu0  ;;  %v1914_v25 = vld [vmem:[%s6442_s8 + $0x38] sm:$0xff] }
 0x8d4   :  { %v1913_v26 = vld [vmem:[%s6442_s8 + $0x30] sm:$0xff] }
 0x8d9   :  { %v5965_v27 = vpop.f32.mrf.mxu1 }
 0x8db   :  { %v4759_v28 = vpop.f32.mrf.mxu1 }
 0x8dc   :  { %v1911_v28 = vld [vmem:[%s6442_s8 + $0x20] sm:$0xff] }
 0x8dd   :  { %v1289_v29 = vpop.f32.mrf.mxu1 }
 0x8de   :  { %v1371_v30 = vsel %vm714_vm3, %v1289_v29, -inf }
 0x8df   :  { %1372 = vmax.xlane.f32.xlu1 %v1371_v30  ;;  %v4769_v31 = vpop.f32.mrf.mxu1  ;;  %v1909_v30 = vld [vmem:[%s6442_s8 + $0x10] sm:$0xff] }
 0x8e0   :  { %v1908_v31 = vld [vmem:[%s6442_s8 + $0x8] sm:$0xff] }
 0x8e9   :  { %1393 = vrot.lane.b32.xlu0 %v5869_v13, %s5618_s30 }
 0x95c   :  { %v1376_v32 = vpop.xlane.xlu0 %1375 }
 0x95d   :  { %v1378_v33 = vsub.f32 %v1367_v24, %v1376_v32 }
 0x95f   :  { %v1381_v34 = vmul.f32 1.442695, %v1378_v33  ;;  %v1907_v33 = vld [vmem:[%s6442_s8] sm:$0xff] }
 0x960   :  { %v1394_v35 = vpop.permute.xlu0 %1393 }
 0x961   :  { %5030 = vpow2.f32 %v1381_v34  ;;  %4776 = vmatpush3.msra.mxu1 %v1394_v35 }
 0x962   :  { %4785 = vmatprep.subr.mxu1 %v5612_v40 }
 0x968   :  { %v1373_v36 = vpop.xlane.xlu1 %1372 }
 0x969   :  { %v1377_v37 = vsub.f32 %v1289_v29, %v1373_v36  ;;  %v1910_v29 = vld [vmem:[%s6442_s8 + $0x18] sm:$0xff] }
 0x96b   :  { %v1379_v38 = vmul.f32 1.442695, %v1377_v37 }
 0x96d   :  { %5032 = vpow2.f32 %v1379_v38 }
 0x96e   :  { %v5031_v39 = vpop.eup %5030 }
 0x96f   :  { %v1386_v41 = vsel %vm714_vm3, %v5031_v39, 0.0 }
 0x970   :  { %1387 = vadd.xlane.f32.xlu1 %v1386_v41 }
 0x97a   :  { %v5033_v42 = vpop.eup %5032 }
 0x97b   :  { %v1383_v44 = vsel %vm714_vm3, %v5033_v42, 0.0 }
 0x97c   :  { %1384 = vadd.xlane.f32.xlu0 %v1383_v44 }
 0x981   :  { %1469 = vrot.lane.b32.xlu1 %v5909_v43, %s5618_s30 }
 0x985   :  { %1547 = vrot.lane.b32.xlu1 %v5866_v11, %s5619_s17 }
 0x989   :  { %1545 = vrot.lane.b32.xlu1 %v5866_v11, %s5620_s10 }
 0x992   :  { %1625 = vrot.lane.b32.xlu0 %v5873_v15, %s5619_s17 }
 0x996   :  { %1623 = vrot.lane.b32.xlu0 %v5873_v15, %s5620_s10 }
 0x9f9   :  { %v1388_v45 = vpop.xlane.xlu1 %1387 }
 0x9fa   :  { %5034 = vrcp.f32 %v1388_v45 }
 0x9fd   :  { %v1470_v46 = vpop.permute.xlu1 %1469 }
 0x9fe   :  { %4781 = vmatpush3.msra.mxu0 %v1470_v46 }
 0x9ff   :  { %4790 = vmatprep.subr.mxu0 %v5612_v40 }
 0xa01   :  { %v1548_v53 = vpop.permute.xlu1 %1547 }
 0xa05   :  { %v1385_v47 = vpop.xlane.xlu0 %1384  ;;  %v1546_v55 = vpop.permute.xlu1 %1545 }
 0xa06   :  { %5036 = vrcp.f32 %v1385_v47 }
 0xa07   :  { %v5035_v48 = vpop.eup %5034 }
 0xa08   :  { %v1392_v49 = vmul.f32 %v5035_v48, %v5031_v39 }
 0xa09   :  { %v1626_v51 = vpop.permute.xlu0 %1625 }
 0xa0a   :  { %4783 = vmatmul.mubr.msk.f32.vlgmr.msra.gmra.mxu0 %vm714_vm3, %v1392_v49 }
 0xa0b   :  { %4791 = vmatpush3.xpose.msk.msra.mxu0 %vm562_vm2, %v1626_v51  ;;  %4792 = vmatprep.mubr.msk.f32.mxu0 %vm5613_vm1, %v5612_v40 }
 0xa0c   :  { %4800 = vmatprep.subr.mxu0 %v5612_v40 }
 0xa0d   :  { %v1624_v11 = vpop.permute.xlu0 %1623 }
 0xa0e   :  { %4793 = vmatmul.mubr.msk.f32.vlgmr.msra.gmra.mxu0 %vm562_vm2, %v1624_v11  ;;  %v4506_v11 = vld [vmem:[#allocation8] ss:$0 sm:$0xff] }
 0xa0f   :  { %4802 = vmatprep.mubr.msk.f32.mxu0 %vm5613_vm1, %v5612_v40 }
 0xa13   :  { %v5037_v15 = vpop.eup %5036 }
 0xa14   :  { %v1391_v54 = vmul.f32 %v5037_v15, %v5033_v42 }
 0xa16   :  { %4778 = vmatmul.mubr.msk.f32.vlgmr.msra.gmra.mxu1 %vm714_vm3, %v1391_v54 }
 0xa17   :  { %4786 = vmatpush3.xpose.msk.msra.mxu1 %vm562_vm2, %v1548_v53  ;;  %4787 = vmatprep.mubr.msk.f32.mxu1 %vm5613_vm1, %v5612_v40 }
 0xa18   :  { %4795 = vmatprep.subr.mxu1 %v5612_v40 }
 0xa1a   :  { %4788 = vmatmul.mubr.msk.f32.vlgmr.msra.gmra.mxu1 %vm562_vm2, %v1546_v55 }
 0xa1b   :  { %4797 = vmatprep.mubr.msk.f32.mxu1 %vm5613_vm1, %v5612_v40 }
 0xaca   :  { %v1541_v56 = vpop.f32.mrf.mxu0 }
 0xacc   :  { %v4784_v57 = vpop.f32.mrf.mxu0 }
 0xace   :  { %v1697_v58 = vpop.f32.mrf.mxu0 }
 0xacf   :  { %v1704_v59 = vsel %vm714_vm3, %v1697_v58, -inf }
 0xad0   :  { %1705 = vmax.xlane.f32.xlu0 %v1704_v59  ;;  %v4794_v60 = vpop.f32.mrf.mxu0 }
 0xad6   :  { %v1465_v61 = vpop.f32.mrf.mxu1 }
 0xad8   :  { %v4779_v62 = vpop.f32.mrf.mxu1 }
 0xada   :  { %v1619_v63 = vpop.f32.mrf.mxu1 }
 0xadb   :  { %v1701_v0 = vsel %vm714_vm3, %v1619_v63, -inf }
 0xadc   :  { %1702 = vmax.xlane.f32.xlu1 %v1701_v0  ;;  %v4789_v1 = vpop.f32.mrf.mxu1 }
 0xb59   :  { %v1706_v3 = vpop.xlane.xlu0 %1705 }
 0xb5a   :  { %v1708_v5 = vsub.f32 %v1697_v58, %v1706_v3  ;;  %v2064_v3 = vld [vmem:[%s6443_s11 + $0x78] sm:$0xff] }
 0xb5c   :  { %v1711_v8 = vmul.f32 1.442695, %v1708_v5  ;;  %v2063_v5 = vld [vmem:[%s6443_s11 + $0x70] sm:$0xff] }
 0xb5e   :  { %5038 = vpow2.f32 %v1711_v8  ;;  %v2062_v8 = vld [vmem:[%s6443_s11 + $0x68] sm:$0xff] }
 0xb65   :  { %v1703_v9 = vpop.xlane.xlu1 %1702 }
 0xb66   :  { %v1707_v10 = vsub.f32 %v1619_v63, %v1703_v9  ;;  %v2061_v9 = vld [vmem:[%s6443_s11 + $0x60] sm:$0xff] }
 0xb68   :  { %v1709_v12 = vmul.f32 1.442695, %v1707_v10  ;;  %v2060_v10 = vld [vmem:[%s6443_s11 + $0x58] sm:$0xff] }
 0xb6a   :  { %5040 = vpow2.f32 %v1709_v12  ;;  %v2059_v12 = vld [vmem:[%s6443_s11 + $0x50] sm:$0xff] }
 0xb6b   :  { %v5039_v14 = vpop.eup %5038 }
 0xb6c   :  { %v1716_v16 = vsel %vm714_vm3, %v5039_v14, 0.0 }
 0xb6d   :  { %1717 = vadd.xlane.f32.xlu1 %v1716_v16  ;;  %v2057_v16 = vld [vmem:[%s6443_s11 + $0x40] sm:$0xff] }
 0xb77   :  { %v5041_v17 = vpop.eup %5040 }
 0xb78   :  { %v1713_v18 = vsel %vm714_vm3, %v5041_v17, 0.0 }
 0xb79   :  { %1714 = vadd.xlane.f32.xlu0 %v1713_v18  ;;  %v2055_v18 = vld [vmem:[%s6443_s11 + $0x30] sm:$0xff] }
 0xb7e   :  { %1799 = vrot.lane.b32.xlu1 %v5909_v43, %s5620_s10 }
 0xb82   :  { %1877 = vrot.lane.b32.xlu1 %v5965_v27, %s5619_s17  ;;  %v1912_v27 = vld [vmem:[%s6442_s8 + $0x28] sm:$0xff] }
 0xb86   :  { %1885 = vrot.lane.b32.xlu1 %v1465_v61, %s5617_s14 }
 0xb8f   :  { %1723 = vrot.lane.b32.xlu0 %v5869_v13, %s5620_s10 }
 0xb93   :  { %1879 = vrot.lane.b32.xlu0 %v5962_v22, %s5619_s17 }
 0xb97   :  { %1887 = vrot.lane.b32.xlu0 %v1541_v56, %s5617_s14 }
 0xbf6   :  { %v1718_v19 = vpop.xlane.xlu1 %1717 }
 0xbf7   :  { %5042 = vrcp.f32 %v1718_v19  ;;  %v2054_v19 = vld [vmem:[%s6443_s11 + $0x28] sm:$0xff] }
 0xbfa   :  { %v1800_v20 = vpop.permute.xlu1 %1799 }
 0xbfb   :  { %4801 = vmatpush3.msra.mxu0 %v1800_v20  ;;  %v2053_v20 = vld [vmem:[%s6443_s11 + $0x20] sm:$0xff] }
 0xbfc   :  { %2099 = vmatprep.subr.mxu0 %v2064_v3  ;;  %v2189_v3 = vld [vmem:[%s6444_s12 + $0x8] sm:$0xff] }
 0xbfe   :  { %v1878_v38 = vpop.permute.xlu1 %1877 }
 0xbff   :  { %v1899_v42 = vsel %vm562_vm2, %v5925_v50, %v1878_v38 }
 0xc02   :  { %v1715_v43 = vpop.xlane.xlu0 %1714  ;;  %v1886_v41 = vpop.permute.xlu1 %1885 }
 0xc03   :  { %5044 = vrcp.f32 %v1715_v43  ;;  %v1902_v45 = vsel %vm1901_vm4, %v1899_v42, %v1886_v41  ;;  %v2052_v43 = vld [vmem:[%s6443_s11 + $0x18] sm:$0xff]  ;;  %v2218_v42 = vld [vmem:[%s6444_s12 + $0xf0] sm:$0xff] }
 0xc04   :  { %v5043_v21 = vpop.eup %5042  ;;  %v2203_v41 = vld [vmem:[%s6444_s12 + $0x78] sm:$0xff] }
 0xc05   :  { %v1722_v23 = vmul.f32 %v5043_v21, %v5039_v14  ;;  %v2058_v14 = vld [vmem:[%s6443_s11 + $0x48] sm:$0xff]  ;;  %v2051_v21 = vld [vmem:[%s6443_s11 + $0x10] sm:$0xff] }
 0xc06   :  { %v1724_v24 = vpop.permute.xlu0 %1723 }
 0xc07   :  { %4796 = vmatpush3.msra.mxu1 %v1724_v24  ;;  %4803 = vmatmul.mubr.msk.f32.vlgmr.msra.gmra.mxu0 %vm714_vm3, %v1722_v23  ;;  %v2050_v23 = vld [vmem:[%s6443_s11 + $0x8] sm:$0xff]  ;;  %v2049_v24 = vld [vmem:[%s6443_s11] sm:$0xff] }
 0xc08   :  { %2147 = vmatprep.mubr.f32.mxu0 %v5612_v40  ;;  %4805 = vmatprep.subr.mxu1 %v1914_v25 }
 0xc09   :  { %2100 = vmatpush1.msra.mxu0 %v2063_v5  ;;  %v2204_v5 = vld [vmem:[%s6444_s12 + $0x80] sm:$0xff] }
 0xc0a   :  { %v1880_v37 = vpop.permute.xlu0 %1879  ;;  %2101 = vmatprep.subr.mxu0 %v2062_v8  ;;  %v2188_v8 = vld [vmem:[%s6444_s12] sm:$0xff] }
 0xc0b   :  { %v1900_v46 = vsel %vm562_vm2, %v5927_v52, %v1880_v37  ;;  %2102 = vmatpush1.msra.mxu0 %v2061_v9  ;;  %v2065_v9 = vld [vmem:[%s6445_s27] sm:$0x3] }
 0xc0c   :  { %2103 = vmatprep.subr.mxu0 %v2060_v10  ;;  %v2070_v10 = vrot.slane %v2065_v9, %v5818_v6 }
 0xc0d   :  { %2104 = vmatpush1.msra.mxu0 %v2059_v12  ;;  %v2074_v12 = vrot.slane %v2065_v9, %v5820_v7  ;;  %v2360_v9 = vld [vmem:[%s6446_s15 + $0x60] sm:$0xff] }
 0xc0e   :  { %v1888_v39 = vpop.permute.xlu0 %1887  ;;  %2105 = vmatprep.subr.mxu0 %v2058_v14 }
 0xc0f   :  { %v1903_v48 = vsel %vm1901_vm4, %v1900_v46, %v1888_v39  ;;  %2106 = vmatpush1.msra.mxu0 %v2057_v16  ;;  %v2219_v39 = vld [vmem:[%s6444_s12 + $0xf8] sm:$0xff]  ;;  %v2201_v46 = vld [vmem:[%s6444_s12 + $0x68] sm:$0xff] }
 0xc10   :  { %v5045_v13 = vpop.eup %5044 }
 0xc11   :  { %v1721_v22 = vmul.f32 %v5045_v13, %v5041_v17  ;;  %v2056_v17 = vld [vmem:[%s6443_s11 + $0x38] sm:$0xff] }
 0xc12   :  { %2107 = vmatprep.subr.mxu0 %v2056_v17 }
 0xc13   :  { %4798 = vmatmul.mubr.msk.f32.vlgmr.msra.gmra.mxu1 %vm714_vm3, %v1721_v22  ;;  %2108 = vmatpush1.msra.mxu0 %v2055_v18 }
 0xc14   :  { %4806 = vmatpush3.msra.mxu1 %v1914_v25  ;;  %2109 = vmatprep.subr.mxu0 %v2054_v19 }
 0xc15   :  { %4807 = vmatprep.subr.mxu1 %v1913_v26  ;;  %2110 = vmatpush1.msra.mxu0 %v2053_v20 }
 0xc16   :  { %4808 = vmatpush3.msra.mxu1 %v1913_v26  ;;  %2111 = vmatprep.subr.mxu0 %v2052_v43 }
 0xc17   :  { %4809 = vmatprep.subr.mxu1 %v1912_v27  ;;  %2112 = vmatpush1.msra.mxu0 %v2051_v21 }
 0xc18   :  { %4810 = vmatpush3.msra.mxu1 %v1912_v27  ;;  %2113 = vmatprep.subr.mxu0 %v2050_v23 }
 0xc19   :  { %4811 = vmatprep.subr.mxu1 %v1911_v28  ;;  %2114 = vmatpush1.msra.mxu0 %v2049_v24 }
 0xc1a   :  { %4812 = vmatpush3.msra.mxu1 %v1911_v28 }
 0xc1b   :  { %4813 = vmatprep.subr.mxu1 %v1910_v29 }
 0xc1c   :  { %4814 = vmatpush3.msra.mxu1 %v1910_v29 }
 0xc1d   :  { %4815 = vmatprep.subr.mxu1 %v1909_v30 }
 0xc1e   :  { %4816 = vmatpush3.msra.mxu1 %v1909_v30 }
 0xc1f   :  { %4817 = vmatprep.subr.mxu1 %v1908_v31 }
 0xc20   :  { %4818 = vmatpush3.msra.mxu1 %v1908_v31 }
 0xc21   :  { %4819 = vmatprep.subr.mxu1 %v1907_v33 }
 0xc22   :  { %4820 = vmatpush3.msra.mxu1 %v1907_v33  ;;  %v4509_v33 = vld [vmem:[#allocation10] ss:$0 sm:$0xff] }
 0xc23   :  { %4598 = vmatprep.subr.mxu1 %v2219_v39 }
 0xcc7   :  { %v1871_v32 = vpop.f32.mrf.mxu0 }
 0xcc8   :  { %1895 = vrot.lane.b32.xlu0 %v1871_v32, %s5615_s21 }
 0xcc9   :  { %v4804_v34 = vpop.f32.mrf.mxu0 }
 0xcd3   :  { %v1795_v35 = vpop.f32.mrf.mxu1 }
 0xcd4   :  { %1893 = vrot.lane.b32.xlu1 %v1795_v35, %s5615_s21  ;;  %v4510_v35 = vld [vmem:[#allocation11] ss:$0 sm:$0xff] }
 0xcd5   :  { %v4799_v36 = vpop.f32.mrf.mxu1 }
 0xd3a   :  { %v1896_v44 = vpop.permute.xlu0 %1895 }
 0xd3b   :  { %v1906_v51 = vsel %vm1904_vm5, %v1903_v48, %v1896_v44  ;;  %v2202_v44 = vld [vmem:[%s6444_s12 + $0x70] sm:$0xff]  ;;  %v2200_v48 = vld [vmem:[%s6444_s12 + $0x60] sm:$0xff] }
 0xd46   :  { %v1894_v47 = vpop.permute.xlu1 %1893 }
 0xd47   :  { %v1905_v49 = vsel %vm1904_vm5, %v1902_v45, %v1894_v47  ;;  %v2217_v45 = vld [vmem:[%s6444_s12 + $0xe8] sm:$0xff]  ;;  %v2216_v47 = vld [vmem:[%s6444_s12 + $0xe0] sm:$0xff] }
 0xd48   :  { %4821 = vmatprep.mubr.msk.f32.mxu1 %vm404_vm0, %v1905_v49  ;;  %v2215_v49 = vld [vmem:[%s6444_s12 + $0xd8] sm:$0xff] }
 0xd49   :  { %4822 = vmatmul.mubr.msk.f32.vlgmr.msra.gmra.mxu1 %vm404_vm0, %v1906_v51  ;;  %v2199_v51 = vld [vmem:[%s6444_s12 + $0x58] sm:$0xff] }
 0xd4a   :  { %4599 = vmatpush3.msra.mxu1 %v2203_v41 }
 0xd4b   :  { %4600 = vmatprep.subr.mxu1 %v2218_v42 }
 0xd4c   :  { %4601 = vmatpush3.msra.mxu1 %v2202_v44 }
 0xd4d   :  { %4602 = vmatprep.subr.mxu1 %v2217_v45 }
 0xd4e   :  { %4603 = vmatpush3.msra.mxu1 %v2201_v46 }
 0xd4f   :  { %4604 = vmatprep.subr.mxu1 %v2216_v47 }
 0xd50   :  { %4605 = vmatpush3.msra.mxu1 %v2200_v48 }
 0xd51   :  { %4606 = vmatprep.subr.mxu1 %v2215_v49 }
 0xd52   :  { %4607 = vmatpush3.msra.mxu1 %v2199_v51  ;;  %v4513_v51 = vld [vmem:[#allocation13] ss:$0 sm:$0xff] }
 0xe09   :  { %v4823_v50 = vpop.f32.mrf.mxu1 }
 0xe0a   :  { %v2000_v15 = vadd.f32 %v4823_v50, %v4506_v11  ;;  %v2198_v50 = vld [vmem:[%s6444_s12 + $0x50] sm:$0xff] }
 0xe0b   :  { %v1994_v53 = vpop.f32.mrf.mxu1 }
 0xe0c   :  { %v1995_v54 = vadd.f32 %v4506_v11, %v1994_v53  ;;  %v2004_v55 = vadd.f32 %v2000_v15, %v5853_v4  ;;  %v2214_v11 = vld [vmem:[%s6444_s12 + $0xd0] sm:$0xff]  ;;  %v2213_v15 = vld [vmem:[%s6444_s12 + $0xc8] sm:$0xff] }
 0xe0d   :  { %4608 = vmatprep.subr.mxu1 %v2214_v11  ;;  %v2197_v53 = vld [vmem:[%s6444_s12 + $0x48] sm:$0xff] }
 0xe0e   :  { %v2010_v52 = vsel %vm404_vm0, %v2004_v55, 0.0  ;;  %v2003_v56 = vadd.f32 %v1995_v54, %v5848_v2  ;;  %4609 = vmatpush3.msra.mxu1 %v2198_v50  ;;  %v2212_v54 = vld [vmem:[%s6444_s12 + $0xc0] sm:$0xff] }
 0xe0f   :  { %2011 = vadd.xlane.f32.xlu0 %v2010_v52  ;;  %4610 = vmatprep.subr.mxu1 %v2213_v15  ;;  %v2211_v52 = vld [vmem:[%s6444_s12 + $0xb8] sm:$0xff] }
 0xe10   :  { %v2007_v57 = vsel %vm404_vm0, %v2003_v56, 0.0  ;;  %4611 = vmatpush3.msra.mxu1 %v2197_v53 }
 0xe11   :  { %2008 = vadd.xlane.f32.xlu1 %v2007_v57  ;;  %4612 = vmatprep.subr.mxu1 %v2212_v54  ;;  %v2210_v57 = vld [vmem:[%s6444_s12 + $0xb0] sm:$0xff] }
 0xe98   :  { %v2012_v58 = vpop.xlane.xlu0 %2011 }
 0xe99   :  { %v2014_v59 = vmul.f32 0.015625, %v2012_v58  ;;  %v2194_v58 = vld [vmem:[%s6444_s12 + $0x30] sm:$0xff] }
 0xe9a   :  { %v2009_v60 = vpop.xlane.xlu1 %2008 }
 0xe9b   :  { %v2016_v61 = vsub.f32 %v2004_v55, %v2014_v59  ;;  %v2013_v62 = vmul.f32 0.015625, %v2009_v60  ;;  %v2196_v55 = vld [vmem:[%s6444_s12 + $0x40] sm:$0xff]  ;;  %v2209_v59 = vld [vmem:[%s6444_s12 + $0xa8] sm:$0xff] }
 0xe9c   :  { %4613 = vmatpush3.msra.mxu1 %v2196_v55  ;;  %v2193_v60 = vld [vmem:[%s6444_s12 + $0x28] sm:$0xff] }
 0xe9d   :  { %v2015_v63 = vsub.f32 %v2003_v56, %v2013_v62  ;;  %v2018_v4 = vmul.f32 %v2016_v61, %v2016_v61  ;;  %4614 = vmatprep.subr.mxu1 %v2211_v52  ;;  %v2195_v56 = vld [vmem:[%s6444_s12 + $0x38] sm:$0xff]  ;;  %v2192_v62 = vld [vmem:[%s6444_s12 + $0x20] sm:$0xff] }
 0xe9e   :  { %4615 = vmatpush3.msra.mxu1 %v2195_v56 }
 0xe9f   :  { %v2022_v0 = vsel %vm404_vm0, %v2018_v4, 0.0  ;;  %v2017_v2 = vmul.f32 %v2015_v63, %v2015_v63  ;;  %4616 = vmatprep.subr.mxu1 %v2210_v57  ;;  %v2191_v4 = vld [vmem:[%s6444_s12 + $0x18] sm:$0xff] }
 0xea0   :  { %2023 = vadd.xlane.f32.xlu1 %v2022_v0  ;;  %4617 = vmatpush3.msra.mxu1 %v2194_v58  ;;  %v2206_v0 = vld [vmem:[%s6444_s12 + $0x90] sm:$0xff] }
 0xea1   :  { %v2019_v1 = vsel %vm404_vm0, %v2017_v2, 0.0  ;;  %4618 = vmatprep.subr.mxu1 %v2209_v59  ;;  %v2190_v2 = vld [vmem:[%s6444_s12 + $0x10] sm:$0xff] }
 0xea2   :  { %2020 = vadd.xlane.f32.xlu0 %v2019_v1  ;;  %4619 = vmatpush3.msra.mxu1 %v2193_v60  ;;  %v2205_v1 = vld [vmem:[%s6444_s12 + $0x88] sm:$0xff] }
 0xf29   :  { %v2024_v13 = vpop.xlane.xlu1 %2023 }
 0xf2a   :  { %v2026_v22 = vmul.f32 0.015625, %v2024_v13 }
 0xf2b   :  { %v2021_v25 = vpop.xlane.xlu0 %2020 }
 0xf2c   :  { %v2028_v26 = vadd.f32 1e-05, %v2026_v22  ;;  %v2025_v27 = vmul.f32 0.015625, %v2021_v25 }
 0xf2e   :  { %5046 = vrsqrt.f32 %v2028_v26  ;;  %v2027_v28 = vadd.f32 1e-05, %v2025_v27 }
 0xf30   :  { %5048 = vrsqrt.f32 %v2027_v28 }
 0xf3b   :  { %v5047_v29 = vpop.eup %5046 }
 0xf3c   :  { %v2032_v32 = vmul.f32 %v5047_v29, %v2016_v61  ;;  %v2208_v61 = vld [vmem:[%s6444_s12 + $0xa0] sm:$0xff] }
 0xf3d   :  { %v5049_v30 = vpop.eup %5048  ;;  %4620 = vmatprep.subr.mxu1 %v2208_v61 }
 0xf3e   :  { %v2031_v31 = vmul.f32 %v5049_v30, %v2015_v63  ;;  %v2040_v37 = vmul.f32 %v4509_v33, %v2032_v32  ;;  %4621 = vmatpush3.msra.mxu1 %v2192_v62  ;;  %v2207_v63 = vld [vmem:[%s6444_s12 + $0x98] sm:$0xff] }
 0xf3f   :  { %4622 = vmatprep.subr.mxu1 %v2207_v63 }
 0xf40   :  { %v2039_v34 = vmul.f32 %v4509_v33, %v2031_v31  ;;  %v6064_v38 = vadd.f32 %v4510_v35, %v2040_v37  ;;  %4623 = vmatpush3.msra.mxu1 %v2191_v4 }
 0xf41   :  { %4624 = vmatprep.subr.mxu1 %v2206_v0 }
 0xf42   :  { %v6059_v36 = vadd.f32 %v4510_v35, %v2039_v34  ;;  %4625 = vmatpush3.msra.mxu1 %v2190_v2 }
 0xf43   :  { %4626 = vmatprep.subr.mxu1 %v2205_v1 }
 0xf44   :  { %4511 = vmatmul.mubr.msk.f32.vlgmr.msra.gmra.mxu0 %vm404_vm0, %v6059_v36  ;;  %4627 = vmatpush3.msra.mxu1 %v2189_v3  ;;  %v2363_v3 = vld [vmem:[%s6446_s15 + $0x78] sm:$0xff] }
 0xf45   :  { %2153 = vmatprep.mubr.f32.mxu0 %v5612_v40  ;;  %4628 = vmatprep.subr.mxu1 %v2204_v5  ;;  %v2362_v5 = vld [vmem:[%s6446_s15 + $0x70] sm:$0xff] }
 0xf46   :  { %4629 = vmatpush3.msra.mxu1 %v2188_v8  ;;  %2398 = vmatprep.subr.mxu0 %v2363_v3  ;;  %v2361_v8 = vld [vmem:[%s6446_s15 + $0x68] sm:$0xff] }
 0xf47   :  { %4844 = vmatprep.subr.mxu1 %v5612_v40  ;;  %2399 = vmatpush1.msra.mxu0 %v2362_v5 }
 0xf48   :  { %4512 = vmatmul.mubr.msk.f32.gmra.mxu0 %vm404_vm0, %v6064_v38  ;;  %2400 = vmatprep.subr.mxu0 %v2361_v8 }
 0xf49   :  { %2446 = vmatprep.mubr.f32.mxu0 %v5612_v40  ;;  %2401 = vmatpush1.msra.mxu0 %v2360_v9 }
0x1004   :  { %v2149_v14 = vpop.f32.mrf.mxu0 }
0x1005   :  { %v2150_v16 = vadd.f32 %v2149_v14, %v2070_v10  ;;  %v2357_v14 = vld [vmem:[%s6446_s15 + $0x48] sm:$0xff] }
0x1006   :  { %v2151_v17 = vpop.f32.mrf.mxu0 }
0x1007   :  { %v2160_v18 = vsub.f32 0.0, %v2150_v16  ;;  %v2152_v19 = vadd.f32 %v2151_v17, %v2074_v12  ;;  %v2355_v17 = vld [vmem:[%s6446_s15 + $0x38] sm:$0xff] }
0x1008   :  { %v2155_v20 = vpop.f32.mrf.mxu0 }
0x1009   :  { %v2164_v43 = vmul.f32 1.442695, %v2160_v18  ;;  %v2161_v21 = vsub.f32 0.0, %v2152_v19  ;;  %v2156_v23 = vadd.f32 %v2155_v20, %v2070_v10  ;;  %v2359_v10 = vld [vmem:[%s6446_s15 + $0x58] sm:$0xff]  ;;  %v2354_v18 = vld [vmem:[%s6446_s15 + $0x30] sm:$0xff]  ;;  %v2352_v20 = vld [vmem:[%s6446_s15 + $0x20] sm:$0xff] }
0x100a   :  { %v2157_v24 = vpop.f32.mrf.mxu0  ;;  %2402 = vmatprep.subr.mxu0 %v2359_v10 }
0x100b   :  { %5050 = vpow2.f32 %v2164_v43  ;;  %v2166_v13 = vmul.f32 1.442695, %v2161_v21  ;;  %v2162_v22 = vsub.f32 0.0, %v2156_v23  ;;  %v2158_v25 = vadd.f32 %v2157_v24, %v2074_v12  ;;  %v2358_v12 = vld [vmem:[%s6446_s15 + $0x50] sm:$0xff]  ;;  %v2351_v43 = vld [vmem:[%s6446_s15 + $0x18] sm:$0xff]  ;;  %v2348_v24 = vld [vmem:[%s6446_s15] sm:$0xff] }
0x100c   :  { %2403 = vmatpush1.msra.mxu0 %v2358_v12  ;;  %v2350_v21 = vld [vmem:[%s6446_s15 + $0x10] sm:$0xff] }
0x100d   :  { %5052 = vpow2.f32 %v2166_v13  ;;  %v2168_v26 = vmul.f32 1.442695, %v2162_v22  ;;  %v2163_v27 = vsub.f32 0.0, %v2158_v25  ;;  %2404 = vmatprep.subr.mxu0 %v2357_v14 }
0x100f   :  { %5054 = vpow2.f32 %v2168_v26  ;;  %v2170_v28 = vmul.f32 1.442695, %v2163_v27 }
0x1011   :  { %5056 = vpow2.f32 %v2170_v28 }
0x1018   :  { %v5051_v29 = vpop.eup %5050 }
0x1019   :  { %v2172_v30 = vadd.f32 1.0, %v5051_v29 }
0x101a   :  { %v5053_v31 = vpop.eup %5052 }
0x101b   :  { %v2173_v32 = vadd.f32 1.0, %v5053_v31  ;;  %5058 = vrcp.f32 %v2172_v30  ;;  %v4514_v30 = vld [vmem:[#allocation14] ss:$0 sm:$0xff] }
0x101c   :  { %v5055_v33 = vpop.eup %5054 }
0x101d   :  { %5060 = vrcp.f32 %v2173_v32  ;;  %v2174_v34 = vadd.f32 1.0, %v5055_v33  ;;  %v4515_v32 = vld [vmem:[#allocation16] ss:$0 sm:$0xff] }
0x101e   :  { %v5057_v35 = vpop.eup %5056 }
0x101f   :  { %v2175_v37 = vadd.f32 1.0, %v5057_v35  ;;  %5062 = vrcp.f32 %v2174_v34 }
0x1021   :  { %5064 = vrcp.f32 %v2175_v37 }
0x1028   :  { %v5059_v39 = vpop.eup %5058 }
0x1029   :  { %v2184_v44 = vmul.f32 %v5059_v39, %v2150_v16  ;;  %v2356_v16 = vld [vmem:[%s6446_s15 + $0x40] sm:$0xff] }
0x102a   :  { %v5061_v41 = vpop.eup %5060  ;;  %2405 = vmatpush1.msra.mxu0 %v2356_v16 }
0x102b   :  { %v2185_v42 = vmul.f32 %v5061_v41, %v2152_v19  ;;  %2406 = vmatprep.subr.mxu0 %v2355_v17  ;;  %v2353_v19 = vld [vmem:[%s6446_s15 + $0x28] sm:$0xff] }
0x102c   :  { %v5063_v45 = vpop.eup %5062  ;;  %2407 = vmatpush1.msra.mxu0 %v2354_v18 }
0x102d   :  { %2291 = vmatprep.mubr.f32.mxu1 %v2185_v42  ;;  %v2186_v48 = vmul.f32 %v5063_v45, %v2156_v23  ;;  %2408 = vmatprep.subr.mxu0 %v2353_v19  ;;  %v2349_v23 = vld [vmem:[%s6446_s15 + $0x8] sm:$0xff]  ;;  %v2364_v42 = vld [vmem:[%s6447_s25] sm:$0x3] }
0x102e   :  { %v5065_v46 = vpop.eup %5064  ;;  %2292 = vmatmul.mubr.f32.vlgmr.msra.gmra.mxu1 %v2184_v44  ;;  %2409 = vmatpush1.msra.mxu0 %v2352_v20  ;;  %v2369_v44 = vrot.slane %v2364_v42, %v5818_v6 }
0x102f   :  { %v2187_v47 = vmul.f32 %v5065_v46, %v2158_v25  ;;  %2410 = vmatprep.subr.mxu0 %v2351_v43 }
0x1030   :  { %2411 = vmatpush1.msra.mxu0 %v2350_v21 }
0x1031   :  { %2296 = vmatprep.mubr.f32.mxu1 %v2187_v47  ;;  %2412 = vmatprep.subr.mxu0 %v2349_v23 }
0x1032   :  { %2297 = vmatmul.mubr.f32.gmra.mxu1 %v2186_v48  ;;  %2413 = vmatpush1.msra.mxu0 %v2348_v24 }
0x1033   :  { %4846 = vmatprep.mubr.msk.f32.mxu1 %vm5613_vm1, %v5612_v40  ;;  %4824 = vmatprep.subr.mxu0 %v5612_v40 }
0x10ee   :  { %v4630_v49 = vpop.f32.mrf.mxu1 }
0x10f0   :  { %v4631_v11 = vpop.f32.mrf.mxu1 }
0x10f1   :  { %v4632_v50 = vadd.f32 %v4631_v11, %v4630_v49  ;;  %v2373_v11 = vrot.slane %v2364_v42, %v5820_v7 }
0x10f2   :  { %v4633_v15 = vpop.f32.mrf.mxu1 }
0x10f3   :  { %v2294_v53 = vadd.f32 %v4632_v50, %v4513_v51 }
0x10f4   :  { %v4634_v54 = vpop.f32.mrf.mxu1 }
0x10f5   :  { %v4635_v55 = vadd.f32 %v4634_v54, %v4633_v15  ;;  %v2302_v52 = vadd.f32 %v2294_v53, %v6059_v36 }
0x10f7   :  { %v2299_v56 = vadd.f32 %v4635_v55, %v4513_v51  ;;  %v2306_v57 = vsel %vm404_vm0, %v2302_v52, 0.0 }
0x10f8   :  { %2307 = vadd.xlane.f32.xlu0 %v2306_v57 }
0x10f9   :  { %v2303_v58 = vadd.f32 %v2299_v56, %v6064_v38 }
0x10fb   :  { %v2309_v59 = vsel %vm404_vm0, %v2303_v58, 0.0 }
0x10fc   :  { %2310 = vadd.xlane.f32.xlu1 %v2309_v59 }
0x1181   :  { %v2308_v60 = vpop.xlane.xlu0 %2307 }
0x1182   :  { %v2312_v61 = vmul.f32 0.015625, %v2308_v60 }
0x1184   :  { %v2314_v62 = vsub.f32 %v2302_v52, %v2312_v61 }
0x1185   :  { %v2311_v63 = vpop.xlane.xlu1 %2310 }
0x1186   :  { %v2313_v4 = vmul.f32 0.015625, %v2311_v63  ;;  %v2316_v36 = vmul.f32 %v2314_v62, %v2314_v62 }
0x1188   :  { %v2315_v0 = vsub.f32 %v2303_v58, %v2313_v4  ;;  %v2318_v2 = vsel %vm404_vm0, %v2316_v36, 0.0 }
0x1189   :  { %2319 = vadd.xlane.f32.xlu0 %v2318_v2 }
0x118a   :  { %v2317_v38 = vmul.f32 %v2315_v0, %v2315_v0 }
0x118c   :  { %v2321_v1 = vsel %vm404_vm0, %v2317_v38, 0.0 }
0x118d   :  { %2322 = vadd.xlane.f32.xlu1 %v2321_v1 }
0x1212   :  { %v2320_v13 = vpop.xlane.xlu0 %2319 }
0x1213   :  { %v2324_v22 = vmul.f32 0.015625, %v2320_v13 }
0x1215   :  { %v2326_v25 = vadd.f32 1e-05, %v2324_v22 }
0x1216   :  { %v2323_v26 = vpop.xlane.xlu1 %2322 }
0x1217   :  { %5066 = vrsqrt.f32 %v2326_v25  ;;  %v2325_v27 = vmul.f32 0.015625, %v2323_v26 }
0x1219   :  { %v2327_v28 = vadd.f32 1e-05, %v2325_v27 }
0x121b   :  { %5068 = vrsqrt.f32 %v2327_v28 }
0x1224   :  { %v5067_v29 = vpop.eup %5066 }
0x1225   :  { %v2330_v31 = vmul.f32 %v5067_v29, %v2314_v62 }
0x1227   :  { %v2338_v33 = vmul.f32 %v4514_v30, %v2330_v31 }
0x1228   :  { %v5069_v34 = vpop.eup %5068 }
0x1229   :  { %v6130_v35 = vadd.f32 %v4515_v32, %v2338_v33  ;;  %v2331_v37 = vmul.f32 %v5069_v34, %v2315_v0 }
0x122b   :  { %4516 = vmatmul.mubr.msk.f32.vlgmr.msra.gmra.mxu0 %vm404_vm0, %v6130_v35  ;;  %v2339_v39 = vmul.f32 %v4514_v30, %v2331_v37 }
0x122c   :  { %2452 = vmatprep.mubr.f32.mxu0 %v5612_v40 }
0x122d   :  { %v6135_v41 = vadd.f32 %v4515_v32, %v2339_v39 }
0x122f   :  { %4517 = vmatmul.mubr.msk.f32.gmra.mxu0 %vm404_vm0, %v6135_v41 }
0x1230   :  { %4826 = vmatprep.mubr.msk.f32.mxu0 %vm5613_vm1, %v5612_v40 }
0x12eb   :  { %v2448_v45 = vpop.f32.mrf.mxu0 }
0x12ec   :  { %v6143_v46 = vadd.f32 %v2448_v45, %v2369_v44 }
0x12ed   :  { %v2450_v47 = vpop.f32.mrf.mxu0 }
0x12ee   :  { %2460 = vrot.lane.b32.xlu0 %v6143_v46, %s5614_s24  ;;  %v6160_v15 = vadd.f32 %v2450_v47, %v2373_v11 }
0x12ef   :  { %v2454_v48 = vpop.f32.mrf.mxu0 }
0x12f0   :  { %v6147_v49 = vadd.f32 %v2454_v48, %v2369_v44 }
0x12f1   :  { %v2456_v53 = vpop.f32.mrf.mxu0 }
0x12f2   :  { %2537 = vrot.lane.b32.xlu1 %v6147_v49, %s5614_s24  ;;  %v6185_v14 = vadd.f32 %v2456_v53, %v2373_v11 }
0x1360   :  { %v2461_v51 = vpop.permute.xlu0 %2460 }
0x1361   :  { %4825 = vmatpush3.xpose.msk.msra.mxu0 %vm562_vm2, %v2461_v51 }
0x1362   :  { %4829 = vmatprep.subr.mxu0 %v5612_v40 }
0x1364   :  { %4827 = vmatmul.mubr.msk.f32.vlgmr.msra.gmra.mxu0 %vm562_vm2, %v6143_v46  ;;  %v2538_v50 = vpop.permute.xlu1 %2537 }
0x1365   :  { %4830 = vmatpush3.xpose.msk.msra.mxu0 %vm562_vm2, %v2538_v50  ;;  %4831 = vmatprep.mubr.msk.f32.mxu0 %vm5613_vm1, %v5612_v40 }
0x1366   :  { %4834 = vmatprep.subr.mxu0 %v5612_v40 }
0x1368   :  { %4832 = vmatmul.mubr.msk.f32.vlgmr.msra.gmra.mxu0 %vm562_vm2, %v6147_v49 }
0x1369   :  { %4835 = vmatpush3.msra.mxu0 %v6160_v15  ;;  %4836 = vmatprep.mubr.msk.f32.mxu0 %vm5613_vm1, %v5612_v40 }
0x136a   :  { %4839 = vmatprep.subr.mxu0 %v5612_v40 }
0x1424   :  { %v2532_v54 = vpop.f32.mrf.mxu0 }
0x1425   :  { %v2613_v55 = vsel %vm714_vm3, %v2532_v54, -inf }
0x1426   :  { %v4828_v52 = vpop.f32.mrf.mxu0  ;;  %2614 = vmax.xlane.f32.xlu1 %v2613_v55 }
0x1428   :  { %v2609_v56 = vpop.f32.mrf.mxu0 }
0x1429   :  { %v2616_v57 = vsel %vm714_vm3, %v2609_v56, -inf }
0x142a   :  { %2617 = vmax.xlane.f32.xlu0 %v2616_v57  ;;  %v4833_v58 = vpop.f32.mrf.mxu0 }
0x1437   :  { %2861 = vrot.lane.b32.xlu1 %v6147_v49, %s5615_s21 }
0x14af   :  { %v2615_v59 = vpop.xlane.xlu1 %2614 }
0x14b0   :  { %v2619_v60 = vsub.f32 %v2532_v54, %v2615_v59 }
0x14b2   :  { %v2621_v61 = vmul.f32 1.442695, %v2619_v60 }
0x14b3   :  { %v2618_v62 = vpop.xlane.xlu0 %2617  ;;  %v2862_v1 = vpop.permute.xlu1 %2861 }
0x14b4   :  { %5070 = vpow2.f32 %v2621_v61  ;;  %v2620_v63 = vsub.f32 %v2609_v56, %v2618_v62 }
0x14b6   :  { %v2623_v4 = vmul.f32 1.442695, %v2620_v63 }
0x14b8   :  { %5072 = vpow2.f32 %v2623_v4 }
0x14c1   :  { %v5071_v36 = vpop.eup %5070 }
0x14c2   :  { %v2625_v0 = vsel %vm714_vm3, %v5071_v36, 0.0 }
0x14c3   :  { %2626 = vadd.xlane.f32.xlu0 %v2625_v0 }
0x14c5   :  { %v5073_v2 = vpop.eup %5072 }
0x14c6   :  { %v2628_v38 = vsel %vm714_vm3, %v5073_v2, 0.0 }
0x14c7   :  { %2629 = vadd.xlane.f32.xlu1 %v2628_v38 }
0x14d8   :  { %2781 = vrot.lane.b32.xlu1 %v6143_v46, %s5616_s7 }
0x14d9   :  { %2783 = vrot.lane.b32.xlu0 %v6143_v46, %s5615_s21 }
0x14dd   :  { %2859 = vrot.lane.b32.xlu0 %v6147_v49, %s5616_s7 }
0x154c   :  { %v2627_v3 = vpop.xlane.xlu0 %2626 }
0x154d   :  { %5074 = vrcp.f32 %v2627_v3 }
0x1550   :  { %v2784_v5 = vpop.permute.xlu0 %2783  ;;  %v2630_v8 = vpop.xlane.xlu1 %2629 }
0x1551   :  { %5076 = vrcp.f32 %v2630_v8  ;;  %4845 = vmatpush3.xpose.msk.msra.mxu1 %vm562_vm2, %v2784_v5 }
0x1552   :  { %4854 = vmatprep.subr.mxu1 %v5612_v40 }
0x1554   :  { %v2782_v9 = vpop.permute.xlu1 %2781  ;;  %v2860_v18 = vpop.permute.xlu0 %2859 }
0x1555   :  { %4847 = vmatmul.mubr.msk.f32.vlgmr.msra.gmra.mxu1 %vm562_vm2, %v2782_v9 }
0x1556   :  { %4856 = vmatprep.mubr.msk.f32.mxu1 %vm5613_vm1, %v5612_v40 }
0x155a   :  { %v5075_v10 = vpop.eup %5074 }
0x155b   :  { %v2633_v12 = vmul.f32 %v5075_v10, %v5071_v36 }
0x155d   :  { %4837 = vmatmul.mubr.msk.f32.vlgmr.msra.gmra.mxu0 %vm714_vm3, %v2633_v12 }
0x155e   :  { %v5077_v16 = vpop.eup %5076  ;;  %4840 = vmatpush3.msra.mxu0 %v6185_v14  ;;  %4841 = vmatprep.mubr.msk.f32.mxu0 %vm5613_vm1, %v5612_v40 }
0x155f   :  { %4849 = vmatprep.subr.mxu0 %v5612_v40  ;;  %v2634_v17 = vmul.f32 %v5077_v16, %v5073_v2 }
0x1561   :  { %4842 = vmatmul.mubr.msk.f32.vlgmr.msra.gmra.mxu0 %vm714_vm3, %v2634_v17 }
0x1562   :  { %4850 = vmatpush3.xpose.msk.msra.mxu0 %vm562_vm2, %v2862_v1  ;;  %4851 = vmatprep.mubr.msk.f32.mxu0 %vm5613_vm1, %v5612_v40 }
0x1563   :  { %4859 = vmatprep.subr.mxu0 %v5612_v40 }
0x1565   :  { %4852 = vmatmul.mubr.msk.f32.vlgmr.msra.gmra.mxu0 %vm562_vm2, %v2860_v18 }
0x1566   :  { %4861 = vmatprep.mubr.msk.f32.mxu0 %vm5613_vm1, %v5612_v40 }
0x1615   :  { %v2855_v19 = vpop.f32.mrf.mxu1 }
0x1616   :  { %v2937_v20 = vsel %vm714_vm3, %v2855_v19, -inf }
0x1617   :  { %2938 = vmax.xlane.f32.xlu1 %v2937_v20  ;;  %v4848_v43 = vpop.f32.mrf.mxu1 }
0x161d   :  { %v6201_v21 = vpop.f32.mrf.mxu0 }
0x161f   :  { %v4838_v23 = vpop.f32.mrf.mxu0 }
0x1621   :  { %v6203_v24 = vpop.f32.mrf.mxu0 }
0x1623   :  { %v4843_v13 = vpop.f32.mrf.mxu0 }
0x1625   :  { %v2933_v22 = vpop.f32.mrf.mxu0 }
0x1626   :  { %v2940_v25 = vsel %vm714_vm3, %v2933_v22, -inf }
0x1627   :  { %2941 = vmax.xlane.f32.xlu0 %v2940_v25  ;;  %v4853_v26 = vpop.f32.mrf.mxu0 }
0x1628   :  { %3037 = vrot.lane.b32.xlu1 %v6185_v14, %s5616_s7 }
0x162c   :  { %3115 = vrot.lane.b32.xlu1 %v6143_v46, %s5617_s14 }
0x16a0   :  { %v2939_v27 = vpop.xlane.xlu1 %2938 }
0x16a1   :  { %v2943_v28 = vsub.f32 %v2855_v19, %v2939_v27 }
0x16a3   :  { %v2945_v29 = vmul.f32 1.442695, %v2943_v28 }
0x16a4   :  { %v3038_v30 = vpop.permute.xlu1 %3037 }
0x16a5   :  { %5078 = vpow2.f32 %v2945_v29  ;;  %4860 = vmatpush3.msra.mxu0 %v3038_v30 }
0x16a6   :  { %4869 = vmatprep.subr.mxu0 %v5612_v40 }
0x16a8   :  { %v3116_v47 = vpop.permute.xlu1 %3115 }
0x16b0   :  { %v2942_v31 = vpop.xlane.xlu0 %2941 }
0x16b1   :  { %v2944_v32 = vsub.f32 %v2933_v22, %v2942_v31 }
0x16b2   :  { %v5079_v33 = vpop.eup %5078 }
0x16b3   :  { %v2947_v34 = vmul.f32 1.442695, %v2944_v32  ;;  %v2949_v37 = vsel %vm714_vm3, %v5079_v33, 0.0 }
0x16b4   :  { %2950 = vadd.xlane.f32.xlu0 %v2949_v37 }
0x16b5   :  { %5080 = vpow2.f32 %v2947_v34 }
0x16c2   :  { %v5081_v39 = vpop.eup %5080 }
0x16c3   :  { %v2952_v42 = vsel %vm714_vm3, %v5081_v39, 0.0 }
0x16c4   :  { %2953 = vadd.xlane.f32.xlu1 %v2952_v42 }
0x16ca   :  { %2960 = vrot.lane.b32.xlu0 %v6160_v15, %s5616_s7 }
0x16ce   :  { %3193 = vrot.lane.b32.xlu0 %v6147_v49, %s5617_s14 }
0x16d2   :  { %3191 = vrot.lane.b32.xlu0 %v6147_v49, %s5618_s30 }
0x16d5   :  { %3113 = vrot.lane.b32.xlu1 %v6143_v46, %s5618_s30 }
0x173d   :  { %v2951_v44 = vpop.xlane.xlu0 %2950 }
0x173e   :  { %5082 = vrcp.f32 %v2951_v44 }
0x1741   :  { %v2961_v45 = vpop.permute.xlu0 %2960 }
0x1742   :  { %4855 = vmatpush3.msra.mxu1 %v2961_v45 }
0x1743   :  { %4864 = vmatprep.subr.mxu1 %v5612_v40 }
0x1745   :  { %v3194_v54 = vpop.permute.xlu0 %3193 }
0x1749   :  { %v3192_v52 = vpop.permute.xlu0 %3191 }
0x174b   :  { %v5083_v48 = vpop.eup %5082 }
0x174c   :  { %v2957_v51 = vmul.f32 %v5083_v48, %v5079_v33 }
0x174d   :  { %v2954_v11 = vpop.xlane.xlu1 %2953 }
0x174e   :  { %5084 = vrcp.f32 %v2954_v11  ;;  %4857 = vmatmul.mubr.msk.f32.vlgmr.msra.gmra.mxu1 %vm714_vm3, %v2957_v51 }
0x174f   :  { %4865 = vmatpush3.xpose.msk.msra.mxu1 %vm562_vm2, %v3116_v47  ;;  %4866 = vmatprep.mubr.msk.f32.mxu1 %vm5613_vm1, %v5612_v40 }
0x1750   :  { %4874 = vmatprep.subr.mxu1 %v5612_v40 }
0x1751   :  { %v3114_v50 = vpop.permute.xlu1 %3113 }
0x1752   :  { %4867 = vmatmul.mubr.msk.f32.vlgmr.msra.gmra.mxu1 %vm562_vm2, %v3114_v50 }
0x1753   :  { %4876 = vmatprep.mubr.msk.f32.mxu1 %vm5613_vm1, %v5612_v40 }
0x175b   :  { %v5085_v53 = vpop.eup %5084 }
0x175c   :  { %v2958_v55 = vmul.f32 %v5085_v53, %v5081_v39 }
0x175e   :  { %4862 = vmatmul.mubr.msk.f32.vlgmr.msra.gmra.mxu0 %vm714_vm3, %v2958_v55 }
0x175f   :  { %4870 = vmatpush3.xpose.msk.msra.mxu0 %vm562_vm2, %v3194_v54  ;;  %4871 = vmatprep.mubr.msk.f32.mxu0 %vm5613_vm1, %v5612_v40 }
0x1760   :  { %4879 = vmatprep.subr.mxu0 %v5612_v40 }
0x1762   :  { %4872 = vmatmul.mubr.msk.f32.vlgmr.msra.gmra.mxu0 %vm562_vm2, %v3192_v52 }
0x1763   :  { %4881 = vmatprep.mubr.msk.f32.mxu0 %vm5613_vm1, %v5612_v40 }
0x180e   :  { %v6238_v56 = vpop.f32.mrf.mxu1 }
0x1810   :  { %v4858_v57 = vpop.f32.mrf.mxu1 }
0x1812   :  { %v3187_v58 = vpop.f32.mrf.mxu1 }
0x1813   :  { %v3269_v59 = vsel %vm714_vm3, %v3187_v58, -inf }
0x1814   :  { %3270 = vmax.xlane.f32.xlu1 %v3269_v59  ;;  %v4868_v60 = vpop.f32.mrf.mxu1  ;;  %v3810_v59 = vld [vmem:[%s6448_s16 + $0x38] sm:$0xff] }
0x1815   :  { %v3809_v60 = vld [vmem:[%s6448_s16 + $0x30] sm:$0xff] }
0x181e   :  { %v6241_v61 = vpop.f32.mrf.mxu0 }
0x1820   :  { %v4863_v62 = vpop.f32.mrf.mxu0 }
0x1821   :  { %v3807_v62 = vld [vmem:[%s6448_s16 + $0x20] sm:$0xff] }
0x1822   :  { %v3265_v63 = vpop.f32.mrf.mxu0 }
0x1823   :  { %v3272_v4 = vsel %vm714_vm3, %v3265_v63, -inf }
0x1824   :  { %3273 = vmax.xlane.f32.xlu0 %v3272_v4  ;;  %v4873_v36 = vpop.f32.mrf.mxu0  ;;  %v3805_v4 = vld [vmem:[%s6448_s16 + $0x10] sm:$0xff] }
0x1825   :  { %3367 = vrot.lane.b32.xlu1 %v6185_v14, %s5618_s30  ;;  %v3804_v36 = vld [vmem:[%s6448_s16 + $0x8] sm:$0xff] }
0x1829   :  { %3445 = vrot.lane.b32.xlu1 %v6143_v46, %s5619_s17 }
0x189d   :  { %v3271_v0 = vpop.xlane.xlu1 %3270 }
0x189e   :  { %v3275_v2 = vsub.f32 %v3187_v58, %v3271_v0 }
0x18a0   :  { %v3277_v38 = vmul.f32 1.442695, %v3275_v2  ;;  %v3803_v2 = vld [vmem:[%s6448_s16] sm:$0xff] }
0x18a1   :  { %v3368_v1 = vpop.permute.xlu1 %3367 }
0x18a2   :  { %5086 = vpow2.f32 %v3277_v38  ;;  %4880 = vmatpush3.msra.mxu0 %v3368_v1 }
0x18a3   :  { %4889 = vmatprep.subr.mxu0 %v5612_v40 }
0x18a5   :  { %v3446_v19 = vpop.permute.xlu1 %3445 }
0x18ad   :  { %v3274_v3 = vpop.xlane.xlu0 %3273 }
0x18ae   :  { %v3276_v5 = vsub.f32 %v3265_v63, %v3274_v3  ;;  %v3806_v63 = vld [vmem:[%s6448_s16 + $0x18] sm:$0xff] }
0x18af   :  { %v5087_v8 = vpop.eup %5086 }
0x18b0   :  { %v3279_v9 = vmul.f32 1.442695, %v3276_v5  ;;  %v3281_v10 = vsel %vm714_vm3, %v5087_v8, 0.0 }
0x18b1   :  { %3282 = vadd.xlane.f32.xlu0 %v3281_v10 }
0x18b2   :  { %5088 = vpow2.f32 %v3279_v9 }
0x18bf   :  { %v5089_v12 = vpop.eup %5088 }
0x18c0   :  { %v3284_v16 = vsel %vm714_vm3, %v5089_v12, 0.0 }
0x18c1   :  { %3285 = vadd.xlane.f32.xlu1 %v3284_v16 }
0x18c7   :  { %3291 = vrot.lane.b32.xlu0 %v6160_v15, %s5618_s30 }
0x18cb   :  { %3523 = vrot.lane.b32.xlu0 %v6147_v49, %s5619_s17 }
0x18cf   :  { %3521 = vrot.lane.b32.xlu0 %v6147_v49, %s5620_s10 }
0x18d2   :  { %3443 = vrot.lane.b32.xlu1 %v6143_v46, %s5620_s10 }
0x193a   :  { %v3283_v17 = vpop.xlane.xlu0 %3282 }
0x193b   :  { %5090 = vrcp.f32 %v3283_v17 }
0x193e   :  { %v3292_v18 = vpop.permute.xlu0 %3291 }
0x193f   :  { %4875 = vmatpush3.msra.mxu1 %v3292_v18 }
0x1940   :  { %4884 = vmatprep.subr.mxu1 %v5612_v40 }
0x1942   :  { %v3524_v13 = vpop.permute.xlu0 %3523 }
0x1946   :  { %v3522_v25 = vpop.permute.xlu0 %3521 }
0x1948   :  { %v5091_v20 = vpop.eup %5090 }
0x1949   :  { %v3289_v43 = vmul.f32 %v5091_v20, %v5087_v8 }
0x194a   :  { %v3286_v23 = vpop.xlane.xlu1 %3285 }
0x194b   :  { %5092 = vrcp.f32 %v3286_v23  ;;  %4877 = vmatmul.mubr.msk.f32.vlgmr.msra.gmra.mxu1 %vm714_vm3, %v3289_v43 }
0x194c   :  { %4885 = vmatpush3.xpose.msk.msra.mxu1 %vm562_vm2, %v3446_v19  ;;  %4886 = vmatprep.mubr.msk.f32.mxu1 %vm5613_vm1, %v5612_v40 }
0x194d   :  { %4894 = vmatprep.subr.mxu1 %v5612_v40 }
0x194e   :  { %v3444_v46 = vpop.permute.xlu1 %3443 }
0x194f   :  { %4887 = vmatmul.mubr.msk.f32.vlgmr.msra.gmra.mxu1 %vm562_vm2, %v3444_v46 }
0x1950   :  { %4896 = vmatprep.mubr.msk.f32.mxu1 %vm5613_vm1, %v5612_v40 }
0x1958   :  { %v5093_v49 = vpop.eup %5092 }
0x1959   :  { %v3290_v22 = vmul.f32 %v5093_v49, %v5089_v12 }
0x195b   :  { %4882 = vmatmul.mubr.msk.f32.vlgmr.msra.gmra.mxu0 %vm714_vm3, %v3290_v22 }
0x195c   :  { %4890 = vmatpush3.xpose.msk.msra.mxu0 %vm562_vm2, %v3524_v13  ;;  %4891 = vmatprep.mubr.msk.f32.mxu0 %vm5613_vm1, %v5612_v40 }
0x195d   :  { %4899 = vmatprep.subr.mxu0 %v5612_v40 }
0x195f   :  { %4892 = vmatmul.mubr.msk.f32.vlgmr.msra.gmra.mxu0 %vm562_vm2, %v3522_v25 }
0x1960   :  { %4901 = vmatprep.mubr.msk.f32.mxu0 %vm5613_vm1, %v5612_v40 }
0x1a0b   :  { %v3363_v26 = vpop.f32.mrf.mxu1 }
0x1a0d   :  { %v4878_v27 = vpop.f32.mrf.mxu1 }
0x1a0f   :  { %v3517_v28 = vpop.f32.mrf.mxu1 }
0x1a10   :  { %v3599_v29 = vsel %vm714_vm3, %v3517_v28, -inf }
0x1a11   :  { %3600 = vmax.xlane.f32.xlu1 %v3599_v29  ;;  %v4888_v30 = vpop.f32.mrf.mxu1 }
0x1a1b   :  { %v3439_v31 = vpop.f32.mrf.mxu0 }
0x1a1d   :  { %v4883_v32 = vpop.f32.mrf.mxu0 }
0x1a1f   :  { %v3595_v33 = vpop.f32.mrf.mxu0 }
0x1a20   :  { %v3602_v34 = vsel %vm714_vm3, %v3595_v33, -inf }
0x1a21   :  { %3603 = vmax.xlane.f32.xlu0 %v3602_v34  ;;  %v4893_v37 = vpop.f32.mrf.mxu0 }
0x1a9a   :  { %v3601_v39 = vpop.xlane.xlu1 %3600 }
0x1a9b   :  { %v3605_v42 = vsub.f32 %v3517_v28, %v3601_v39  ;;  %v3960_v39 = vld [vmem:[%s6449_s9 + $0x78] sm:$0xff] }
0x1a9d   :  { %v3607_v44 = vmul.f32 1.442695, %v3605_v42  ;;  %v3959_v42 = vld [vmem:[%s6449_s9 + $0x70] sm:$0xff] }
0x1a9f   :  { %5094 = vpow2.f32 %v3607_v44  ;;  %v3958_v44 = vld [vmem:[%s6449_s9 + $0x68] sm:$0xff] }
0x1aaa   :  { %v3604_v45 = vpop.xlane.xlu0 %3603 }
0x1aab   :  { %v3606_v47 = vsub.f32 %v3595_v33, %v3604_v45  ;;  %v3957_v45 = vld [vmem:[%s6449_s9 + $0x60] sm:$0xff] }
0x1aac   :  { %v5095_v48 = vpop.eup %5094 }
0x1aad   :  { %v3609_v51 = vmul.f32 1.442695, %v3606_v47  ;;  %v3611_v11 = vsel %vm714_vm3, %v5095_v48, 0.0  ;;  %v3956_v47 = vld [vmem:[%s6449_s9 + $0x58] sm:$0xff] }
0x1aae   :  { %3612 = vadd.xlane.f32.xlu0 %v3611_v11  ;;  %v3953_v11 = vld [vmem:[%s6449_s9 + $0x40] sm:$0xff] }
0x1aaf   :  { %5096 = vpow2.f32 %v3609_v51  ;;  %v3954_v51 = vld [vmem:[%s6449_s9 + $0x48] sm:$0xff] }
0x1abc   :  { %v5097_v50 = vpop.eup %5096 }
0x1abd   :  { %v3614_v53 = vsel %vm714_vm3, %v5097_v50, 0.0 }
0x1abe   :  { %3615 = vadd.xlane.f32.xlu1 %v3614_v53  ;;  %v3951_v53 = vld [vmem:[%s6449_s9 + $0x30] sm:$0xff] }
0x1ac4   :  { %3621 = vrot.lane.b32.xlu0 %v6160_v15, %s5620_s10 }
0x1ac8   :  { %3777 = vrot.lane.b32.xlu0 %v6241_v61, %s5619_s17  ;;  %v3808_v61 = vld [vmem:[%s6448_s16 + $0x28] sm:$0xff] }
0x1acc   :  { %3785 = vrot.lane.b32.xlu0 %v3439_v31, %s5617_s14 }
0x1acf   :  { %3697 = vrot.lane.b32.xlu1 %v6185_v14, %s5620_s10 }
0x1ad3   :  { %3775 = vrot.lane.b32.xlu1 %v6238_v56, %s5619_s17 }
0x1ad7   :  { %3783 = vrot.lane.b32.xlu1 %v3363_v26, %s5617_s14 }
0x1b37   :  { %v3613_v54 = vpop.xlane.xlu0 %3612 }
0x1b38   :  { %5098 = vrcp.f32 %v3613_v54  ;;  %v3950_v54 = vld [vmem:[%s6449_s9 + $0x28] sm:$0xff] }
0x1b3b   :  { %v3622_v55 = vpop.permute.xlu0 %3621 }
0x1b3c   :  { %4895 = vmatpush3.msra.mxu1 %v3622_v55  ;;  %v3949_v55 = vld [vmem:[%s6449_s9 + $0x20] sm:$0xff] }
0x1b3d   :  { %4904 = vmatprep.subr.mxu1 %v3810_v59 }
0x1b3f   :  { %v3778_v17 = vpop.permute.xlu0 %3777 }
0x1b40   :  { %v3798_v19 = vsel %vm562_vm2, %v6203_v24, %v3778_v17  ;;  %v4113_v17 = vld [vmem:[%s6450_s0 + $0xe8] sm:$0xff] }
0x1b43   :  { %v3786_v18 = vpop.permute.xlu0 %3785 }
0x1b44   :  { %v3800_v20 = vsel %vm1901_vm4, %v3798_v19, %v3786_v18  ;;  %v4097_v18 = vld [vmem:[%s6450_s0 + $0x68] sm:$0xff]  ;;  %v4112_v19 = vld [vmem:[%s6450_s0 + $0xe0] sm:$0xff] }
0x1b45   :  { %v5099_v15 = vpop.eup %5098 }
0x1b46   :  { %v3619_v52 = vmul.f32 %v5099_v15, %v5095_v48  ;;  %v3955_v48 = vld [vmem:[%s6449_s9 + $0x50] sm:$0xff]  ;;  %v3948_v15 = vld [vmem:[%s6449_s9 + $0x18] sm:$0xff] }
0x1b47   :  { %v3616_v57 = vpop.xlane.xlu1 %3615 }
0x1b48   :  { %5100 = vrcp.f32 %v3616_v57  ;;  %4897 = vmatmul.mubr.msk.f32.vlgmr.msra.gmra.mxu1 %vm714_vm3, %v3619_v52  ;;  %v3947_v52 = vld [vmem:[%s6449_s9 + $0x10] sm:$0xff]  ;;  %v3946_v57 = vld [vmem:[%s6449_s9 + $0x8] sm:$0xff] }
0x1b49   :  { %4905 = vmatpush3.msra.mxu1 %v3810_v59 }
0x1b4a   :  { %4906 = vmatprep.subr.mxu1 %v3809_v60 }
0x1b4b   :  { %v3698_v14 = vpop.permute.xlu1 %3697  ;;  %4907 = vmatpush3.msra.mxu1 %v3809_v60 }
0x1b4c   :  { %4900 = vmatpush3.msra.mxu0 %v3698_v14  ;;  %4908 = vmatprep.subr.mxu1 %v3808_v61  ;;  %v3945_v14 = vld [vmem:[%s6449_s9] sm:$0xff] }
0x1b4d   :  { %4909 = vmatpush3.msra.mxu1 %v3808_v61  ;;  %3995 = vmatprep.subr.mxu0 %v3960_v39  ;;  %v4085_v39 = vld [vmem:[%s6450_s0 + $0x8] sm:$0xff] }
0x1b4e   :  { %4910 = vmatprep.subr.mxu1 %v3807_v62 }
0x1b4f   :  { %4911 = vmatpush3.msra.mxu1 %v3807_v62  ;;  %v3776_v5 = vpop.permute.xlu1 %3775 }
0x1b50   :  { %4912 = vmatprep.subr.mxu1 %v3806_v63  ;;  %v3797_v9 = vsel %vm562_vm2, %v6201_v21, %v3776_v5  ;;  %v4542_v21 = vld [vmem:[#allocation17] ss:$0 sm:$0xff] }
0x1b51   :  { %4913 = vmatpush3.msra.mxu1 %v3806_v63 }
0x1b52   :  { %4914 = vmatprep.subr.mxu1 %v3805_v4 }
0x1b53   :  { %4915 = vmatpush3.msra.mxu1 %v3805_v4  ;;  %v3784_v8 = vpop.permute.xlu1 %3783 }
0x1b54   :  { %4916 = vmatprep.subr.mxu1 %v3804_v36  ;;  %v3799_v10 = vsel %vm1901_vm4, %v3797_v9, %v3784_v8  ;;  %v4115_v9 = vld [vmem:[%s6450_s0 + $0xf8] sm:$0xff] }
0x1b55   :  { %v5101_v56 = vpop.eup %5100  ;;  %4917 = vmatpush3.msra.mxu1 %v3804_v36 }
0x1b56   :  { %v3620_v58 = vmul.f32 %v5101_v56, %v5097_v50  ;;  %4918 = vmatprep.subr.mxu1 %v3803_v2  ;;  %v3952_v50 = vld [vmem:[%s6449_s9 + $0x38] sm:$0xff] }
0x1b57   :  { %4919 = vmatpush3.msra.mxu1 %v3803_v2  ;;  %v4545_v2 = vld [vmem:[#allocation19] ss:$0 sm:$0xff] }
0x1b58   :  { %4902 = vmatmul.mubr.msk.f32.vlgmr.msra.gmra.mxu0 %vm714_vm3, %v3620_v58  ;;  %4678 = vmatprep.subr.mxu1 %v4115_v9 }
0x1b59   :  { %4043 = vmatprep.mubr.f32.mxu0 %v5612_v40  ;;  %3996 = vmatpush1.msra.mxu0 %v3959_v42  ;;  %v4100_v42 = vld [vmem:[%s6450_s0 + $0x80] sm:$0xff] }
0x1b5a   :  { %3997 = vmatprep.subr.mxu0 %v3958_v44  ;;  %v4084_v44 = vld [vmem:[%s6450_s0] sm:$0xff] }
0x1b5b   :  { %3998 = vmatpush1.msra.mxu0 %v3957_v45  ;;  %v3961_v45 = vld [vmem:[#allocation22] sm:$0x3] }
0x1b5c   :  { %3999 = vmatprep.subr.mxu0 %v3956_v47  ;;  %v3966_v47 = vrot.slane %v3961_v45, %v5818_v6 }
0x1b5d   :  { %4000 = vmatpush1.msra.mxu0 %v3955_v48  ;;  %v3970_v48 = vrot.slane %v3961_v45, %v5820_v7 }
0x1b5e   :  { %4001 = vmatprep.subr.mxu0 %v3954_v51 }
0x1b5f   :  { %4002 = vmatpush1.msra.mxu0 %v3953_v11 }
0x1b60   :  { %4003 = vmatprep.subr.mxu0 %v3952_v50 }
0x1b61   :  { %4004 = vmatpush1.msra.mxu0 %v3951_v53 }
0x1b62   :  { %4005 = vmatprep.subr.mxu0 %v3950_v54 }
0x1b63   :  { %4006 = vmatpush1.msra.mxu0 %v3949_v55 }
0x1b64   :  { %4007 = vmatprep.subr.mxu0 %v3948_v15 }
0x1b65   :  { %4008 = vmatpush1.msra.mxu0 %v3947_v52 }
0x1b66   :  { %4009 = vmatprep.subr.mxu0 %v3946_v57 }
0x1b67   :  { %4010 = vmatpush1.msra.mxu0 %v3945_v14 }
0x1b68   :  { %4923 = vmatprep.subr.mxu0 %v5612_v40 }
0x1c08   :  { %v3693_v0 = vpop.f32.mrf.mxu1 }
0x1c09   :  { %3791 = vrot.lane.b32.xlu1 %v3693_v0, %s5615_s21 }
0x1c0a   :  { %v4898_v38 = vpop.f32.mrf.mxu1 }
0x1c18   :  { %v3769_v1 = vpop.f32.mrf.mxu0 }
0x1c19   :  { %3793 = vrot.lane.b32.xlu0 %v3769_v1, %s5615_s21  ;;  %v4546_v1 = vld [vmem:[#allocation20] ss:$0 sm:$0xff] }
0x1c1a   :  { %v4903_v3 = vpop.f32.mrf.mxu0 }
0x1c7b   :  { %v3792_v12 = vpop.permute.xlu1 %3791 }
0x1c7c   :  { %v3801_v16 = vsel %vm1904_vm5, %v3799_v10, %v3792_v12  ;;  %v4099_v10 = vld [vmem:[%s6450_s0 + $0x78] sm:$0xff]  ;;  %v4114_v12 = vld [vmem:[%s6450_s0 + $0xf0] sm:$0xff] }
0x1c7d   :  { %4920 = vmatprep.mubr.msk.f32.mxu1 %vm404_vm0, %v3801_v16  ;;  %v4098_v16 = vld [vmem:[%s6450_s0 + $0x70] sm:$0xff] }
0x1c8b   :  { %v3794_v43 = vpop.permute.xlu0 %3793 }
0x1c8c   :  { %v3802_v23 = vsel %vm1904_vm5, %v3800_v20, %v3794_v43  ;;  %v4096_v20 = vld [vmem:[%s6450_s0 + $0x60] sm:$0xff]  ;;  %v4111_v43 = vld [vmem:[%s6450_s0 + $0xd8] sm:$0xff] }
0x1c8d   :  { %4921 = vmatmul.mubr.msk.f32.vlgmr.msra.gmra.mxu1 %vm404_vm0, %v3802_v23  ;;  %v4095_v23 = vld [vmem:[%s6450_s0 + $0x58] sm:$0xff] }
0x1c8e   :  { %4679 = vmatpush3.msra.mxu1 %v4099_v10 }
0x1c8f   :  { %4680 = vmatprep.subr.mxu1 %v4114_v12 }
0x1c90   :  { %4681 = vmatpush3.msra.mxu1 %v4098_v16 }
0x1c91   :  { %4682 = vmatprep.subr.mxu1 %v4113_v17 }
0x1c92   :  { %4683 = vmatpush3.msra.mxu1 %v4097_v18 }
0x1c93   :  { %4684 = vmatprep.subr.mxu1 %v4112_v19 }
0x1c94   :  { %4685 = vmatpush3.msra.mxu1 %v4096_v20  ;;  %v4549_v20 = vld [vmem:[#allocation23] ss:$0 sm:$0xff] }
0x1c95   :  { %4686 = vmatprep.subr.mxu1 %v4111_v43 }
0x1c96   :  { %4687 = vmatpush3.msra.mxu1 %v4095_v23 }
0x1d4d   :  { %v4922_v46 = vpop.f32.mrf.mxu1 }
0x1d4e   :  { %v3896_v49 = vadd.f32 %v4922_v46, %v4542_v21  ;;  %v4094_v46 = vld [vmem:[%s6450_s0 + $0x50] sm:$0xff] }
0x1d4f   :  { %v3890_v13 = vpop.f32.mrf.mxu1 }
0x1d50   :  { %v3900_v22 = vadd.f32 %v3896_v49, %v6135_v41  ;;  %v3891_v25 = vadd.f32 %v4542_v21, %v3890_v13  ;;  %v4110_v21 = vld [vmem:[%s6450_s0 + $0xd0] sm:$0xff]  ;;  %v4109_v49 = vld [vmem:[%s6450_s0 + $0xc8] sm:$0xff] }
0x1d51   :  { %4688 = vmatprep.subr.mxu1 %v4110_v21  ;;  %v4093_v13 = vld [vmem:[%s6450_s0 + $0x48] sm:$0xff] }
0x1d52   :  { %v3899_v26 = vadd.f32 %v3891_v25, %v6130_v35  ;;  %v3906_v27 = vsel %vm404_vm0, %v3900_v22, 0.0  ;;  %4689 = vmatpush3.msra.mxu1 %v4094_v46  ;;  %v4092_v25 = vld [vmem:[%s6450_s0 + $0x40] sm:$0xff] }
0x1d53   :  { %3907 = vadd.xlane.f32.xlu0 %v3906_v27  ;;  %4690 = vmatprep.subr.mxu1 %v4109_v49  ;;  %v4091_v27 = vld [vmem:[%s6450_s0 + $0x38] sm:$0xff] }
0x1d54   :  { %v3903_v24 = vsel %vm404_vm0, %v3899_v26, 0.0  ;;  %4691 = vmatpush3.msra.mxu1 %v4093_v13 }
0x1d55   :  { %3904 = vadd.xlane.f32.xlu1 %v3903_v24  ;;  %v4106_v24 = vld [vmem:[%s6450_s0 + $0xb0] sm:$0xff] }
0x1ddc   :  { %v3908_v28 = vpop.xlane.xlu0 %3907 }
0x1ddd   :  { %v3910_v29 = vmul.f32 0.015625, %v3908_v28  ;;  %v4090_v28 = vld [vmem:[%s6450_s0 + $0x30] sm:$0xff] }
0x1dde   :  { %v3905_v30 = vpop.xlane.xlu1 %3904 }
0x1ddf   :  { %v3912_v31 = vsub.f32 %v3900_v22, %v3910_v29  ;;  %v3909_v32 = vmul.f32 0.015625, %v3905_v30  ;;  %v4108_v22 = vld [vmem:[%s6450_s0 + $0xc0] sm:$0xff]  ;;  %v4105_v29 = vld [vmem:[%s6450_s0 + $0xa8] sm:$0xff] }
0x1de0   :  { %4692 = vmatprep.subr.mxu1 %v4108_v22  ;;  %v4089_v30 = vld [vmem:[%s6450_s0 + $0x28] sm:$0xff] }
0x1de1   :  { %v3911_v41 = vsub.f32 %v3899_v26, %v3909_v32  ;;  %v3914_v33 = vmul.f32 %v3912_v31, %v3912_v31  ;;  %4693 = vmatpush3.msra.mxu1 %v4092_v25  ;;  %v4107_v26 = vld [vmem:[%s6450_s0 + $0xb8] sm:$0xff]  ;;  %v4088_v32 = vld [vmem:[%s6450_s0 + $0x20] sm:$0xff] }
0x1de2   :  { %4694 = vmatprep.subr.mxu1 %v4107_v26 }
0x1de3   :  { %v3918_v35 = vsel %vm404_vm0, %v3914_v33, 0.0  ;;  %v3913_v34 = vmul.f32 %v3911_v41, %v3911_v41  ;;  %4695 = vmatpush3.msra.mxu1 %v4091_v27  ;;  %v4087_v33 = vld [vmem:[%s6450_s0 + $0x18] sm:$0xff] }
0x1de4   :  { %3919 = vadd.xlane.f32.xlu1 %v3918_v35  ;;  %4696 = vmatprep.subr.mxu1 %v4106_v24  ;;  %v4102_v35 = vld [vmem:[%s6450_s0 + $0x90] sm:$0xff] }
0x1de5   :  { %v3915_v37 = vsel %vm404_vm0, %v3913_v34, 0.0  ;;  %4697 = vmatpush3.msra.mxu1 %v4090_v28  ;;  %v4086_v34 = vld [vmem:[%s6450_s0 + $0x10] sm:$0xff] }
0x1de6   :  { %3916 = vadd.xlane.f32.xlu0 %v3915_v37  ;;  %4698 = vmatprep.subr.mxu1 %v4105_v29  ;;  %v4101_v37 = vld [vmem:[%s6450_s0 + $0x88] sm:$0xff] }
0x1de7   :  { %4699 = vmatpush3.msra.mxu1 %v4089_v30 }
0x1e6d   :  { %v3920_v56 = vpop.xlane.xlu1 %3919 }
0x1e6e   :  { %v3922_v58 = vmul.f32 0.015625, %v3920_v56 }
0x1e6f   :  { %v3917_v59 = vpop.xlane.xlu0 %3916 }
0x1e70   :  { %v3924_v60 = vadd.f32 1e-05, %v3922_v58  ;;  %v3921_v61 = vmul.f32 0.015625, %v3917_v59 }
0x1e72   :  { %5102 = vrsqrt.f32 %v3924_v60  ;;  %v3923_v62 = vadd.f32 1e-05, %v3921_v61 }
0x1e74   :  { %5104 = vrsqrt.f32 %v3923_v62 }
0x1e7f   :  { %v5103_v63 = vpop.eup %5102 }
0x1e80   :  { %v3928_v0 = vmul.f32 %v5103_v63, %v3912_v31  ;;  %v4104_v31 = vld [vmem:[%s6450_s0 + $0xa0] sm:$0xff] }
0x1e81   :  { %v5105_v4 = vpop.eup %5104  ;;  %4700 = vmatprep.subr.mxu1 %v4104_v31 }
0x1e82   :  { %v3927_v36 = vmul.f32 %v5105_v4, %v3911_v41  ;;  %v3936_v5 = vmul.f32 %v4545_v2, %v3928_v0  ;;  %4701 = vmatpush3.msra.mxu1 %v4088_v32  ;;  %v4103_v41 = vld [vmem:[%s6450_s0 + $0x98] sm:$0xff] }
0x1e83   :  { %4702 = vmatprep.subr.mxu1 %v4103_v41 }
0x1e84   :  { %v3935_v38 = vmul.f32 %v4545_v2, %v3927_v36  ;;  %v6341_v8 = vadd.f32 %v4546_v1, %v3936_v5  ;;  %4703 = vmatpush3.msra.mxu1 %v4087_v33 }
0x1e85   :  { %4704 = vmatprep.subr.mxu1 %v4102_v35 }
0x1e86   :  { %v6336_v3 = vadd.f32 %v4546_v1, %v3935_v38  ;;  %4705 = vmatpush3.msra.mxu1 %v4086_v34 }
0x1e87   :  { %4706 = vmatprep.subr.mxu1 %v4101_v37 }
0x1e88   :  { %4547 = vmatmul.mubr.msk.f32.vlgmr.msra.gmra.mxu0 %vm404_vm0, %v6336_v3  ;;  %4707 = vmatpush3.msra.mxu1 %v4085_v39 }
0x1e89   :  { %4049 = vmatprep.mubr.f32.mxu0 %v5612_v40  ;;  %4708 = vmatprep.subr.mxu1 %v4100_v42 }
0x1e8a   :  { %4709 = vmatpush3.msra.mxu1 %v4084_v44 }
0x1e8c   :  { %4548 = vmatmul.mubr.msk.f32.gmra.mxu0 %vm404_vm0, %v6341_v8 }
0x1e8d   :  { %4939 = vmatprep.mubr.msk.f32.mxu0 %vm5613_vm1, %v5612_v40 }
0x1f48   :  { %v4045_v51 = vpop.f32.mrf.mxu0 }
0x1f49   :  { %v4046_v11 = vadd.f32 %v4045_v51, %v3966_v47 }
0x1f4a   :  { %v4047_v50 = vpop.f32.mrf.mxu0 }
0x1f4b   :  { %v4056_v53 = vsub.f32 0.0, %v4046_v11  ;;  %v4048_v54 = vadd.f32 %v4047_v50, %v3970_v48 }
0x1f4c   :  { %v4051_v55 = vpop.f32.mrf.mxu0 }
0x1f4d   :  { %v4060_v15 = vmul.f32 1.442695, %v4056_v53  ;;  %v4057_v52 = vsub.f32 0.0, %v4048_v54  ;;  %v4052_v57 = vadd.f32 %v4051_v55, %v3966_v47 }
0x1f4e   :  { %v4053_v14 = vpop.f32.mrf.mxu0 }
0x1f4f   :  { %5106 = vpow2.f32 %v4060_v15  ;;  %v4062_v56 = vmul.f32 1.442695, %v4057_v52  ;;  %v4058_v58 = vsub.f32 0.0, %v4052_v57  ;;  %v4054_v59 = vadd.f32 %v4053_v14, %v3970_v48  ;;  %v4550_v48 = vld [vmem:[#allocation25] ss:$0 sm:$0xff] }
0x1f51   :  { %5108 = vpow2.f32 %v4062_v56  ;;  %v4064_v60 = vmul.f32 1.442695, %v4058_v58  ;;  %v4059_v61 = vsub.f32 0.0, %v4054_v59 }
0x1f53   :  { %5110 = vpow2.f32 %v4064_v60  ;;  %v4066_v6 = vmul.f32 1.442695, %v4059_v61 }
0x1f55   :  { %5112 = vpow2.f32 %v4066_v6 }
0x1f5c   :  { %v5107_v7 = vpop.eup %5106 }
0x1f5d   :  { %v4068_v62 = vadd.f32 1.0, %v5107_v7 }
0x1f5e   :  { %v5109_v63 = vpop.eup %5108 }
0x1f5f   :  { %v4069_v4 = vadd.f32 1.0, %v5109_v63  ;;  %5114 = vrcp.f32 %v4068_v62 }
0x1f60   :  { %v5111_v36 = vpop.eup %5110 }
0x1f61   :  { %5116 = vrcp.f32 %v4069_v4  ;;  %v4070_v0 = vadd.f32 1.0, %v5111_v36 }
0x1f62   :  { %v5113_v2 = vpop.eup %5112 }
0x1f63   :  { %v4071_v38 = vadd.f32 1.0, %v5113_v2  ;;  %5118 = vrcp.f32 %v4070_v0 }
0x1f65   :  { %5120 = vrcp.f32 %v4071_v38 }
0x1f6c   :  { %v5115_v1 = vpop.eup %5114 }
0x1f6d   :  { %v4080_v10 = vmul.f32 %v5115_v1, %v4046_v11  ;;  %v4551_v11 = vld [vmem:[#allocation26] ss:$0 sm:$0xff] }
0x1f6e   :  { %v5117_v5 = vpop.eup %5116 }
0x1f6f   :  { %v4081_v9 = vmul.f32 %v5117_v5, %v4048_v54 }
0x1f70   :  { %v5119_v12 = vpop.eup %5118 }
0x1f71   :  { %4187 = vmatprep.mubr.f32.mxu1 %v4081_v9  ;;  %v4082_v18 = vmul.f32 %v5119_v12, %v4052_v57 }
0x1f72   :  { %v5121_v16 = vpop.eup %5120  ;;  %4188 = vmatmul.mubr.f32.vlgmr.msra.gmra.mxu1 %v4080_v10 }
0x1f73   :  { %v4083_v17 = vmul.f32 %v5121_v16, %v4054_v59 }
0x1f75   :  { %4192 = vmatprep.mubr.f32.mxu1 %v4083_v17 }
0x1f76   :  { %4193 = vmatmul.mubr.f32.gmra.mxu1 %v4082_v18 }
0x2032   :  { %v4710_v19 = vpop.f32.mrf.mxu1 }
0x2034   :  { %v4711_v43 = vpop.f32.mrf.mxu1 }
0x2035   :  { %v4712_v23 = vadd.f32 %v4711_v43, %v4710_v19 }
0x2036   :  { %v4713_v21 = vpop.f32.mrf.mxu1 }
0x2037   :  { %v4190_v46 = vadd.f32 %v4712_v23, %v4549_v20 }
0x2038   :  { %v4714_v49 = vpop.f32.mrf.mxu1 }
0x2039   :  { %v4715_v13 = vadd.f32 %v4714_v49, %v4713_v21  ;;  %v4198_v22 = vadd.f32 %v4190_v46, %v6336_v3  ;;  %v4335_v21 = vld [vmem:[%s5785_s6 + $0x38] sm:$0xff]  ;;  %v4334_v46 = vld [vmem:[%s5785_s6 + $0x30] sm:$0xff]  ;;  %v4333_v49 = vld [vmem:[%s5785_s6 + $0x28] sm:$0xff] }
0x203a   :  { %4924 = vmatpush3.msra.mxu0 %v4335_v21 }
0x203b   :  { %v4195_v25 = vadd.f32 %v4715_v13, %v4549_v20  ;;  %v4202_v26 = vsel %vm404_vm0, %v4198_v22, 0.0  ;;  %4925 = vmatprep.subr.mxu0 %v5612_v40  ;;  %v4332_v13 = vld [vmem:[%s5785_s6 + $0x20] sm:$0xff] }
0x203c   :  { %4203 = vadd.xlane.f32.xlu0 %v4202_v26  ;;  %4926 = vmatpush3.msra.mxu0 %v4334_v46  ;;  %v4329_v26 = vld [vmem:[%s5785_s6 + $0x8] sm:$0xff] }
0x203d   :  { %v4199_v27 = vadd.f32 %v4195_v25, %v6341_v8  ;;  %4927 = vmatprep.subr.mxu0 %v5612_v40  ;;  %v4330_v25 = vld [vmem:[%s5785_s6 + $0x10] sm:$0xff] }
0x203e   :  { %4928 = vmatpush3.msra.mxu0 %v4333_v49 }
0x203f   :  { %v4205_v24 = vsel %vm404_vm0, %v4199_v27, 0.0  ;;  %4929 = vmatprep.subr.mxu0 %v5612_v40 }
0x2040   :  { %4206 = vadd.xlane.f32.xlu1 %v4205_v24  ;;  %4930 = vmatpush3.msra.mxu0 %v4332_v13 }
0x2041   :  { %4931 = vmatprep.subr.mxu0 %v5612_v40 }
0x20c5   :  { %v4204_v28 = vpop.xlane.xlu0 %4203 }
0x20c6   :  { %v4208_v29 = vmul.f32 0.015625, %v4204_v28 }
0x20c8   :  { %v4210_v30 = vsub.f32 %v4198_v22, %v4208_v29  ;;  %v4331_v22 = vld [vmem:[%s5785_s6 + $0x18] sm:$0xff] }
0x20c9   :  { %v4207_v31 = vpop.xlane.xlu1 %4206  ;;  %4932 = vmatpush3.msra.mxu0 %v4331_v22 }
0x20ca   :  { %v4209_v32 = vmul.f32 0.015625, %v4207_v31  ;;  %v4212_v41 = vmul.f32 %v4210_v30, %v4210_v30  ;;  %4933 = vmatprep.subr.mxu0 %v5612_v40  ;;  %v4552_v31 = vld [vmem:[#allocation28] ss:$0 sm:$0xff] }
0x20cb   :  { %4934 = vmatpush3.msra.mxu0 %v4330_v25 }
0x20cc   :  { %v4211_v33 = vsub.f32 %v4199_v27, %v4209_v32  ;;  %v4214_v35 = vsel %vm404_vm0, %v4212_v41, 0.0  ;;  %4935 = vmatprep.subr.mxu0 %v5612_v40  ;;  %v4328_v27 = vld [vmem:[%s5785_s6] sm:$0xff]  ;;  %s5621_s6 = smov [#allocation32]  }
0x20cd   :  { %4215 = vadd.xlane.f32.xlu0 %v4214_v35  ;;  %4936 = vmatpush3.msra.mxu0 %v4329_v26  ;;  %s4426_s18 = sshll.u32 %s5621_s6, 4  ;;  %s4427_s18 = int_to_ptr.vmem [resolvable:$true] %s4426_s18 }
0x20ce   :  { %v4213_v3 = vmul.f32 %v4211_v33, %v4211_v33  ;;  %4937 = vmatprep.subr.mxu0 %v5612_v40  ;;  %s5516_s4 = scalar_lea.vmem %s4427_s18, 32  ;;  %p5521_p12 = scmp.lt.s32.totalorder %s4427_s18, %s4427_s18 }
0x20cf   :  { %4938 = vmatpush3.msra.mxu0 %v4328_v27  ;;  %p5517_p11 = scmp.ne.s32.totalorder %s4427_s18, %s5516_s4  ;;  %p5522_p13 = scmp.lt.s32.totalorder %s5516_s4, %s5516_s4 }
0x20d0   :  { %v4217_v34 = vsel %vm404_vm0, %v4213_v3, 0.0 }
0x20d1   :  { %4218 = vadd.xlane.f32.xlu1 %v4217_v34  ;;  %p5523_p0 = por %p5522_p13, %p5521_p12 }
0x20d3   :  { %p5524_p1 = pnand %p5523_p0, %p5517_p11 }
0x2156   :  { %v4216_v37 = vpop.xlane.xlu0 %4215 }
0x2157   :  { %v4220_v39 = vmul.f32 0.015625, %v4216_v37 }
0x2159   :  { %v4222_v8 = vadd.f32 1e-05, %v4220_v39 }
0x215a   :  { %v4219_v42 = vpop.xlane.xlu1 %4218 }
0x215b   :  { %5122 = vrsqrt.f32 %v4222_v8  ;;  %v4221_v44 = vmul.f32 0.015625, %v4219_v42 }
0x215d   :  { %v4223_v45 = vadd.f32 1e-05, %v4221_v44 }
0x215f   :  { %5124 = vrsqrt.f32 %v4223_v45 }
0x2168   :  { %v5123_v47 = vpop.eup %5122 }
0x2169   :  { %v4226_v51 = vmul.f32 %v5123_v47, %v4210_v30 }
0x216b   :  { %v4234_v50 = vmul.f32 %v4550_v48, %v4226_v51 }
0x216c   :  { %v5125_v53 = vpop.eup %5124 }
0x216d   :  { %v4227_v54 = vmul.f32 %v5125_v53, %v4211_v33  ;;  %v4242_v55 = vadd.f32 %v4551_v11, %v4234_v50  ;;  %v4553_v33 = vld [vmem:[#allocation29] ss:$0 sm:$0xff] }
0x216f   :  { %v4235_v15 = vmul.f32 %v4550_v48, %v4227_v54  ;;  %v4244_v52 = vsel %vm404_vm0, %v4242_v55, 0.0 }
0x2170   :  { %v4245_v57 = vrot.slane %v4244_v52, 4 }
0x2171   :  { %v4243_v14 = vadd.f32 %v4551_v11, %v4235_v15 }
0x2172   :  { %v4246_v56 = vadd.f32 %v4245_v57, %v4244_v52  ;;  %v4554_v52 = vld [vmem:[#allocation31] ss:$0 sm:$0xff] }
0x2173   :  { %v4251_v58 = vsel %vm404_vm0, %v4243_v14, 0.0 }
0x2174   :  { %v4247_v59 = vrot.slane %v4246_v56, 2  ;;  %v4252_v60 = vrot.slane %v4251_v58, 4 }
0x2176   :  { %v4248_v61 = vadd.f32 %v4247_v59, %v4246_v56  ;;  %v4253_v6 = vadd.f32 %v4252_v60, %v4251_v58 }
0x2178   :  { %v4249_v7 = vrot.slane %v4248_v61, 1  ;;  %v4254_v62 = vrot.slane %v4253_v6, 2 }
0x217a   :  { %v4255_v63 = vadd.f32 %v4254_v62, %v4253_v6  ;;  %v4250_v4 = vadd.f32 %v4249_v7, %v4248_v61 }
0x217c   :  { %v4256_v36 = vrot.slane %v4255_v63, 1  ;;  %v4259_v2 = vmul.f32 0.125, %v4250_v4 }
0x217e   :  { %v4257_v0 = vadd.f32 %v4256_v36, %v4255_v63 }
0x2180   :  { %v4260_v38 = vmul.f32 0.125, %v4257_v0 }
0x2182   :  { %v4266_v1 = vsel %vm4265_vm6, %v4260_v38, %v4259_v2 }
0x2183   :  { %v4269_v5 = vsel %vm4268_vm7, %v4266_v1, 0.0 }
0x2184   :  { %4270 = vadd.xlane.f32.xlu0 %v4269_v5 }
0x220d   :  { %v4271_v9 = vpop.xlane.xlu0 %4270 }
0x220e   :  { %v4272_v10 = vmul.f32 0.015625, %v4271_v9 }
0x2210   :  { %v4274_v12 = vrot.slane %v4272_v10, 1  ;;  %v4277_v16 = vsub.f32 %v4259_v2, %v4272_v10 }
0x2212   :  { %v4278_v17 = vsub.f32 %v4260_v38, %v4274_v12  ;;  %v4279_v19 = vmul.f32 %v4277_v16, %v4277_v16 }
0x2214   :  { %v4280_v18 = vmul.f32 %v4278_v17, %v4278_v17 }
0x2216   :  { %v4283_v20 = vrot.slane %v4280_v18, 7 }
0x2218   :  { %v4284_v43 = vsel %vm4265_vm6, %v4283_v20, %v4279_v19 }
0x2219   :  { %v4286_v23 = vsel %vm4268_vm7, %v4284_v43, 0.0 }
0x221a   :  { %4287 = vadd.xlane.f32.xlu1 %v4286_v23 }
0x22a3   :  { %v4288_v24 = vpop.xlane.xlu1 %4287 }
0x22a4   :  { %v4289_v28 = vmul.f32 0.015625, %v4288_v24 }
0x22a6   :  { %v4290_v29 = vadd.f32 1e-05, %v4289_v28 }
0x22a8   :  { %5126 = vrsqrt.f32 %v4290_v29 }
0x22b5   :  { %v5127_v30 = vpop.eup %5126 }
0x22b6   :  { %v4293_v32 = vrot.slane %v5127_v30, 1  ;;  %v4296_v41 = vmul.f32 %v5127_v30, %v4277_v16 }
0x22b8   :  { %v4297_v35 = vmul.f32 %v4293_v32, %v4278_v17  ;;  %v4304_v3 = vmul.f32 %v4552_v31, %v4296_v41 }
0x22ba   :  { %v4305_v34 = vmul.f32 %v4552_v31, %v4297_v35  ;;  %v4312_v37 = vadd.f32 %v4553_v33, %v4304_v3 }
0x22bc   :  { %v4313_v39 = vadd.f32 %v4553_v33, %v4305_v34  ;;  %v4314_v8 = vsub.f32 0.0, %v4312_v37 }
0x22be   :  { %v4315_v42 = vsub.f32 0.0, %v4313_v39  ;;  %v4316_v44 = vmul.f32 1.442695, %v4314_v8 }
0x22c0   :  { %5128 = vpow2.f32 %v4316_v44  ;;  %v4318_v40 = vmul.f32 1.442695, %v4315_v42 }
0x22c2   :  { %5130 = vpow2.f32 %v4318_v40 }
0x22cd   :  { %v5129_v45 = vpop.eup %5128 }
0x22ce   :  { %v4320_v47 = vadd.f32 1.0, %v5129_v45 }
0x22cf   :  { %v5131_v48 = vpop.eup %5130 }
0x22d0   :  { %v4321_v51 = vadd.f32 1.0, %v5131_v48  ;;  %5132 = vrcp.f32 %v4320_v47 }
0x22d2   :  { %5134 = vrcp.f32 %v4321_v51 }
0x22dd   :  { %v5133_v11 = vpop.eup %5132 }
0x22de   :  { %v4326_v54 = vmul.f32 %v5133_v11, %v4312_v37 }
0x22df   :  { %v5135_v50 = vpop.eup %5134 }
0x22e0   :  { %v4327_v53 = vmul.f32 %v5135_v50, %v4313_v39 }
0x22e2   :  { %v4345_v55 = vrot.slane %v4327_v53, 7 }
0x22e4   :  { %v4346_v15 = vsel %vm4265_vm6, %v4345_v55, %v4326_v54 }
0x22e5   :  { %4940 = vmatmul.mubr.msk.f32.vlgmr.msra.gmra.mxu0 %vm404_vm0, %v4346_v15 }
0x23a5   :  { %v4415_v57 = vpop.f32.mrf.mxu0 }
0x23a6   :  { %v4416_v14 = vadd.f32 %v4554_v52, %v4415_v57 }
0x23a7   :  { %v4941_v56 = vpop.f32.mrf.mxu0 }
0x23a8   :  { %4419 = vst [vmem:[#allocation32] sm:$0x3] %v4416_v14 }
0x23a9   :  { %5527 = shalt.err (!%p5524_p1)
}
0x23aa   :  { %4429 = dma.vmem_to_hbm [thread:$0]  %s4427_s18, 32, %s5795_s29, [#allocation4]  }
0x23ab   :  { %5556 = dma.done.wait [#allocation4], 32  }
0x23ac   :  { %5557 = vsyncadd [#allocation4], 4294967264 }
0x23ad   :  { %4433 = vsyncpa [#allocation3], 1 }
0x23ae   :  { %4434 = vsyncpa [#allocation6], 1 }
0x23af   :  { %4435 = vsyncpa [#allocation9], 1 }
0x23b0   :  { %4436 = vsyncpa [#allocation12], 1 }
0x23b1   :  { %4437 = vsyncpa [#allocation15], 1 }
0x23b2   :  { %4438 = vsyncpa [#allocation18], 1 }
0x23b3   :  { %4439 = vsyncpa [#allocation21], 1 }
0x23b4   :  { %4440 = vsyncpa [#allocation24], 1 }
0x23b5   :  { %4441 = vsyncpa [#allocation27], 1 }
0x23b6   :  { %4442 = vsyncpa [#allocation30], 1 }
0x23b7   :  { %4443 = vsyncpa [#allocation4], 1 }

</bundles_post_ra>
